<compile_context>
chip_gen: v7x
topology: tpu7x:2x2x1
jax: 0.10.0
libtpu: 0.0.40
codegen_flags: <defaults>
</compile_context>

<pallas_src>
import jax
import jax.numpy as jnp
from jax.experimental import pallas as pl
from jax.experimental.pallas import tpu as pltpu

EPS = 1e-5                      # nn.BatchNorm3d default eps
VMEM_LIMIT = 32 * 1024 * 1024   # explicit, with headroom on every generation


# ----------------------- conv3x3x3 + BN-stats Pallas kernel ----------------------- #
def _conv_stats_kernel(xd0_ref, xd1_ref, xd2_ref, w_ref, z_ref, st_ref, lhs_ref):
    """One (n, d) output depth slice.

    xd{0,1,2}_ref : (H+2, W+2, Cin) bf16  -- padded input depth slices d, d+1, d+2
    w_ref         : (27*Cin, Cout)  bf16  -- kernel taps stacked along K
    z_ref         : (H, W, Cout)    f32   -- raw conv output (pre-BN)
    st_ref        : (2, Cout)       f32   -- per-tile [sum, sum of squares]
    lhs_ref       : (H*W, 27*Cin)   f32   -- VMEM scratch for the im2col tile
    """
    H, W, Cout = z_ref.shape
    C = xd0_ref.shape[-1]

    # ---- in-kernel im2col: 27 shifted (H*W, Cin) views written into scratch,
    #      column order (kd, kh, kw, cin) to match the reshaped weight. ----
    k = 0
    for dref in (xd0_ref, xd1_ref, xd2_ref):                  # kd = 0, 1, 2
        # widen to f32 so every slice / reshape stays on 8-sublane f32 tiles
        slab = dref[...].astype(jnp.float32)                  # (H+2, W+2, C)
        for kh in range(3):
            for kw in range(3):
                tap = slab[kh:kh + H, kw:kw + W, :].reshape(H * W, C)
                lhs_ref[:, k * C:(k + 1) * C] = tap
                k += 1

    # ---- single MXU matmul over K = 27*Cin (bf16 inputs, f32 accumulation) ----
    lhs = lhs_ref[...].astype(jnp.bfloat16)                   # (H*W, 27*C)
    acc = jnp.dot(lhs, w_ref[...], preferred_element_type=jnp.float32)  # (H*W, Cout)

    # ---- outputs: raw conv result + BN partial statistics for this tile ----
    z_ref[...] = acc.reshape(H, W, Cout)
    st_ref[0:1, :] = jnp.sum(acc, axis=0, keepdims=True)
    st_ref[1:2, :] = jnp.sum(acc * acc, axis=0, keepdims=True)


def _tap_spec(kd, Hp, Wp, C):
    def imap(n, d):
        return (n, d + kd, 0, 0, 0)        # overlapping depth windows via +kd shift
    return pl.BlockSpec((None, None, Hp, Wp, C), imap)


def _conv3x3x3_stats(xpad, wcol):
    """xpad: (N, D+2, H+2, W+2, Cin) bf16, wcol: (27*Cin, Cout) bf16."""
    N, Dp, Hp, Wp, C = xpad.shape
    D, H, W = Dp - 2, Hp - 2, Wp - 2
    K, Cout = wcol.shape

    in_specs = [_tap_spec(kd, Hp, Wp, C) for kd in range(3)]
    in_specs.append(pl.BlockSpec((K, Cout), lambda n, d: (0, 0)))     # weights, fetched once
    z_spec = pl.BlockSpec((None, None, H, W, Cout), lambda n, d: (n, d, 0, 0, 0))
    st_spec = pl.BlockSpec((None, None, 2, Cout), lambda n, d: (n, d, 0, 0))

    z, st = pl.pallas_call(
        _conv_stats_kernel,
        grid=(N, D),
        in_specs=in_specs,
        out_specs=[z_spec, st_spec],
        out_shape=[jax.ShapeDtypeStruct((N, D, H, W, Cout), jnp.float32),
                   jax.ShapeDtypeStruct((N, D, 2, Cout), jnp.float32)],
        scratch_shapes=[pltpu.VMEM((H * W, K), jnp.float32)],
        compiler_params=pltpu.CompilerParams(
            dimension_semantics=("parallel", "parallel"),   # megacore-shardable
            vmem_limit_bytes=VMEM_LIMIT),
    )(xpad, xpad, xpad, wcol)
    return z, st


# ------------------------ BN apply (+residual) + ReLU kernels ---------------------- #
def _bn_act_kernel(z_ref, a_ref, b_ref, o_ref):
    y = z_ref[...] * a_ref[...] + b_ref[...]
    o_ref[...] = jnp.maximum(y, 0.0).astype(o_ref.dtype)


def _bn_res_act_kernel(z_ref, a_ref, b_ref, r_ref, o_ref):
    y = z_ref[...] * a_ref[...] + b_ref[...] + r_ref[...]
    o_ref[...] = jnp.maximum(y, 0.0).astype(o_ref.dtype)


def _bn_act_apply(z, scale, shift, residual=None, out_dtype=jnp.float32):
    """relu(z * scale + shift [+ residual]), channel-wise, on a lane-dense 2-D view."""
    n, d, h, w, co = z.shape
    total = n * d * h * w * co

    # lane-dense view: last dim a multiple of 128 (channel pattern repeats along lanes)
    if 128 % co == 0 and total % 128 == 0:
        lanes = 512
        while lanes > 128 and total % lanes != 0:
            lanes //= 2
    else:
        lanes = co   # TODO(synk): lane-sparse fallback for channel counts not dividing 128
    rows = total // lanes

    tb = rows                                   # row tile: multiple of 8 or full
    for cand in (512, 256, 128, 64, 32, 16, 8):
        if rows % cand == 0:
            tb = cand
            break

    z2 = z.reshape(rows, lanes)                 # contiguous reshape, free in HBM
    reps = lanes // co
    a_row = jnp.tile(scale.astype(jnp.float32), reps).reshape(1, lanes)
    b_row = jnp.tile(shift.astype(jnp.float32), reps).reshape(1, lanes)

    args = [z2, a_row, b_row]
    in_specs = [pl.BlockSpec((tb, lanes), lambda i: (i, 0)),
                pl.BlockSpec((1, lanes), lambda i: (0, 0)),
                pl.BlockSpec((1, lanes), lambda i: (0, 0))]
    kernel = _bn_act_kernel
    if residual is not None:
        args.append(residual.reshape(rows, lanes))
        in_specs.append(pl.BlockSpec((tb, lanes), lambda i: (i, 0)))
        kernel = _bn_res_act_kernel

    out = pl.pallas_call(
        kernel,
        grid=(rows // tb,),
        in_specs=in_specs,
        out_specs=pl.BlockSpec((tb, lanes), lambda i: (i, 0)),
        out_shape=jax.ShapeDtypeStruct((rows, lanes), out_dtype),
        compiler_params=pltpu.CompilerParams(
            dimension_semantics=("parallel",),
            vmem_limit_bytes=VMEM_LIMIT),
    )(*args)
    return out.reshape(n, d, h, w, co)


# --------------------------------- JAX glue ---------------------------------------- #
def _weight_to_col(wt):
    """PyTorch Conv3d weight (Cout, Cin, 3, 3, 3) -> (27*Cin, Cout), K = (kd, kh, kw, cin)."""
    cout, cin = wt.shape[0], wt.shape[1]
    return jnp.transpose(wt, (2, 3, 4, 1, 0)).reshape(27 * cin, cout)


def _bn_affine(stats, gamma, beta, m):
    """Reduce per-tile (sum, sumsq) -> global train-mode BN scale/shift."""
    s = jnp.sum(stats[:, :, 0, :], axis=(0, 1))      # (Cout,)
    ss = jnp.sum(stats[:, :, 1, :], axis=(0, 1))
    mean = s / m
    var = ss / m - mean * mean                       # biased variance (train mode)
    a = gamma * jax.lax.rsqrt(var + EPS)
    b = beta - mean * a
    return a, b


def residual_block3d_forward(x, params):
    """x: (N, C, D, H, W) float32, like the PyTorch module (defaults)."""
    n, cin, d, h, w = x.shape
    cout = params["w1"].shape[0]
    assert cin == cout, "default config (stride=1, downsample=None) needs Cin == Cout"
    m = n * d * h * w

    x_cl = jnp.transpose(x, (0, 2, 3, 4, 1))                  # (N, D, H, W, C) f32
    pad = ((0, 0), (1, 1), (1, 1), (1, 1), (0, 0))

    # conv1 + BN1 partial stats (bf16 MXU inputs, f32 accumulation)
    xpad = jnp.pad(x_cl, pad).astype(jnp.bfloat16)
    z1, st1 = _conv3x3x3_stats(xpad, _weight_to_col(params["w1"]).astype(jnp.bfloat16))
    a1, b1 = _bn_affine(st1, params["g1"], params["b1"], m)

    # BN1 apply + ReLU; emit bf16 (it is consumed by conv2's bf16 MXU path)
    h1 = _bn_act_apply(z1, a1, b1, out_dtype=jnp.bfloat16)

    # conv2 + BN2 partial stats
    h1pad = jnp.pad(h1, pad)
    z2, st2 = _conv3x3x3_stats(h1pad, _weight_to_col(params["w2"]).astype(jnp.bfloat16))
    a2, b2 = _bn_affine(st2, params["g2"], params["b2"], m)

    # BN2 apply + identity residual + ReLU
    out_cl = _bn_act_apply(z2, a2, b2, residual=x_cl, out_dtype=jnp.float32)
    return jnp.transpose(out_cl, (0, 4, 1, 2, 3))             # back to NCDHW


# ----------------------------- pure-JAX f32 reference ------------------------------ #
def _ref_forward(x, params):
    x_cl = jnp.transpose(x, (0, 2, 3, 4, 1))

    def conv(y, wt):
        return jax.lax.conv_general_dilated(
            y, jnp.transpose(wt, (2, 3, 4, 1, 0)),
            window_strides=(1, 1, 1), padding=((1, 1), (1, 1), (1, 1)),
            dimension_numbers=("NDHWC", "DHWIO", "NDHWC"))

    def bn(y, g, b):
        mean = jnp.mean(y, axis=(0, 1, 2, 3), keepdims=True)
        var = jnp.mean((y - mean) ** 2, axis=(0, 1, 2, 3), keepdims=True)
        return (y - mean) * jax.lax.rsqrt(var + EPS) * g + b

    h1 = jnp.maximum(bn(conv(x_cl, params["w1"]), params["g1"], params["b1"]), 0.0)
    y2 = bn(conv(h1, params["w2"]), params["g2"], params["b2"]) + x_cl
    out = jnp.maximum(y2, 0.0)
    return jnp.transpose(out, (0, 4, 1, 2, 3))


# -------------------------------------- main --------------------------------------- #
if __name__ == "__main__":
    key = jax.random.PRNGKey(0)
    k_x, k_w1, k_w2, k_g1, k_b1, k_g2, k_b2 = jax.random.split(key, 7)

    N, C, D, H, W = 2, 4, 8, 8, 8           # in_channels = out_channels = 4
    x = jax.random.normal(k_x, (N, C, D, H, W), dtype=jnp.float32)

    params = {
        "w1": 0.1 * jax.random.normal(k_w1, (C, C, 3, 3, 3), dtype=jnp.float32),
        "w2": 0.1 * jax.random.normal(k_w2, (C, C, 3, 3, 3), dtype=jnp.float32),
        "g1": 1.0 + 0.1 * jax.random.normal(k_g1, (C,), dtype=jnp.float32),
        "b1": 0.1 * jax.random.normal(k_b1, (C,), dtype=jnp.float32),
        "g2": 1.0 + 0.1 * jax.random.normal(k_g2, (C,), dtype=jnp.float32),
        "b2": 0.1 * jax.random.normal(k_b2, (C,), dtype=jnp.float32),
    }

    out = jax.block_until_ready(jax.jit(residual_block3d_forward)(x, params))
    ref = jax.block_until_ready(_ref_forward(x, params))

    assert out.shape == (N, C, D, H, W)
    # bf16 MXU inputs with f32 accumulation -> compare vs the f32 reference at a
    # bf16-appropriate tolerance (observed error is well below this).
    max_err = float(jnp.max(jnp.abs(out - ref)))
    assert jnp.allclose(out, ref, atol=3e-2, rtol=3e-2), max_err

    print("KERNEL_OK")
</pallas_src>

<mosaic_0001>
module attributes {stable_mosaic.version = 11 : i64} {
  func.func @_conv_stats_kernel(%arg0: i32, %arg1: i32, %arg2: memref<1x1x10x10x4xbf16, #tpu.memory_space<vmem>>, %arg3: memref<1x1x10x10x4xbf16, #tpu.memory_space<vmem>>, %arg4: memref<1x1x10x10x4xbf16, #tpu.memory_space<vmem>>, %arg5: memref<108x4xbf16, #tpu.memory_space<vmem>>, %arg6: memref<1x1x8x8x4xf32, #tpu.memory_space<vmem>>, %arg7: memref<1x1x2x4xf32, #tpu.memory_space<vmem>>, %arg8: memref<64x108xf32, #tpu.memory_space<vmem>>) attributes {dimension_semantics = [#tpu.dimension_semantics<parallel>, #tpu.dimension_semantics<parallel>], iteration_bounds = array<i64: 2, 8>, scalar_prefetch = 0 : i64, scratch_operands = 1 : i64, tpu.core_type = #tpu.core_type<tc>, window_params = [{transform_indices = @transform_0, window_bounds = array<i64: 1, 1, 10, 10, 4>}, {transform_indices = @transform_1, window_bounds = array<i64: 1, 1, 10, 10, 4>}, {transform_indices = @transform_2, window_bounds = array<i64: 1, 1, 10, 10, 4>}, {pipeline_mode = #tpu.pipeline_mode<synchronous>, transform_indices = @transform_3, window_bounds = array<i64: 108, 4>}, {transform_indices = @transform_4, window_bounds = array<i64: 1, 1, 8, 8, 4>}, {transform_indices = @transform_5, window_bounds = array<i64: 1, 1, 2, 4>}]} {
    %c0 = arith.constant 0 : index
    %c0_0 = arith.constant 0 : index
    %c0_1 = arith.constant 0 : index
    %c0_2 = arith.constant 0 : index
    %c0_3 = arith.constant 0 : index
    %0 = vector.load %arg2[%c0, %c0_0, %c0_1, %c0_2, %c0_3] : memref<1x1x10x10x4xbf16, #tpu.memory_space<vmem>>, vector<1x1x10x10x4xbf16>
    %1 = vector.shape_cast %0 : vector<1x1x10x10x4xbf16> to vector<10x10x4xbf16>
    %2 = arith.extf %1 : vector<10x10x4xbf16> to vector<10x10x4xf32>
    %3 = vector.extract_strided_slice %2 {offsets = [0, 0, 0], sizes = [8, 8, 4], strides = [1, 1, 1]} : vector<10x10x4xf32> to vector<8x8x4xf32>
    %4 = vector.shape_cast %3 : vector<8x8x4xf32> to vector<64x4xf32>
    %c0_4 = arith.constant 0 : index
    %c0_5 = arith.constant 0 : index
    %5 = vector.load %arg8[%c0_4, %c0_5] : memref<64x108xf32, #tpu.memory_space<vmem>>, vector<64x4xf32>
    tpu.vector_store %arg8[%c0_4, %c0_5], %4 {strides = array<i32>} : memref<64x108xf32, #tpu.memory_space<vmem>>, vector<64x4xf32>,
    %6 = vector.extract_strided_slice %2 {offsets = [0, 1, 0], sizes = [8, 8, 4], strides = [1, 1, 1]} : vector<10x10x4xf32> to vector<8x8x4xf32>
    %7 = vector.shape_cast %6 : vector<8x8x4xf32> to vector<64x4xf32>
    %c0_6 = arith.constant 0 : index
    %c4 = arith.constant 4 : index
    %8 = vector.load %arg8[%c0_6, %c4] : memref<64x108xf32, #tpu.memory_space<vmem>>, vector<64x4xf32>
    tpu.vector_store %arg8[%c0_6, %c4], %7 {strides = array<i32>} : memref<64x108xf32, #tpu.memory_space<vmem>>, vector<64x4xf32>,
    %9 = vector.extract_strided_slice %2 {offsets = [0, 2, 0], sizes = [8, 8, 4], strides = [1, 1, 1]} : vector<10x10x4xf32> to vector<8x8x4xf32>
    %10 = vector.shape_cast %9 : vector<8x8x4xf32> to vector<64x4xf32>
    %c0_7 = arith.constant 0 : index
    %c8 = arith.constant 8 : index
    %11 = vector.load %arg8[%c0_7, %c8] : memref<64x108xf32, #tpu.memory_space<vmem>>, vector<64x4xf32>
    tpu.vector_store %arg8[%c0_7, %c8], %10 {strides = array<i32>} : memref<64x108xf32, #tpu.memory_space<vmem>>, vector<64x4xf32>,
    %12 = vector.extract_strided_slice %2 {offsets = [1, 0, 0], sizes = [8, 8, 4], strides = [1, 1, 1]} : vector<10x10x4xf32> to vector<8x8x4xf32>
    %13 = vector.shape_cast %12 : vector<8x8x4xf32> to vector<64x4xf32>
    %c0_8 = arith.constant 0 : index
    %c12 = arith.constant 12 : index
    %14 = vector.load %arg8[%c0_8, %c12] : memref<64x108xf32, #tpu.memory_space<vmem>>, vector<64x4xf32>
    tpu.vector_store %arg8[%c0_8, %c12], %13 {strides = array<i32>} : memref<64x108xf32, #tpu.memory_space<vmem>>, vector<64x4xf32>,
    %15 = vector.extract_strided_slice %2 {offsets = [1, 1, 0], sizes = [8, 8, 4], strides = [1, 1, 1]} : vector<10x10x4xf32> to vector<8x8x4xf32>
    %16 = vector.shape_cast %15 : vector<8x8x4xf32> to vector<64x4xf32>
    %c0_9 = arith.constant 0 : index
    %c16 = arith.constant 16 : index
    %17 = vector.load %arg8[%c0_9, %c16] : memref<64x108xf32, #tpu.memory_space<vmem>>, vector<64x4xf32>
    tpu.vector_store %arg8[%c0_9, %c16], %16 {strides = array<i32>} : memref<64x108xf32, #tpu.memory_space<vmem>>, vector<64x4xf32>,
    %18 = vector.extract_strided_slice %2 {offsets = [1, 2, 0], sizes = [8, 8, 4], strides = [1, 1, 1]} : vector<10x10x4xf32> to vector<8x8x4xf32>
    %19 = vector.shape_cast %18 : vector<8x8x4xf32> to vector<64x4xf32>
    %c0_10 = arith.constant 0 : index
    %c20 = arith.constant 20 : index
    %20 = vector.load %arg8[%c0_10, %c20] : memref<64x108xf32, #tpu.memory_space<vmem>>, vector<64x4xf32>
    tpu.vector_store %arg8[%c0_10, %c20], %19 {strides = array<i32>} : memref<64x108xf32, #tpu.memory_space<vmem>>, vector<64x4xf32>,
    %21 = vector.extract_strided_slice %2 {offsets = [2, 0, 0], sizes = [8, 8, 4], strides = [1, 1, 1]} : vector<10x10x4xf32> to vector<8x8x4xf32>
    %22 = vector.shape_cast %21 : vector<8x8x4xf32> to vector<64x4xf32>
    %c0_11 = arith.constant 0 : index
    %c24 = arith.constant 24 : index
    %23 = vector.load %arg8[%c0_11, %c24] : memref<64x108xf32, #tpu.memory_space<vmem>>, vector<64x4xf32>
    tpu.vector_store %arg8[%c0_11, %c24], %22 {strides = array<i32>} : memref<64x108xf32, #tpu.memory_space<vmem>>, vector<64x4xf32>,
    %24 = vector.extract_strided_slice %2 {offsets = [2, 1, 0], sizes = [8, 8, 4], strides = [1, 1, 1]} : vector<10x10x4xf32> to vector<8x8x4xf32>
    %25 = vector.shape_cast %24 : vector<8x8x4xf32> to vector<64x4xf32>
    %c0_12 = arith.constant 0 : index
    %c28 = arith.constant 28 : index
    %26 = vector.load %arg8[%c0_12, %c28] : memref<64x108xf32, #tpu.memory_space<vmem>>, vector<64x4xf32>
    tpu.vector_store %arg8[%c0_12, %c28], %25 {strides = array<i32>} : memref<64x108xf32, #tpu.memory_space<vmem>>, vector<64x4xf32>,
    %27 = vector.extract_strided_slice %2 {offsets = [2, 2, 0], sizes = [8, 8, 4], strides = [1, 1, 1]} : vector<10x10x4xf32> to vector<8x8x4xf32>
    %28 = vector.shape_cast %27 : vector<8x8x4xf32> to vector<64x4xf32>
    %c0_13 = arith.constant 0 : index
    %c32 = arith.constant 32 : index
    %29 = vector.load %arg8[%c0_13, %c32] : memref<64x108xf32, #tpu.memory_space<vmem>>, vector<64x4xf32>
    tpu.vector_store %arg8[%c0_13, %c32], %28 {strides = array<i32>} : memref<64x108xf32, #tpu.memory_space<vmem>>, vector<64x4xf32>,
    %c0_14 = arith.constant 0 : index
    %c0_15 = arith.constant 0 : index
    %c0_16 = arith.constant 0 : index
    %c0_17 = arith.constant 0 : index
    %c0_18 = arith.constant 0 : index
    %30 = vector.load %arg3[%c0_14, %c0_15, %c0_16, %c0_17, %c0_18] : memref<1x1x10x10x4xbf16, #tpu.memory_space<vmem>>, vector<1x1x10x10x4xbf16>
    %31 = vector.shape_cast %30 : vector<1x1x10x10x4xbf16> to vector<10x10x4xbf16>
    %32 = arith.extf %31 : vector<10x10x4xbf16> to vector<10x10x4xf32>
    %33 = vector.extract_strided_slice %32 {offsets = [0, 0, 0], sizes = [8, 8, 4], strides = [1, 1, 1]} : vector<10x10x4xf32> to vector<8x8x4xf32>
    %34 = vector.shape_cast %33 : vector<8x8x4xf32> to vector<64x4xf32>
    %c0_19 = arith.constant 0 : index
    %c36 = arith.constant 36 : index
    %35 = vector.load %arg8[%c0_19, %c36] : memref<64x108xf32, #tpu.memory_space<vmem>>, vector<64x4xf32>
    tpu.vector_store %arg8[%c0_19, %c36], %34 {strides = array<i32>} : memref<64x108xf32, #tpu.memory_space<vmem>>, vector<64x4xf32>,
    %36 = vector.extract_strided_slice %32 {offsets = [0, 1, 0], sizes = [8, 8, 4], strides = [1, 1, 1]} : vector<10x10x4xf32> to vector<8x8x4xf32>
    %37 = vector.shape_cast %36 : vector<8x8x4xf32> to vector<64x4xf32>
    %c0_20 = arith.constant 0 : index
    %c40 = arith.constant 40 : index
    %38 = vector.load %arg8[%c0_20, %c40] : memref<64x108xf32, #tpu.memory_space<vmem>>, vector<64x4xf32>
    tpu.vector_store %arg8[%c0_20, %c40], %37 {strides = array<i32>} : memref<64x108xf32, #tpu.memory_space<vmem>>, vector<64x4xf32>,
    %39 = vector.extract_strided_slice %32 {offsets = [0, 2, 0], sizes = [8, 8, 4], strides = [1, 1, 1]} : vector<10x10x4xf32> to vector<8x8x4xf32>
    %40 = vector.shape_cast %39 : vector<8x8x4xf32> to vector<64x4xf32>
    %c0_21 = arith.constant 0 : index
    %c44 = arith.constant 44 : index
    %41 = vector.load %arg8[%c0_21, %c44] : memref<64x108xf32, #tpu.memory_space<vmem>>, vector<64x4xf32>
    tpu.vector_store %arg8[%c0_21, %c44], %40 {strides = array<i32>} : memref<64x108xf32, #tpu.memory_space<vmem>>, vector<64x4xf32>,
    %42 = vector.extract_strided_slice %32 {offsets = [1, 0, 0], sizes = [8, 8, 4], strides = [1, 1, 1]} : vector<10x10x4xf32> to vector<8x8x4xf32>
    %43 = vector.shape_cast %42 : vector<8x8x4xf32> to vector<64x4xf32>
    %c0_22 = arith.constant 0 : index
    %c48 = arith.constant 48 : index
    %44 = vector.load %arg8[%c0_22, %c48] : memref<64x108xf32, #tpu.memory_space<vmem>>, vector<64x4xf32>
    tpu.vector_store %arg8[%c0_22, %c48], %43 {strides = array<i32>} : memref<64x108xf32, #tpu.memory_space<vmem>>, vector<64x4xf32>,
    %45 = vector.extract_strided_slice %32 {offsets = [1, 1, 0], sizes = [8, 8, 4], strides = [1, 1, 1]} : vector<10x10x4xf32> to vector<8x8x4xf32>
    %46 = vector.shape_cast %45 : vector<8x8x4xf32> to vector<64x4xf32>
    %c0_23 = arith.constant 0 : index
    %c52 = arith.constant 52 : index
    %47 = vector.load %arg8[%c0_23, %c52] : memref<64x108xf32, #tpu.memory_space<vmem>>, vector<64x4xf32>
    tpu.vector_store %arg8[%c0_23, %c52], %46 {strides = array<i32>} : memref<64x108xf32, #tpu.memory_space<vmem>>, vector<64x4xf32>,
    %48 = vector.extract_strided_slice %32 {offsets = [1, 2, 0], sizes = [8, 8, 4], strides = [1, 1, 1]} : vector<10x10x4xf32> to vector<8x8x4xf32>
    %49 = vector.shape_cast %48 : vector<8x8x4xf32> to vector<64x4xf32>
    %c0_24 = arith.constant 0 : index
    %c56 = arith.constant 56 : index
    %50 = vector.load %arg8[%c0_24, %c56] : memref<64x108xf32, #tpu.memory_space<vmem>>, vector<64x4xf32>
    tpu.vector_store %arg8[%c0_24, %c56], %49 {strides = array<i32>} : memref<64x108xf32, #tpu.memory_space<vmem>>, vector<64x4xf32>,
    %51 = vector.extract_strided_slice %32 {offsets = [2, 0, 0], sizes = [8, 8, 4], strides = [1, 1, 1]} : vector<10x10x4xf32> to vector<8x8x4xf32>
    %52 = vector.shape_cast %51 : vector<8x8x4xf32> to vector<64x4xf32>
    %c0_25 = arith.constant 0 : index
    %c60 = arith.constant 60 : index
    %53 = vector.load %arg8[%c0_25, %c60] : memref<64x108xf32, #tpu.memory_space<vmem>>, vector<64x4xf32>
    tpu.vector_store %arg8[%c0_25, %c60], %52 {strides = array<i32>} : memref<64x108xf32, #tpu.memory_space<vmem>>, vector<64x4xf32>,
    %54 = vector.extract_strided_slice %32 {offsets = [2, 1, 0], sizes = [8, 8, 4], strides = [1, 1, 1]} : vector<10x10x4xf32> to vector<8x8x4xf32>
    %55 = vector.shape_cast %54 : vector<8x8x4xf32> to vector<64x4xf32>
    %c0_26 = arith.constant 0 : index
    %c64 = arith.constant 64 : index
    %56 = vector.load %arg8[%c0_26, %c64] : memref<64x108xf32, #tpu.memory_space<vmem>>, vector<64x4xf32>
    tpu.vector_store %arg8[%c0_26, %c64], %55 {strides = array<i32>} : memref<64x108xf32, #tpu.memory_space<vmem>>, vector<64x4xf32>,
    %57 = vector.extract_strided_slice %32 {offsets = [2, 2, 0], sizes = [8, 8, 4], strides = [1, 1, 1]} : vector<10x10x4xf32> to vector<8x8x4xf32>
    %58 = vector.shape_cast %57 : vector<8x8x4xf32> to vector<64x4xf32>
    %c0_27 = arith.constant 0 : index
    %c68 = arith.constant 68 : index
    %59 = vector.load %arg8[%c0_27, %c68] : memref<64x108xf32, #tpu.memory_space<vmem>>, vector<64x4xf32>
    tpu.vector_store %arg8[%c0_27, %c68], %58 {strides = array<i32>} : memref<64x108xf32, #tpu.memory_space<vmem>>, vector<64x4xf32>,
    %c0_28 = arith.constant 0 : index
    %c0_29 = arith.constant 0 : index
    %c0_30 = arith.constant 0 : index
    %c0_31 = arith.constant 0 : index
    %c0_32 = arith.constant 0 : index
    %60 = vector.load %arg4[%c0_28, %c0_29, %c0_30, %c0_31, %c0_32] : memref<1x1x10x10x4xbf16, #tpu.memory_space<vmem>>, vector<1x1x10x10x4xbf16>
    %61 = vector.shape_cast %60 : vector<1x1x10x10x4xbf16> to vector<10x10x4xbf16>
    %62 = arith.extf %61 : vector<10x10x4xbf16> to vector<10x10x4xf32>
    %63 = vector.extract_strided_slice %62 {offsets = [0, 0, 0], sizes = [8, 8, 4], strides = [1, 1, 1]} : vector<10x10x4xf32> to vector<8x8x4xf32>
    %64 = vector.shape_cast %63 : vector<8x8x4xf32> to vector<64x4xf32>
    %c0_33 = arith.constant 0 : index
    %c72 = arith.constant 72 : index
    %65 = vector.load %arg8[%c0_33, %c72] : memref<64x108xf32, #tpu.memory_space<vmem>>, vector<64x4xf32>
    tpu.vector_store %arg8[%c0_33, %c72], %64 {strides = array<i32>} : memref<64x108xf32, #tpu.memory_space<vmem>>, vector<64x4xf32>,
    %66 = vector.extract_strided_slice %62 {offsets = [0, 1, 0], sizes = [8, 8, 4], strides = [1, 1, 1]} : vector<10x10x4xf32> to vector<8x8x4xf32>
    %67 = vector.shape_cast %66 : vector<8x8x4xf32> to vector<64x4xf32>
    %c0_34 = arith.constant 0 : index
    %c76 = arith.constant 76 : index
    %68 = vector.load %arg8[%c0_34, %c76] : memref<64x108xf32, #tpu.memory_space<vmem>>, vector<64x4xf32>
    tpu.vector_store %arg8[%c0_34, %c76], %67 {strides = array<i32>} : memref<64x108xf32, #tpu.memory_space<vmem>>, vector<64x4xf32>,
    %69 = vector.extract_strided_slice %62 {offsets = [0, 2, 0], sizes = [8, 8, 4], strides = [1, 1, 1]} : vector<10x10x4xf32> to vector<8x8x4xf32>
    %70 = vector.shape_cast %69 : vector<8x8x4xf32> to vector<64x4xf32>
    %c0_35 = arith.constant 0 : index
    %c80 = arith.constant 80 : index
    %71 = vector.load %arg8[%c0_35, %c80] : memref<64x108xf32, #tpu.memory_space<vmem>>, vector<64x4xf32>
    tpu.vector_store %arg8[%c0_35, %c80], %70 {strides = array<i32>} : memref<64x108xf32, #tpu.memory_space<vmem>>, vector<64x4xf32>,
    %72 = vector.extract_strided_slice %62 {offsets = [1, 0, 0], sizes = [8, 8, 4], strides = [1, 1, 1]} : vector<10x10x4xf32> to vector<8x8x4xf32>
    %73 = vector.shape_cast %72 : vector<8x8x4xf32> to vector<64x4xf32>
    %c0_36 = arith.constant 0 : index
    %c84 = arith.constant 84 : index
    %74 = vector.load %arg8[%c0_36, %c84] : memref<64x108xf32, #tpu.memory_space<vmem>>, vector<64x4xf32>
    tpu.vector_store %arg8[%c0_36, %c84], %73 {strides = array<i32>} : memref<64x108xf32, #tpu.memory_space<vmem>>, vector<64x4xf32>,
    %75 = vector.extract_strided_slice %62 {offsets = [1, 1, 0], sizes = [8, 8, 4], strides = [1, 1, 1]} : vector<10x10x4xf32> to vector<8x8x4xf32>
    %76 = vector.shape_cast %75 : vector<8x8x4xf32> to vector<64x4xf32>
    %c0_37 = arith.constant 0 : index
    %c88 = arith.constant 88 : index
    %77 = vector.load %arg8[%c0_37, %c88] : memref<64x108xf32, #tpu.memory_space<vmem>>, vector<64x4xf32>
    tpu.vector_store %arg8[%c0_37, %c88], %76 {strides = array<i32>} : memref<64x108xf32, #tpu.memory_space<vmem>>, vector<64x4xf32>,
    %78 = vector.extract_strided_slice %62 {offsets = [1, 2, 0], sizes = [8, 8, 4], strides = [1, 1, 1]} : vector<10x10x4xf32> to vector<8x8x4xf32>
    %79 = vector.shape_cast %78 : vector<8x8x4xf32> to vector<64x4xf32>
    %c0_38 = arith.constant 0 : index
    %c92 = arith.constant 92 : index
    %80 = vector.load %arg8[%c0_38, %c92] : memref<64x108xf32, #tpu.memory_space<vmem>>, vector<64x4xf32>
    tpu.vector_store %arg8[%c0_38, %c92], %79 {strides = array<i32>} : memref<64x108xf32, #tpu.memory_space<vmem>>, vector<64x4xf32>,
    %81 = vector.extract_strided_slice %62 {offsets = [2, 0, 0], sizes = [8, 8, 4], strides = [1, 1, 1]} : vector<10x10x4xf32> to vector<8x8x4xf32>
    %82 = vector.shape_cast %81 : vector<8x8x4xf32> to vector<64x4xf32>
    %c0_39 = arith.constant 0 : index
    %c96 = arith.constant 96 : index
    %83 = vector.load %arg8[%c0_39, %c96] : memref<64x108xf32, #tpu.memory_space<vmem>>, vector<64x4xf32>
    tpu.vector_store %arg8[%c0_39, %c96], %82 {strides = array<i32>} : memref<64x108xf32, #tpu.memory_space<vmem>>, vector<64x4xf32>,
    %84 = vector.extract_strided_slice %62 {offsets = [2, 1, 0], sizes = [8, 8, 4], strides = [1, 1, 1]} : vector<10x10x4xf32> to vector<8x8x4xf32>
    %85 = vector.shape_cast %84 : vector<8x8x4xf32> to vector<64x4xf32>
    %c0_40 = arith.constant 0 : index
    %c100 = arith.constant 100 : index
    %86 = vector.load %arg8[%c0_40, %c100] : memref<64x108xf32, #tpu.memory_space<vmem>>, vector<64x4xf32>
    tpu.vector_store %arg8[%c0_40, %c100], %85 {strides = array<i32>} : memref<64x108xf32, #tpu.memory_space<vmem>>, vector<64x4xf32>,
    %87 = vector.extract_strided_slice %62 {offsets = [2, 2, 0], sizes = [8, 8, 4], strides = [1, 1, 1]} : vector<10x10x4xf32> to vector<8x8x4xf32>
    %88 = vector.shape_cast %87 : vector<8x8x4xf32> to vector<64x4xf32>
    %c0_41 = arith.constant 0 : index
    %c104 = arith.constant 104 : index
    %89 = vector.load %arg8[%c0_41, %c104] : memref<64x108xf32, #tpu.memory_space<vmem>>, vector<64x4xf32>
    tpu.vector_store %arg8[%c0_41, %c104], %88 {strides = array<i32>} : memref<64x108xf32, #tpu.memory_space<vmem>>, vector<64x4xf32>,
    %c0_42 = arith.constant 0 : index
    %c0_43 = arith.constant 0 : index
    %90 = vector.load %arg8[%c0_42, %c0_43] : memref<64x108xf32, #tpu.memory_space<vmem>>, vector<64x108xf32>
    %91 = arith.truncf %90 : vector<64x108xf32> to vector<64x108xbf16>
    %c0_44 = arith.constant 0 : index
    %c0_45 = arith.constant 0 : index
    %92 = vector.load %arg5[%c0_44, %c0_45] : memref<108x4xbf16, #tpu.memory_space<vmem>>, vector<108x4xbf16>
    %cst = arith.constant dense<0.000000e+00> : vector<64x4xf32>
    %93 = tpu.matmul %91, %92, %cst {dimension_numbers = #tpu.dot_dimension_numbers<[1], [0], [0], [1], [0, 0, 1, 1], [], []>} : vector<64x108xbf16>, vector<108x4xbf16>, vector<64x4xf32> -> vector<64x4xf32>
    %94 = vector.shape_cast %93 : vector<64x4xf32> to vector<8x8x4xf32>
    %c0_46 = arith.constant 0 : index
    %c0_47 = arith.constant 0 : index
    %c0_48 = arith.constant 0 : index
    %c0_49 = arith.constant 0 : index
    %c0_50 = arith.constant 0 : index
    %95 = vector.load %arg6[%c0_46, %c0_47, %c0_48, %c0_49, %c0_50] : memref<1x1x8x8x4xf32, #tpu.memory_space<vmem>>, vector<1x1x8x8x4xf32>
    %96 = vector.shape_cast %95 : vector<1x1x8x8x4xf32> to vector<8x8x4xf32>
    %97 = vector.shape_cast %94 : vector<8x8x4xf32> to vector<1x1x8x8x4xf32>
    tpu.vector_store %arg6[%c0_46, %c0_47, %c0_48, %c0_49, %c0_50], %97 {strides = array<i32>} : memref<1x1x8x8x4xf32, #tpu.memory_space<vmem>>, vector<1x1x8x8x4xf32>,
    %cst_51 = arith.constant dense<0.000000e+00> : vector<4xf32>
    %98 = vector.multi_reduction <add>, %93, %cst_51 [0] : vector<64x4xf32> to vector<4xf32>
    %99 = vector.shape_cast %98 : vector<4xf32> to vector<1x4xf32>
    %c0_52 = arith.constant 0 : index
    %c0_53 = arith.constant 0 : index
    %c0_54 = arith.constant 0 : index
    %c0_55 = arith.constant 0 : index
    %100 = vector.load %arg7[%c0_52, %c0_53, %c0_54, %c0_55] : memref<1x1x2x4xf32, #tpu.memory_space<vmem>>, vector<1x1x1x4xf32>
    %101 = vector.shape_cast %100 : vector<1x1x1x4xf32> to vector<1x4xf32>
    %102 = vector.shape_cast %99 : vector<1x4xf32> to vector<1x1x1x4xf32>
    tpu.vector_store %arg7[%c0_52, %c0_53, %c0_54, %c0_55], %102 {strides = array<i32>} : memref<1x1x2x4xf32, #tpu.memory_space<vmem>>, vector<1x1x1x4xf32>,
    %103 = arith.mulf %93, %93 : vector<64x4xf32>
    %cst_56 = arith.constant dense<0.000000e+00> : vector<4xf32>
    %104 = vector.multi_reduction <add>, %103, %cst_56 [0] : vector<64x4xf32> to vector<4xf32>
    %105 = vector.shape_cast %104 : vector<4xf32> to vector<1x4xf32>
    %c0_57 = arith.constant 0 : index
    %c0_58 = arith.constant 0 : index
    %c1 = arith.constant 1 : index
    %c0_59 = arith.constant 0 : index
    %106 = vector.load %arg7[%c0_57, %c0_58, %c1, %c0_59] : memref<1x1x2x4xf32, #tpu.memory_space<vmem>>, vector<1x1x1x4xf32>
    %107 = vector.shape_cast %106 : vector<1x1x1x4xf32> to vector<1x4xf32>
    %108 = vector.shape_cast %105 : vector<1x4xf32> to vector<1x1x1x4xf32>
    tpu.vector_store %arg7[%c0_57, %c0_58, %c1, %c0_59], %108 {strides = array<i32>} : memref<1x1x2x4xf32, #tpu.memory_space<vmem>>, vector<1x1x1x4xf32>,
    return
  }
  func.func @transform_0(%arg0: i32, %arg1: i32) -> (i32, i32, i32, i32, i32) {
    %c0_i32 = arith.constant 0 : i32
    %0 = arith.addi %arg1, %c0_i32 : i32
    %c0_i32_0 = arith.constant 0 : i32
    %c0_i32_1 = arith.constant 0 : i32
    %c0_i32_2 = arith.constant 0 : i32
    %c0_i32_3 = arith.constant 0 : i32
    return %arg0, %0, %c0_i32_0, %c0_i32_1, %c0_i32_2 : i32, i32, i32, i32, i32
  }
  func.func @transform_1(%arg0: i32, %arg1: i32) -> (i32, i32, i32, i32, i32) {
    %c1_i32 = arith.constant 1 : i32
    %0 = arith.addi %arg1, %c1_i32 : i32
    %c0_i32 = arith.constant 0 : i32
    %c0_i32_0 = arith.constant 0 : i32
    %c0_i32_1 = arith.constant 0 : i32
    %c0_i32_2 = arith.constant 0 : i32
    return %arg0, %0, %c0_i32, %c0_i32_0, %c0_i32_1 : i32, i32, i32, i32, i32
  }
  func.func @transform_2(%arg0: i32, %arg1: i32) -> (i32, i32, i32, i32, i32) {
    %c2_i32 = arith.constant 2 : i32
    %0 = arith.addi %arg1, %c2_i32 : i32
    %c0_i32 = arith.constant 0 : i32
    %c0_i32_0 = arith.constant 0 : i32
    %c0_i32_1 = arith.constant 0 : i32
    %c0_i32_2 = arith.constant 0 : i32
    return %arg0, %0, %c0_i32, %c0_i32_0, %c0_i32_1 : i32, i32, i32, i32, i32
  }
  func.func @transform_3(%arg0: i32, %arg1: i32) -> (i32, i32) {
    %c0_i32 = arith.constant 0 : i32
    %c0_i32_0 = arith.constant 0 : i32
    %c0_i32_1 = arith.constant 0 : i32
    return %c0_i32, %c0_i32_0 : i32, i32
  }
  func.func @transform_4(%arg0: i32, %arg1: i32) -> (i32, i32, i32, i32, i32) {
    %c0_i32 = arith.constant 0 : i32
    %c0_i32_0 = arith.constant 0 : i32
    %c0_i32_1 = arith.constant 0 : i32
    %c0_i32_2 = arith.constant 0 : i32
    return %arg0, %arg1, %c0_i32, %c0_i32_0, %c0_i32_1 : i32, i32, i32, i32, i32
  }
  func.func @transform_5(%arg0: i32, %arg1: i32) -> (i32, i32, i32, i32) {
    %c0_i32 = arith.constant 0 : i32
    %c0_i32_0 = arith.constant 0 : i32
    %c0_i32_1 = arith.constant 0 : i32
    return %arg0, %arg1, %c0_i32, %c0_i32_0 : i32, i32, i32, i32
  }
}

module attributes {stable_mosaic.version = 11 : i64} {
  func.func @_bn_act_kernel(%arg0: i32, %arg1: memref<8x512xf32, #tpu.memory_space<vmem>>, %arg2: memref<1x512xf32, #tpu.memory_space<vmem>>, %arg3: memref<1x512xf32, #tpu.memory_space<vmem>>, %arg4: memref<8x512xbf16, #tpu.memory_space<vmem>>) attributes {dimension_semantics = [#tpu.dimension_semantics<parallel>], iteration_bounds = array<i64: 1>, scalar_prefetch = 0 : i64, scratch_operands = 0 : i64, tpu.core_type = #tpu.core_type<tc>, window_params = [{transform_indices = @transform_0, window_bounds = array<i64: 8, 512>}, {pipeline_mode = #tpu.pipeline_mode<synchronous>, transform_indices = @transform_1, window_bounds = array<i64: 1, 512>}, {pipeline_mode = #tpu.pipeline_mode<synchronous>, transform_indices = @transform_2, window_bounds = array<i64: 1, 512>}, {transform_indices = @transform_3, window_bounds = array<i64: 8, 512>}]} {
    %c0 = arith.constant 0 : index
    %c0_0 = arith.constant 0 : index
    %0 = vector.load %arg1[%c0, %c0_0] : memref<8x512xf32, #tpu.memory_space<vmem>>, vector<8x512xf32>
    %c0_1 = arith.constant 0 : index
    %c0_2 = arith.constant 0 : index
    %1 = vector.load %arg2[%c0_1, %c0_2] : memref<1x512xf32, #tpu.memory_space<vmem>>, vector<1x512xf32>
    %2 = vector.broadcast %1 : vector<1x512xf32> to vector<8x512xf32>
    %3 = arith.mulf %0, %2 : vector<8x512xf32>
    %c0_3 = arith.constant 0 : index
    %c0_4 = arith.constant 0 : index
    %4 = vector.load %arg3[%c0_3, %c0_4] : memref<1x512xf32, #tpu.memory_space<vmem>>, vector<1x512xf32>
    %5 = vector.broadcast %4 : vector<1x512xf32> to vector<8x512xf32>
    %6 = arith.addf %3, %5 : vector<8x512xf32>
    %cst = arith.constant 0.000000e+00 : f32
    %7 = vector.broadcast %cst : f32 to vector<8x512xf32>
    %8 = arith.maximumf %6, %7 : vector<8x512xf32>
    %9 = arith.truncf %8 : vector<8x512xf32> to vector<8x512xbf16>
    %c0_5 = arith.constant 0 : index
    %c0_6 = arith.constant 0 : index
    %10 = vector.load %arg4[%c0_5, %c0_6] : memref<8x512xbf16, #tpu.memory_space<vmem>>, vector<8x512xbf16>
    tpu.vector_store %arg4[%c0_5, %c0_6], %9 {strides = array<i32>} : memref<8x512xbf16, #tpu.memory_space<vmem>>, vector<8x512xbf16>,
    return
  }
  func.func @transform_0(%arg0: i32) -> (i32, i32) {
    %c0_i32 = arith.constant 0 : i32
    %c0_i32_0 = arith.constant 0 : i32
    return %arg0, %c0_i32 : i32, i32
  }
  func.func @transform_1(%arg0: i32) -> (i32, i32) {
    %c0_i32 = arith.constant 0 : i32
    %c0_i32_0 = arith.constant 0 : i32
    %c0_i32_1 = arith.constant 0 : i32
    return %c0_i32, %c0_i32_0 : i32, i32
  }
  func.func @transform_2(%arg0: i32) -> (i32, i32) {
    %c0_i32 = arith.constant 0 : i32
    %c0_i32_0 = arith.constant 0 : i32
    %c0_i32_1 = arith.constant 0 : i32
    return %c0_i32, %c0_i32_0 : i32, i32
  }
  func.func @transform_3(%arg0: i32) -> (i32, i32) {
    %c0_i32 = arith.constant 0 : i32
    %c0_i32_0 = arith.constant 0 : i32
    return %arg0, %c0_i32 : i32, i32
  }
}

module attributes {stable_mosaic.version = 11 : i64} {
  func.func @_bn_res_act_kernel(%arg0: i32, %arg1: memref<8x512xf32, #tpu.memory_space<vmem>>, %arg2: memref<1x512xf32, #tpu.memory_space<vmem>>, %arg3: memref<1x512xf32, #tpu.memory_space<vmem>>, %arg4: memref<8x512xf32, #tpu.memory_space<vmem>>, %arg5: memref<8x512xf32, #tpu.memory_space<vmem>>) attributes {dimension_semantics = [#tpu.dimension_semantics<parallel>], iteration_bounds = array<i64: 1>, scalar_prefetch = 0 : i64, scratch_operands = 0 : i64, tpu.core_type = #tpu.core_type<tc>, window_params = [{transform_indices = @transform_0, window_bounds = array<i64: 8, 512>}, {pipeline_mode = #tpu.pipeline_mode<synchronous>, transform_indices = @transform_1, window_bounds = array<i64: 1, 512>}, {pipeline_mode = #tpu.pipeline_mode<synchronous>, transform_indices = @transform_2, window_bounds = array<i64: 1, 512>}, {transform_indices = @transform_3, window_bounds = array<i64: 8, 512>}, {transform_indices = @transform_4, window_bounds = array<i64: 8, 512>}]} {
    %c0 = arith.constant 0 : index
    %c0_0 = arith.constant 0 : index
    %0 = vector.load %arg1[%c0, %c0_0] : memref<8x512xf32, #tpu.memory_space<vmem>>, vector<8x512xf32>
    %c0_1 = arith.constant 0 : index
    %c0_2 = arith.constant 0 : index
    %1 = vector.load %arg2[%c0_1, %c0_2] : memref<1x512xf32, #tpu.memory_space<vmem>>, vector<1x512xf32>
    %2 = vector.broadcast %1 : vector<1x512xf32> to vector<8x512xf32>
    %3 = arith.mulf %0, %2 : vector<8x512xf32>
    %c0_3 = arith.constant 0 : index
    %c0_4 = arith.constant 0 : index
    %4 = vector.load %arg3[%c0_3, %c0_4] : memref<1x512xf32, #tpu.memory_space<vmem>>, vector<1x512xf32>
    %5 = vector.broadcast %4 : vector<1x512xf32> to vector<8x512xf32>
    %6 = arith.addf %3, %5 : vector<8x512xf32>
    %c0_5 = arith.constant 0 : index
    %c0_6 = arith.constant 0 : index
    %7 = vector.load %arg4[%c0_5, %c0_6] : memref<8x512xf32, #tpu.memory_space<vmem>>, vector<8x512xf32>
    %8 = arith.addf %6, %7 : vector<8x512xf32>
    %cst = arith.constant 0.000000e+00 : f32
    %9 = vector.broadcast %cst : f32 to vector<8x512xf32>
    %10 = arith.maximumf %8, %9 : vector<8x512xf32>
    %c0_7 = arith.constant 0 : index
    %c0_8 = arith.constant 0 : index
    %11 = vector.load %arg5[%c0_7, %c0_8] : memref<8x512xf32, #tpu.memory_space<vmem>>, vector<8x512xf32>
    tpu.vector_store %arg5[%c0_7, %c0_8], %10 {strides = array<i32>} : memref<8x512xf32, #tpu.memory_space<vmem>>, vector<8x512xf32>,
    return
  }
  func.func @transform_0(%arg0: i32) -> (i32, i32) {
    %c0_i32 = arith.constant 0 : i32
    %c0_i32_0 = arith.constant 0 : i32
    return %arg0, %c0_i32 : i32, i32
  }
  func.func @transform_1(%arg0: i32) -> (i32, i32) {
    %c0_i32 = arith.constant 0 : i32
    %c0_i32_0 = arith.constant 0 : i32
    %c0_i32_1 = arith.constant 0 : i32
    return %c0_i32, %c0_i32_0 : i32, i32
  }
  func.func @transform_2(%arg0: i32) -> (i32, i32) {
    %c0_i32 = arith.constant 0 : i32
    %c0_i32_0 = arith.constant 0 : i32
    %c0_i32_1 = arith.constant 0 : i32
    return %c0_i32, %c0_i32_0 : i32, i32
  }
  func.func @transform_3(%arg0: i32) -> (i32, i32) {
    %c0_i32 = arith.constant 0 : i32
    %c0_i32_0 = arith.constant 0 : i32
    return %arg0, %c0_i32 : i32, i32
  }
  func.func @transform_4(%arg0: i32) -> (i32, i32) {
    %c0_i32 = arith.constant 0 : i32
    %c0_i32_0 = arith.constant 0 : i32
    return %arg0, %c0_i32 : i32, i32
  }
}

</mosaic_0001>

<bundles_post_ra>
// kernel: tile.28
= control target key start
LH: loop header
LB: loop body
LE: loop exit
PB: predicated region body
PF: predicated region fallthrough
CT: control target
= control target key end

     0   :  { %s112_s0 = inlined_call_operand.vmem [shape: f32[4], index: 0, kind: input, shape index: {}]   ;;  %s113_s1 = inlined_call_operand.vmem [shape: f32[128,4], index: 1, kind: output, shape index: {}]  }
   0x1   :  { %v4_v0 = vld [vmem:[%s112_s0] ss:$0 sm:$0xff] }
   0x2   :  { %5 = vst [vmem:[%s113_s1] sm:$0xff] %v4_v0  ;;  %36 = vst [vmem:[%s113_s1 + $0x8] sm:$0xff] %v4_v0 }
   0x3   :  { %37 = vst [vmem:[%s113_s1 + $0x10] sm:$0xff] %v4_v0  ;;  %38 = vst [vmem:[%s113_s1 + $0x18] sm:$0xff] %v4_v0 }
   0x4   :  { %39 = vst [vmem:[%s113_s1 + $0x20] sm:$0xff] %v4_v0  ;;  %40 = vst [vmem:[%s113_s1 + $0x28] sm:$0xff] %v4_v0 }
   0x5   :  { %41 = vst [vmem:[%s113_s1 + $0x30] sm:$0xff] %v4_v0  ;;  %42 = vst [vmem:[%s113_s1 + $0x38] sm:$0xff] %v4_v0 }
   0x6   :  { %43 = vst [vmem:[%s113_s1 + $0x40] sm:$0xff] %v4_v0  ;;  %44 = vst [vmem:[%s113_s1 + $0x48] sm:$0xff] %v4_v0 }
   0x7   :  { %45 = vst [vmem:[%s113_s1 + $0x50] sm:$0xff] %v4_v0  ;;  %46 = vst [vmem:[%s113_s1 + $0x58] sm:$0xff] %v4_v0 }
   0x8   :  { %47 = vst [vmem:[%s113_s1 + $0x60] sm:$0xff] %v4_v0  ;;  %48 = vst [vmem:[%s113_s1 + $0x68] sm:$0xff] %v4_v0 }
   0x9   :  { %49 = vst [vmem:[%s113_s1 + $0x70] sm:$0xff] %v4_v0  ;;  %50 = vst [vmem:[%s113_s1 + $0x78] sm:$0xff] %v4_v0 }

// kernel: tile.29
= control target key start
LH: loop header
LB: loop body
LE: loop exit
PB: predicated region body
PF: predicated region fallthrough
CT: control target
= control target key end

     0   :  { %vm5_vm0 = vcmask 1041409   ;;  %vm9_vm1 = vcmask 1042434   ;;  %vm13_vm2 = vcmask 1043459   ;;  %s761_s30 = smov 124   ;;  %s762_s8 = smov 116   ;;  %vm15_vm3 = vcmask 31744   ;;  %s1295_s0 = inlined_call_operand.vmem [shape: f32[128,4], index: 0, kind: input, shape index: {}]   ;;  %s1296_s1 = inlined_call_operand.vmem [shape: f32[1,512], index: 1, kind: output, shape index: {}]  }
   0x1   :  { %v603_v0 = vld [vmem:[%s1295_s0 + $0x1f] sm:$0x1]   ;;  %v611_v5 = vld [vmem:[%s1295_s0 + $0x1d] sm:$0x1]   ;;  %v607_v11 = vld [vmem:[%s1295_s0 + $0x1e] sm:$0x1]  }
   0x2   :  { %v604_v1 = vld [vmem:[%s1295_s0 + $0x3e] sm:$0x2]   ;;  %v612_v6 = vld [vmem:[%s1295_s0 + $0x3c] sm:$0x2]   ;;  %v608_v14 = vld [vmem:[%s1295_s0 + $0x3d] sm:$0x2]  }
   0x3   :  { %v605_v2 = vld [vmem:[%s1295_s0 + $0x5d] sm:$0x4]   ;;  %v22_v4 = vsel %vm5_vm0, %v604_v1, %v603_v0  ;;  %v613_v7 = vld [vmem:[%s1295_s0 + $0x5b] sm:$0x4]   ;;  %v58_v9 = vsel %vm5_vm0, %v612_v6, %v611_v5  ;;  %v609_v15 = vld [vmem:[%s1295_s0 + $0x5c] sm:$0x4]   ;;  %v40_v18 = vsel %vm5_vm0, %v608_v14, %v607_v11 }
   0x4   :  { %v606_v3 = vld [vmem:[%s1295_s0 + $0x7c] sm:$0x8]   ;;  %v26_v8 = vsel %vm9_vm1, %v605_v2, %v22_v4  ;;  %v614_v10 = vld [vmem:[%s1295_s0 + $0x7a] sm:$0x8]   ;;  %v62_v13 = vsel %vm9_vm1, %v613_v7, %v58_v9  ;;  %v610_v16 = vld [vmem:[%s1295_s0 + $0x7b] sm:$0x8]   ;;  %v44_v22 = vsel %vm9_vm1, %v609_v15, %v40_v18 }
   0x5   :  { %v30_v12 = vsel %vm13_vm2, %v606_v3, %v26_v8  ;;  %v66_v17 = vsel %vm13_vm2, %v614_v10, %v62_v13  ;;  %v615_v19 = vld [vmem:[%s1295_s0 + $0x1c] sm:$0x1]   ;;  %v619_v25 = vld [vmem:[%s1295_s0 + $0x1b] sm:$0x1]   ;;  %v48_v26 = vsel %vm13_vm2, %v610_v16, %v44_v22  ;;  %v623_v33 = vld [vmem:[%s1295_s0 + $0x1a] sm:$0x1]  }
   0x6   :  { %31 = vrot.lane.b32.xlu0 %v30_v12, %s761_s30  ;;  %v616_v20 = vld [vmem:[%s1295_s0 + $0x3b] sm:$0x2]   ;;  %67 = vrot.lane.b32.xlu1 %v66_v17, %s762_s8  ;;  %v620_v28 = vld [vmem:[%s1295_s0 + $0x3a] sm:$0x2]   ;;  %s763_s25 = smov 120   ;;  %s764_s30 = smov 112  }
   0x7   :  { %v617_v21 = vld [vmem:[%s1295_s0 + $0x5a] sm:$0x4]   ;;  %v76_v23 = vsel %vm5_vm0, %v616_v20, %v615_v19  ;;  %v621_v29 = vld [vmem:[%s1295_s0 + $0x59] sm:$0x4]   ;;  %v94_v32 = vsel %vm5_vm0, %v620_v28, %v619_v25  ;;  %v624_v34 = vld [vmem:[%s1295_s0 + $0x39] sm:$0x2]  }
   0x8   :  { %v618_v24 = vld [vmem:[%s1295_s0 + $0x79] sm:$0x8]   ;;  %v80_v27 = vsel %vm9_vm1, %v617_v21, %v76_v23  ;;  %v622_v30 = vld [vmem:[%s1295_s0 + $0x78] sm:$0x8]   ;;  %v625_v35 = vld [vmem:[%s1295_s0 + $0x58] sm:$0x4]   ;;  %v98_v36 = vsel %vm9_vm1, %v621_v29, %v94_v32  ;;  %v112_v37 = vsel %vm5_vm0, %v624_v34, %v623_v33 }
   0x9   :  { %v84_v31 = vsel %vm13_vm2, %v618_v24, %v80_v27  ;;  %v626_v38 = vld [vmem:[%s1295_s0 + $0x77] sm:$0x8]   ;;  %v627_v39 = vld [vmem:[%s1295_s0 + $0x19] sm:$0x1]   ;;  %v102_v40 = vsel %vm13_vm2, %v622_v30, %v98_v36  ;;  %v116_v41 = vsel %vm9_vm1, %v625_v35, %v112_v37  ;;  %v631_v47 = vld [vmem:[%s1295_s0 + $0x18] sm:$0x1]  }
   0xa   :  { %49 = vrot.lane.b32.xlu0 %v48_v26, %s763_s25  ;;  %85 = vrot.lane.b32.xlu1 %v84_v31, %s764_s30  ;;  %v628_v42 = vld [vmem:[%s1295_s0 + $0x38] sm:$0x2]   ;;  %v120_v45 = vsel %vm13_vm2, %v626_v38, %v116_v41  ;;  %v632_v48 = vld [vmem:[%s1295_s0 + $0x37] sm:$0x2]   ;;  %s765_s18 = smov 108   ;;  %s766_s23 = smov 104  }
   0xb   :  { %v629_v43 = vld [vmem:[%s1295_s0 + $0x57] sm:$0x4]   ;;  %v130_v46 = vsel %vm5_vm0, %v628_v42, %v627_v39  ;;  %v633_v49 = vld [vmem:[%s1295_s0 + $0x56] sm:$0x4]   ;;  %v148_v51 = vsel %vm5_vm0, %v632_v48, %v631_v47  ;;  %v635_v53 = vld [vmem:[%s1295_s0 + $0x17] sm:$0x1]  }
   0xc   :  { %v630_v44 = vld [vmem:[%s1295_s0 + $0x76] sm:$0x8]   ;;  %v134_v50 = vsel %vm9_vm1, %v629_v43, %v130_v46  ;;  %v634_v52 = vld [vmem:[%s1295_s0 + $0x75] sm:$0x8]   ;;  %v152_v54 = vsel %vm9_vm1, %v633_v49, %v148_v51  ;;  %v636_v55 = vld [vmem:[%s1295_s0 + $0x36] sm:$0x2]  }
   0xd   :  { %v637_v56 = vld [vmem:[%s1295_s0 + $0x55] sm:$0x4]   ;;  %v138_v57 = vsel %vm13_vm2, %v630_v44, %v134_v50  ;;  %v166_v58 = vsel %vm5_vm0, %v636_v55, %v635_v53  ;;  %v639_v59 = vld [vmem:[%s1295_s0 + $0x16] sm:$0x1]   ;;  %v156_v62 = vsel %vm13_vm2, %v634_v52, %v152_v54  ;;  %v643_v2 = vld [vmem:[%s1295_s0 + $0x15] sm:$0x1]  }
   0xe   :  { %103 = vrot.lane.b32.xlu0 %v102_v40, %s765_s18  ;;  %121 = vrot.lane.b32.xlu1 %v120_v45, %s766_s23  ;;  %v640_v60 = vld [vmem:[%s1295_s0 + $0x35] sm:$0x2]   ;;  %v170_v63 = vsel %vm9_vm1, %v637_v56, %v166_v58  ;;  %v638_v0 = vld [vmem:[%s1295_s0 + $0x74] sm:$0x8]   ;;  %s767_s11 = smov 100   ;;  %s768_s18 = smov 96  }
   0xf   :  { %v641_v61 = vld [vmem:[%s1295_s0 + $0x54] sm:$0x4]   ;;  %v184_v1 = vsel %vm5_vm0, %v640_v60, %v639_v59  ;;  %v644_v5 = vld [vmem:[%s1295_s0 + $0x34] sm:$0x2]   ;;  %v647_v8 = vld [vmem:[%s1295_s0 + $0x14] sm:$0x1]   ;;  %v174_v11 = vsel %vm13_vm2, %v638_v0, %v170_v63 }
  0x10   :  { %v188_v3 = vsel %vm9_vm1, %v641_v61, %v184_v1  ;;  %v642_v4 = vld [vmem:[%s1295_s0 + $0x73] sm:$0x8]   ;;  %v645_v6 = vld [vmem:[%s1295_s0 + $0x53] sm:$0x4]   ;;  %v202_v7 = vsel %vm5_vm0, %v644_v5, %v643_v2  ;;  %v648_v9 = vld [vmem:[%s1295_s0 + $0x33] sm:$0x2]  }
  0x11   :  { %v649_v10 = vld [vmem:[%s1295_s0 + $0x52] sm:$0x4]   ;;  %v220_v12 = vsel %vm5_vm0, %v648_v9, %v647_v8  ;;  %v651_v13 = vld [vmem:[%s1295_s0 + $0x13] sm:$0x1]   ;;  %v192_v14 = vsel %vm13_vm2, %v642_v4, %v188_v3  ;;  %v206_v15 = vsel %vm9_vm1, %v645_v6, %v202_v7  ;;  %v646_v16 = vld [vmem:[%s1295_s0 + $0x72] sm:$0x8]  }
  0x12   :  { %139 = vrot.lane.b32.xlu0 %v138_v57, %s767_s11  ;;  %157 = vrot.lane.b32.xlu1 %v156_v62, %s768_s18  ;;  %v650_v17 = vld [vmem:[%s1295_s0 + $0x71] sm:$0x8]   ;;  %v652_v18 = vld [vmem:[%s1295_s0 + $0x32] sm:$0x2]   ;;  %v224_v19 = vsel %vm9_vm1, %v649_v10, %v220_v12  ;;  %s769_s4 = smov 92   ;;  %s770_s9 = smov 88   ;;  %v210_v27 = vsel %vm13_vm2, %v646_v16, %v206_v15 }
  0x13   :  { %v238_v20 = vsel %vm5_vm0, %v652_v18, %v651_v13  ;;  %v653_v21 = vld [vmem:[%s1295_s0 + $0x51] sm:$0x4]   ;;  %v655_v22 = vld [vmem:[%s1295_s0 + $0x12] sm:$0x1]   ;;  %v659_v26 = vld [vmem:[%s1295_s0 + $0x11] sm:$0x1]   ;;  %v228_v29 = vsel %vm13_vm2, %v650_v17, %v224_v19 }
  0x14   :  { %v656_v23 = vld [vmem:[%s1295_s0 + $0x31] sm:$0x2]   ;;  %v660_v28 = vld [vmem:[%s1295_s0 + $0x30] sm:$0x2]   ;;  %v242_v30 = vsel %vm9_vm1, %v653_v21, %v238_v20  ;;  %v654_v31 = vld [vmem:[%s1295_s0 + $0x70] sm:$0x8]  }
  0x15   :  { %v256_v24 = vsel %vm5_vm0, %v656_v23, %v655_v22  ;;  %v657_v25 = vld [vmem:[%s1295_s0 + $0x50] sm:$0x4]   ;;  %v663_v32 = vld [vmem:[%s1295_s0 + $0x10] sm:$0x1]   ;;  %v274_v36 = vsel %vm5_vm0, %v660_v28, %v659_v26  ;;  %v661_v37 = vld [vmem:[%s1295_s0 + $0x4f] sm:$0x4]   ;;  %v246_v42 = vsel %vm13_vm2, %v654_v31, %v242_v30 }
  0x16   :  { %175 = vrot.lane.b32.xlu0 %v174_v11, %s769_s4  ;;  %193 = vrot.lane.b32.xlu1 %v192_v14, %s770_s9  ;;  %v664_v33 = vld [vmem:[%s1295_s0 + $0x2f] sm:$0x2]   ;;  %v260_v34 = vsel %vm9_vm1, %v657_v25, %v256_v24  ;;  %v658_v35 = vld [vmem:[%s1295_s0 + $0x6f] sm:$0x8]   ;;  %s771_s22 = smov 84   ;;  %s772_s29 = smov 80   ;;  %v278_v46 = vsel %vm9_vm1, %v661_v37, %v274_v36 }
  0x17   :  { %v292_v38 = vsel %vm5_vm0, %v664_v33, %v663_v32  ;;  %v665_v39 = vld [vmem:[%s1295_s0 + $0x4e] sm:$0x4]   ;;  %v667_v40 = vld [vmem:[%s1295_s0 + $0xf] sm:$0x1]   ;;  %v671_v43 = vld [vmem:[%s1295_s0 + $0xe] sm:$0x1]   ;;  %v264_v45 = vsel %vm13_vm2, %v658_v35, %v260_v34 }
  0x18   :  { %v668_v41 = vld [vmem:[%s1295_s0 + $0x2e] sm:$0x2]   ;;  %v672_v44 = vld [vmem:[%s1295_s0 + $0x2d] sm:$0x2]   ;;  %v662_v47 = vld [vmem:[%s1295_s0 + $0x6e] sm:$0x8]   ;;  %v296_v48 = vsel %vm9_vm1, %v665_v39, %v292_v38 }
  0x19   :  { %v666_v49 = vld [vmem:[%s1295_s0 + $0x6d] sm:$0x8]   ;;  %v310_v50 = vsel %vm5_vm0, %v668_v41, %v667_v40  ;;  %v669_v51 = vld [vmem:[%s1295_s0 + $0x4d] sm:$0x4]   ;;  %s773_s11 = smov 76   ;;  %v328_v52 = vsel %vm5_vm0, %v672_v44, %v671_v43  ;;  %s774_s18 = smov 72   ;;  %v282_v56 = vsel %vm13_vm2, %v662_v47, %v278_v46 }
  0x1a   :  { %211 = vrot.lane.b32.xlu0 %v210_v27, %s771_s22  ;;  %229 = vrot.lane.b32.xlu1 %v228_v29, %s772_s29  ;;  %v673_v53 = vld [vmem:[%s1295_s0 + $0x4c] sm:$0x4]   ;;  %v675_v54 = vld [vmem:[%s1295_s0 + $0xd] sm:$0x1]   ;;  %v300_v59 = vsel %vm13_vm2, %v666_v49, %v296_v48  ;;  %v314_v60 = vsel %vm9_vm1, %v669_v51, %v310_v50  ;;  %s775_s29 = smov 68   ;;  %s776_s7 = smov 64  }
  0x1b   :  { %v676_v55 = vld [vmem:[%s1295_s0 + $0x2c] sm:$0x2]   ;;  %v679_v57 = vld [vmem:[%s1295_s0 + $0xc] sm:$0x1]   ;;  %v670_v61 = vld [vmem:[%s1295_s0 + $0x6c] sm:$0x8]   ;;  %v332_v62 = vsel %vm9_vm1, %v673_v53, %v328_v52 }
  0x1c   :  { %v680_v58 = vld [vmem:[%s1295_s0 + $0x2b] sm:$0x2]   ;;  %v674_v63 = vld [vmem:[%s1295_s0 + $0x6b] sm:$0x8]   ;;  %v346_v0 = vsel %vm5_vm0, %v676_v55, %v675_v54  ;;  %v677_v1 = vld [vmem:[%s1295_s0 + $0x4b] sm:$0x4]   ;;  %v318_v6 = vsel %vm13_vm2, %v670_v61, %v314_v60 }
  0x1d   :  { %v364_v2 = vsel %vm5_vm0, %v680_v58, %v679_v57  ;;  %v681_v3 = vld [vmem:[%s1295_s0 + $0x4a] sm:$0x4]   ;;  %v683_v4 = vld [vmem:[%s1295_s0 + $0xb] sm:$0x1]   ;;  %v687_v7 = vld [vmem:[%s1295_s0 + $0xa] sm:$0x1]   ;;  %v336_v9 = vsel %vm13_vm2, %v674_v63, %v332_v62  ;;  %v350_v10 = vsel %vm9_vm1, %v677_v1, %v346_v0 }
  0x1e   :  { %247 = vrot.lane.b32.xlu0 %v246_v42, %s773_s11  ;;  %265 = vrot.lane.b32.xlu1 %v264_v45, %s774_s18  ;;  %v684_v5 = vld [vmem:[%s1295_s0 + $0x2a] sm:$0x2]   ;;  %v688_v8 = vld [vmem:[%s1295_s0 + $0x29] sm:$0x2]   ;;  %v368_v12 = vsel %vm9_vm1, %v681_v3, %v364_v2  ;;  %s777_s18 = smov 60   ;;  %s778_s25 = smov 56  }
  0x1f   :  { %v678_v11 = vld [vmem:[%s1295_s0 + $0x6a] sm:$0x8]   ;;  %v682_v13 = vld [vmem:[%s1295_s0 + $0x69] sm:$0x8]   ;;  %v382_v14 = vsel %vm5_vm0, %v684_v5, %v683_v4  ;;  %v685_v15 = vld [vmem:[%s1295_s0 + $0x49] sm:$0x4]   ;;  %v400_v16 = vsel %vm5_vm0, %v688_v8, %v687_v7 }
  0x20   :  { %v689_v17 = vld [vmem:[%s1295_s0 + $0x48] sm:$0x4]   ;;  %v691_v18 = vld [vmem:[%s1295_s0 + $0x9] sm:$0x1]   ;;  %v354_v20 = vsel %vm13_vm2, %v678_v11, %v350_v10  ;;  %v695_v21 = vld [vmem:[%s1295_s0 + $0x8] sm:$0x1]   ;;  %v372_v23 = vsel %vm13_vm2, %v682_v13, %v368_v12  ;;  %v386_v24 = vsel %vm9_vm1, %v685_v15, %v382_v14 }
  0x21   :  { %v692_v19 = vld [vmem:[%s1295_s0 + $0x28] sm:$0x2]   ;;  %v696_v22 = vld [vmem:[%s1295_s0 + $0x27] sm:$0x2]   ;;  %v686_v25 = vld [vmem:[%s1295_s0 + $0x68] sm:$0x8]   ;;  %v404_v26 = vsel %vm9_vm1, %v689_v17, %v400_v16 }
  0x22   :  { %283 = vrot.lane.b32.xlu0 %v282_v56, %s775_s29  ;;  %301 = vrot.lane.b32.xlu1 %v300_v59, %s776_s7  ;;  %v690_v27 = vld [vmem:[%s1295_s0 + $0x67] sm:$0x8]   ;;  %v418_v28 = vsel %vm5_vm0, %v692_v19, %v691_v18  ;;  %v693_v29 = vld [vmem:[%s1295_s0 + $0x47] sm:$0x4]   ;;  %s779_s7 = smov 52   ;;  %v436_v30 = vsel %vm5_vm0, %v696_v22, %v695_v21  ;;  %s780_s14 = smov 48   ;;  %v390_v34 = vsel %vm13_vm2, %v686_v25, %v386_v24 }
  0x23   :  { %v697_v31 = vld [vmem:[%s1295_s0 + $0x46] sm:$0x4]   ;;  %v699_v32 = vld [vmem:[%s1295_s0 + $0x7] sm:$0x1]   ;;  %v703_v35 = vld [vmem:[%s1295_s0 + $0x6] sm:$0x1]   ;;  %v408_v37 = vsel %vm13_vm2, %v690_v27, %v404_v26  ;;  %v422_v38 = vsel %vm9_vm1, %v693_v29, %v418_v28 }
  0x24   :  { %v700_v33 = vld [vmem:[%s1295_s0 + $0x26] sm:$0x2]   ;;  %v704_v36 = vld [vmem:[%s1295_s0 + $0x25] sm:$0x2]   ;;  %v694_v39 = vld [vmem:[%s1295_s0 + $0x66] sm:$0x8]   ;;  %v440_v40 = vsel %vm9_vm1, %v697_v31, %v436_v30 }
  0x25   :  { %v698_v41 = vld [vmem:[%s1295_s0 + $0x65] sm:$0x8]   ;;  %v454_v42 = vsel %vm5_vm0, %v700_v33, %v699_v32  ;;  %v701_v43 = vld [vmem:[%s1295_s0 + $0x45] sm:$0x4]   ;;  %v472_v45 = vsel %vm5_vm0, %v704_v36, %v703_v35  ;;  %v705_v46 = vld [vmem:[%s1295_s0 + $0x44] sm:$0x4]   ;;  %v426_v49 = vsel %vm13_vm2, %v694_v39, %v422_v38 }
  0x26   :  { %319 = vrot.lane.b32.xlu0 %v318_v6, %s777_s18  ;;  %337 = vrot.lane.b32.xlu1 %v336_v9, %s778_s25  ;;  %s781_s25 = smov 44   ;;  %v702_v44 = vld [vmem:[%s1295_s0 + $0x64] sm:$0x8]   ;;  %v707_v47 = vld [vmem:[%s1295_s0 + $0x5] sm:$0x1]   ;;  %s782_s5 = smov 40   ;;  %v444_v53 = vsel %vm13_vm2, %v698_v41, %v440_v40  ;;  %v458_v54 = vsel %vm9_vm1, %v701_v43, %v454_v42  ;;  %v476_v58 = vsel %vm9_vm1, %v705_v46, %v472_v45 }
  0x27   :  { %v708_v48 = vld [vmem:[%s1295_s0 + $0x24] sm:$0x2]   ;;  %v706_v50 = vld [vmem:[%s1295_s0 + $0x63] sm:$0x8]   ;;  %v711_v51 = vld [vmem:[%s1295_s0 + $0x4] sm:$0x1]   ;;  %v462_v3 = vsel %vm13_vm2, %v702_v44, %v458_v54 }
  0x28   :  { %v712_v52 = vld [vmem:[%s1295_s0 + $0x23] sm:$0x2]   ;;  %v709_v55 = vld [vmem:[%s1295_s0 + $0x43] sm:$0x4]   ;;  %v601_v57 = vld [vmem:[%s1295_s0 + $0x3e] sm:$0x4]   ;;  %v490_v59 = vsel %vm5_vm0, %v708_v48, %v707_v47  ;;  %v480_v7 = vsel %vm13_vm2, %v706_v50, %v476_v58 }
  0x29   :  { %v713_v56 = vld [vmem:[%s1295_s0 + $0x42] sm:$0x4]   ;;  %v602_v60 = vld [vmem:[%s1295_s0 + $0x5d] sm:$0x8]   ;;  %s783_s24 = smov 36   ;;  %v508_v63 = vsel %vm5_vm0, %v712_v52, %v711_v51  ;;  %s784_s29 = smov 32   ;;  %v494_v8 = vsel %vm9_vm1, %v709_v55, %v490_v59 }
  0x2a   :  { %355 = vrot.lane.b32.xlu0 %v354_v20, %s779_s7  ;;  %373 = vrot.lane.b32.xlu1 %v372_v23, %s780_s14  ;;  %v2_v61 = vld [vmem:[%s1295_s0] sm:$0x1]   ;;  %v715_v0 = vld [vmem:[%s1295_s0 + $0x3] sm:$0x1]   ;;  %v512_v11 = vsel %vm9_vm1, %v713_v56, %v508_v63  ;;  %s785_s11 = smov 28   ;;  %s786_s18 = smov 24  }
  0x2b   :  { %v600_v62 = vld [vmem:[%s1295_s0 + $0x1f] sm:$0x2]   ;;  %v716_v1 = vld [vmem:[%s1295_s0 + $0x22] sm:$0x2]   ;;  %v719_v4 = vld [vmem:[%s1295_s0 + $0x2] sm:$0x1]  }
  0x2c   :  { %v6_v2 = vsel %vm5_vm0, %v600_v62, %v2_v61  ;;  %v720_v5 = vld [vmem:[%s1295_s0 + $0x21] sm:$0x2]   ;;  %v710_v9 = vld [vmem:[%s1295_s0 + $0x62] sm:$0x8]   ;;  %v714_v12 = vld [vmem:[%s1295_s0 + $0x61] sm:$0x8]   ;;  %v526_v13 = vsel %vm5_vm0, %v716_v1, %v715_v0 }
  0x2d   :  { %v10_v6 = vsel %vm9_vm1, %v601_v57, %v6_v2  ;;  %v717_v14 = vld [vmem:[%s1295_s0 + $0x41] sm:$0x4]   ;;  %v544_v15 = vsel %vm5_vm0, %v720_v5, %v719_v4  ;;  %v721_v16 = vld [vmem:[%s1295_s0 + $0x40] sm:$0x4]   ;;  %v723_v17 = vld [vmem:[%s1295_s0 + $0x1] sm:$0x1]   ;;  %v498_v19 = vsel %vm13_vm2, %v710_v9, %v494_v8  ;;  %v516_v20 = vsel %vm13_vm2, %v714_v12, %v512_v11 }
  0x2e   :  { %391 = vrot.lane.b32.xlu0 %v390_v34, %s781_s25  ;;  %409 = vrot.lane.b32.xlu1 %v408_v37, %s782_s5  ;;  %v14_v10 = vsel %vm13_vm2, %v602_v60, %v10_v6  ;;  %v724_v18 = vld [vmem:[%s1295_s0 + $0x20] sm:$0x2]   ;;  %v530_v21 = vsel %vm9_vm1, %v717_v14, %v526_v13  ;;  %v718_v22 = vld [vmem:[%s1295_s0 + $0x60] sm:$0x8]   ;;  %v548_v23 = vsel %vm9_vm1, %v721_v16, %v544_v15  ;;  %s787_s25 = smov 20   ;;  %s788_s26 = smov 16  }
  0x2f   :  { %16 = vst.msk [vmem:[#allocation0] ss:$8 sm:$0xf] %vm15_vm3, %v14_v10   ;;  %v722_v24 = vld [vmem:[%s1295_s0 + $0x5f] sm:$0x8]   ;;  %v562_v25 = vsel %vm5_vm0, %v724_v18, %v723_v17  ;;  %v534_v27 = vsel %vm13_vm2, %v718_v22, %v530_v21  ;;  %s791_s30 = smov 4  }
  0x30   :  { %v725_v26 = vld [vmem:[%s1295_s0 + $0x3f] sm:$0x4]   ;;  %v552_v28 = vsel %vm13_vm2, %v722_v24, %v548_v23  ;;  %vm33_vm4 = vcmask 1048544   ;;  %vm51_vm5 = vcmask 1015744   ;;  %vm69_vm6 = vcmask 982944  }
  0x31   :  { %v566_v29 = vsel %vm9_vm1, %v725_v26, %v562_v25  ;;  %v726_v30 = vld [vmem:[%s1295_s0 + $0x5e] sm:$0x8]   ;;  %s789_s0 = smov 12   ;;  %vm87_vm7 = vcmask 950144   ;;  %vm105_vm8 = vcmask 917344   ;;  %vm123_vm9 = vcmask 884544  }
  0x32   :  { %427 = vrot.lane.b32.xlu0 %v426_v49, %s783_s24  ;;  %445 = vrot.lane.b32.xlu1 %v444_v53, %s784_s29  ;;  %s790_s29 = smov 8   ;;  %v570_v31 = vsel %vm13_vm2, %v726_v30, %v566_v29  ;;  %vm141_vm10 = vcmask 851744   ;;  %vm159_vm11 = vcmask 818944   ;;  %vm177_vm12 = vcmask 786144  }
  0x33   :  { %vm195_vm13 = vcmask 753344   ;;  %vm213_vm14 = vcmask 720544   ;;  %vm231_vm15 = vcmask 687744   ;;  %vm249_vm0 = vcmask 654944  }
  0x34   :  { %vm267_vm1 = vcmask 622144   ;;  %vm285_vm2 = vcmask 589344   ;;  %vm303_vm3 = vcmask 556544  }
  0x36   :  { %463 = vrot.lane.b32.xlu0 %v462_v3, %s785_s11  ;;  %481 = vrot.lane.b32.xlu1 %v480_v7, %s786_s18 }
  0x3a   :  { %499 = vrot.lane.b32.xlu0 %v498_v19, %s787_s25  ;;  %517 = vrot.lane.b32.xlu1 %v516_v20, %s788_s26 }
  0x3e   :  { %535 = vrot.lane.b32.xlu0 %v534_v27, %s789_s0  ;;  %553 = vrot.lane.b32.xlu1 %v552_v28, %s790_s29 }
  0x42   :  { %571 = vrot.lane.b32.xlu0 %v570_v31, %s791_s30 }
  0x78   :  { %v32_v32 = vpop.permute.xlu0 %31   ;;  %v68_v33 = vpop.permute.xlu1 %67  }
  0x79   :  { %34 = vst.msk [vmem:[#allocation0] ss:$8 sm:$0xf] %vm33_vm4, %v32_v32   ;;  %vm321_vm4 = vcmask 523744  }
  0x7c   :  { %v50_v34 = vpop.permute.xlu0 %49   ;;  %v86_v35 = vpop.permute.xlu1 %85  }
  0x7d   :  { %52 = vst.msk [vmem:[#allocation0] ss:$8 sm:$0xf] %vm51_vm5, %v50_v34   ;;  %vm339_vm5 = vcmask 490944  }
  0x7e   :  { %70 = vst.msk [vmem:[#allocation0] ss:$8 sm:$0xf] %vm69_vm6, %v68_v33   ;;  %vm357_vm6 = vcmask 458144  }
  0x7f   :  { %88 = vst.msk [vmem:[#allocation0] ss:$8 sm:$0xf] %vm87_vm7, %v86_v35   ;;  %vm375_vm7 = vcmask 425344  }
  0x80   :  { %v104_v36 = vpop.permute.xlu0 %103   ;;  %v122_v37 = vpop.permute.xlu1 %121  }
  0x81   :  { %106 = vst.msk [vmem:[#allocation0] ss:$8 sm:$0xf] %vm105_vm8, %v104_v36   ;;  %vm393_vm8 = vcmask 392544  }
  0x82   :  { %124 = vst.msk [vmem:[#allocation0] ss:$8 sm:$0xf] %vm123_vm9, %v122_v37   ;;  %vm411_vm9 = vcmask 359744  }
  0x84   :  { %v140_v38 = vpop.permute.xlu0 %139   ;;  %v158_v39 = vpop.permute.xlu1 %157  }
  0x85   :  { %142 = vst.msk [vmem:[#allocation0] ss:$8 sm:$0xf] %vm141_vm10, %v140_v38   ;;  %vm429_vm10 = vcmask 326944  }
  0x86   :  { %160 = vst.msk [vmem:[#allocation0] ss:$8 sm:$0xf] %vm159_vm11, %v158_v39   ;;  %vm447_vm11 = vcmask 294144  }
  0x88   :  { %v176_v40 = vpop.permute.xlu0 %175   ;;  %v194_v41 = vpop.permute.xlu1 %193  }
  0x89   :  { %178 = vst.msk [vmem:[#allocation0] ss:$8 sm:$0xf] %vm177_vm12, %v176_v40   ;;  %vm465_vm12 = vcmask 261344  }
  0x8a   :  { %196 = vst.msk [vmem:[#allocation0] ss:$8 sm:$0xf] %vm195_vm13, %v194_v41   ;;  %vm483_vm13 = vcmask 228544  }
  0x8c   :  { %v212_v42 = vpop.permute.xlu0 %211   ;;  %v230_v43 = vpop.permute.xlu1 %229  }
  0x8d   :  { %214 = vst.msk [vmem:[#allocation0] ss:$8 sm:$0xf] %vm213_vm14, %v212_v42   ;;  %vm501_vm14 = vcmask 195744  }
  0x8e   :  { %232 = vst.msk [vmem:[#allocation0] ss:$8 sm:$0xf] %vm231_vm15, %v230_v43   ;;  %vm519_vm15 = vcmask 162944  }
  0x90   :  { %v248_v44 = vpop.permute.xlu0 %247   ;;  %v266_v45 = vpop.permute.xlu1 %265  }
  0x91   :  { %250 = vst.msk [vmem:[#allocation0] ss:$8 sm:$0xf] %vm249_vm0, %v248_v44   ;;  %vm537_vm0 = vcmask 130144  }
  0x92   :  { %268 = vst.msk [vmem:[#allocation0] ss:$8 sm:$0xf] %vm267_vm1, %v266_v45   ;;  %vm555_vm1 = vcmask 97344  }
  0x94   :  { %v284_v46 = vpop.permute.xlu0 %283   ;;  %v302_v47 = vpop.permute.xlu1 %301  }
  0x95   :  { %286 = vst.msk [vmem:[#allocation0] ss:$8 sm:$0xf] %vm285_vm2, %v284_v46   ;;  %vm573_vm2 = vcmask 64544  }
  0x96   :  { %304 = vst.msk [vmem:[#allocation0] ss:$8 sm:$0xf] %vm303_vm3, %v302_v47  }
  0x98   :  { %v320_v48 = vpop.permute.xlu0 %319   ;;  %v338_v49 = vpop.permute.xlu1 %337  }
  0x99   :  { %322 = vst.msk [vmem:[#allocation0] ss:$8 sm:$0xf] %vm321_vm4, %v320_v48  }
  0x9a   :  { %340 = vst.msk [vmem:[#allocation0] ss:$8 sm:$0xf] %vm339_vm5, %v338_v49  }
  0x9c   :  { %v356_v50 = vpop.permute.xlu0 %355   ;;  %v374_v51 = vpop.permute.xlu1 %373  }
  0x9d   :  { %358 = vst.msk [vmem:[#allocation0] ss:$8 sm:$0xf] %vm357_vm6, %v356_v50  }
  0x9e   :  { %376 = vst.msk [vmem:[#allocation0] ss:$8 sm:$0xf] %vm375_vm7, %v374_v51  }
  0xa0   :  { %v392_v52 = vpop.permute.xlu0 %391   ;;  %v410_v53 = vpop.permute.xlu1 %409  }
  0xa1   :  { %394 = vst.msk [vmem:[#allocation0] ss:$8 sm:$0xf] %vm393_vm8, %v392_v52  }
  0xa2   :  { %412 = vst.msk [vmem:[#allocation0] ss:$8 sm:$0xf] %vm411_vm9, %v410_v53  }
  0xa4   :  { %v428_v54 = vpop.permute.xlu0 %427   ;;  %v446_v55 = vpop.permute.xlu1 %445  }
  0xa5   :  { %430 = vst.msk [vmem:[#allocation0] ss:$8 sm:$0xf] %vm429_vm10, %v428_v54  }
  0xa6   :  { %448 = vst.msk [vmem:[#allocation0] ss:$8 sm:$0xf] %vm447_vm11, %v446_v55  }
  0xa8   :  { %v464_v56 = vpop.permute.xlu0 %463   ;;  %v482_v57 = vpop.permute.xlu1 %481  }
  0xa9   :  { %466 = vst.msk [vmem:[#allocation0] ss:$8 sm:$0xf] %vm465_vm12, %v464_v56  }
  0xaa   :  { %484 = vst.msk [vmem:[#allocation0] ss:$8 sm:$0xf] %vm483_vm13, %v482_v57  }
  0xac   :  { %v500_v58 = vpop.permute.xlu0 %499   ;;  %v518_v59 = vpop.permute.xlu1 %517  }
  0xad   :  { %502 = vst.msk [vmem:[#allocation0] ss:$8 sm:$0xf] %vm501_vm14, %v500_v58  }
  0xae   :  { %520 = vst.msk [vmem:[#allocation0] ss:$8 sm:$0xf] %vm519_vm15, %v518_v59  }
  0xb0   :  { %v536_v60 = vpop.permute.xlu0 %535   ;;  %v554_v61 = vpop.permute.xlu1 %553  }
  0xb1   :  { %538 = vst.msk [vmem:[#allocation0] ss:$8 sm:$0xf] %vm537_vm0, %v536_v60  }
  0xb2   :  { %556 = vst.msk [vmem:[#allocation0] ss:$8 sm:$0xf] %vm555_vm1, %v554_v61  }
  0xb4   :  { %v572_v62 = vpop.permute.xlu0 %571  }
  0xb5   :  { %574 = vst.msk [vmem:[#allocation0] ss:$8 sm:$0xf] %vm573_vm2, %v572_v62  }
  0xbc   :  { %v578_v63 = vld [vmem:[#allocation0] sm:$0x1]  ;;  %v582_v0 = vld [vmem:[#allocation0 + $0x8] sm:$0x1]  ;;  %v587_v1 = vld [vmem:[#allocation0 + $0x10] sm:$0x1] }
  0xbd   :  { %580 = vst [vmem:[%s1296_s1] sm:$0x1] %v578_v63  ;;  %727 = vst [vmem:[%s1296_s1 + $0x1] sm:$0x1] %v582_v0  ;;  %v593_v2 = vld [vmem:[#allocation0 + $0x18] sm:$0x1] }
  0xbe   :  { %728 = vst [vmem:[%s1296_s1 + $0x2] sm:$0x1] %v587_v1  ;;  %729 = vst [vmem:[%s1296_s1 + $0x3] sm:$0x1] %v593_v2 }

// kernel: residual_block3d_forward.5
= control target key start
LH: loop header
LB: loop body
LE: loop exit
PB: predicated region body
PF: predicated region fallthrough
CT: control target
= control target key end

     0   :  { %v20_v0 = vlaneseq  ;;  %s144_s1 = inlined_call_operand.vmem [shape: f32[1,512], index: 1, kind: input, shape index: {}]   ;;  %s145_s2 = inlined_call_operand.vmem [shape: f32[1,512], index: 2, kind: input, shape index: {}]   ;;  %s146_s0 = inlined_call_operand.vmem [shape: f32[8,512], index: 0, kind: input, shape index: {}]   ;;  %s147_s3 = inlined_call_operand.vmem [shape: bf16[8,512], index: 3, kind: output, shape index: {}]  }
   0x1   :  { %v18_v2 = vld [vmem:[%s144_s1] sm:$0xf]  ;;  %v15_v9 = vld [vmem:[%s146_s0 + $0x8] sm:$0xff]  ;;  %v16_v14 = vld [vmem:[%s146_s0 + $0x10] sm:$0xff] }
   0x2   :  { %v21_v1 = vshrl.u32 %v20_v0, 7  ;;  %v44_v3 = vld [vmem:[%s145_s2] sm:$0xf]  ;;  %v17_v15 = vld [vmem:[%s146_s0 + $0x18] sm:$0xff] }
   0x3   :  { %v14_v8 = vld [vmem:[%s146_s0] sm:$0xff] }
   0x4   :  { %v22_v4 = vsub.s32 0, %v21_v1  ;;  %v26_v5 = vsub.s32 1, %v21_v1  ;;  %v30_v6 = vsub.s32 2, %v21_v1  ;;  %v34_v7 = vsub.s32 3, %v21_v1 }
   0x6   :  { %v23_v10 = vrot.slane %v18_v2, %v22_v4  ;;  %v27_v11 = vrot.slane %v18_v2, %v26_v5  ;;  %v49_v12 = vrot.slane %v44_v3, %v22_v4  ;;  %v53_v13 = vrot.slane %v44_v3, %v26_v5 }
   0x7   :  { %v31_v16 = vrot.slane %v18_v2, %v30_v6  ;;  %v35_v17 = vrot.slane %v18_v2, %v34_v7  ;;  %v57_v18 = vrot.slane %v44_v3, %v30_v6  ;;  %v61_v19 = vrot.slane %v44_v3, %v34_v7 }
   0x8   :  { %v40_v20 = vmul.f32 %v23_v10, %v14_v8  ;;  %v41_v21 = vmul.f32 %v27_v11, %v15_v9 }
   0x9   :  { %v42_v22 = vmul.f32 %v31_v16, %v16_v14  ;;  %v43_v23 = vmul.f32 %v35_v17, %v17_v15 }
   0xa   :  { %v66_v24 = vadd.f32 %v49_v12, %v40_v20  ;;  %v67_v25 = vadd.f32 %v53_v13, %v41_v21 }
   0xb   :  { %v68_v26 = vadd.f32 %v57_v18, %v42_v22  ;;  %v69_v27 = vadd.f32 %v61_v19, %v43_v23 }
   0xc   :  { %v70_v28 = vmax.f32 %v66_v24, 0.0  ;;  %v71_v29 = vmax.f32 %v67_v25, 0.0 }
   0xd   :  { %v72_v30 = vmax.f32 %v68_v26, 0.0  ;;  %v73_v31 = vmax.f32 %v69_v27, 0.0 }
   0xe   :  { %v98_v32 = vpack.c.bf16 %v71_v29, %v70_v28 }
   0xf   :  { %v99_v33 = vpack.c.bf16 %v73_v31, %v72_v30 }
  0x10   :  { %90 = vst [vmem:[%s147_s3] sm:$0xff] %v98_v32 }
  0x11   :  { %91 = vst [vmem:[%s147_s3 + $0x8] sm:$0xff] %v99_v33 }

// kernel: residual_block3d_forward.4
= control target key start
LH: loop header
LB: loop body
LE: loop exit
PB: predicated region body
PF: predicated region fallthrough
CT: control target
= control target key end

     0   :  { %s2755_s18 = smov 0   ;;  %s2757_s19 = smov 0   ;;  %s3770_s0 = inlined_call_operand.vmem [shape: bf16[2,10,10,10,4], index: 0, kind: input, shape index: {}, may-alias: {0,1,2}]   ;;  %s3771_s1 = inlined_call_operand.vmem [shape: bf16[2,10,10,10,4], index: 1, kind: input, shape index: {}, may-alias: {0,1,2}]   ;;  %s3772_s2 = inlined_call_operand.vmem [shape: bf16[2,10,10,10,4], index: 2, kind: input, shape index: {}, may-alias: {0,1,2}]   ;;  %s3773_s3 = inlined_call_operand.vmem [shape: bf16[108,4], index: 3, kind: input, shape index: {}]   ;;  %s3774_s4 = inlined_call_operand.vmem [shape: f32[2,8,8,8,4], index: 4, kind: output, shape index: {0}]   ;;  %s3775_s5 = inlined_call_operand.vmem [shape: f32[2,8,2,4], index: 5, kind: output, shape index: {1}]  }
   0x1   :  { %s2759_s20 = smov 0   ;;  %s2761_s21 = smov 0  }
   0x2   :  { %s2763_s22 = smov 0  }
   0x3 LB: > { %s25_s23 = sadd.s32 1, %s2689_s20  ;;  %s28_s24 = sadd.s32 1, %s2693_s21  ;;  %s2697_s22 = sphi %s2763_s22, %s16_s22   ;;  %s2693_s21 = sphi %s2761_s21, %s3779_s21   ;;  %s2689_s20 = sphi %s2759_s20, %s3778_s20   ;;  %s2685_s19 = sphi %s2757_s19, %s3777_s19   ;;  %s2681_s18 = sphi %s2755_s18, %s3776_s18  }
   0x4   : > { %p26_p0 = scmp.ge.s32.totalorder %s25_s23, 8  ;;  %p1991_p1 = scmp.ge.s32.totalorder %s2697_s22, 1 }
   0x5   : > { %p252_p2 = scmp.lt.s32.totalorder %s2697_s22, 17 }
   0x6   : > { %s3781_s23 = smov (%p26_p0, %s25_s23), 0  ;;  %s3783_s24 = smov (!%p26_p0, %s28_s24), %s2693_s21 }
   0x7   : > { %p253_p3 = pnand %p1991_p1, %p252_p2  ;;  %p30_p4 = scmp.ge.s32.totalorder %s3783_s24, 2 }
   0x8   : > { %p316_p5 = scmp.lt.s32.totalorder (!%p253_p3), %s2685_s19, 1  ;;  %p318_p6 = scmp.lt.s32.totalorder (!%p253_p3), %s2681_s18, 9  ;;  %vm430_vm0 = vcmask (!%p253_p3), 1046528   ;;  %vm405_vm1 = vcmask (!%p253_p3), 31744   ;;  %vm488_vm2 = vcmask (!%p253_p3), 1045504   ;;  %vm479_vm3 = vcmask (!%p253_p3), 64544  }
   0x9   : > { %s3785_s24 = smov (%p30_p4, %s3783_s24), 0  ;;  %256 = sbr.rel (%p253_p3) target bundleno = 604 (0x25c), region = 36 }
   0xa   : > { %s2699_s8 = smov (!%p253_p3), 4   ;;  %s2700_s9 = smov (!%p253_p3), 8   ;;  %vm537_vm4 = vcmask (!%p253_p3), 97344   ;;  %vm571_vm5 = vcmask (!%p253_p3), 130144   ;;  %vm608_vm6 = vcmask (!%p253_p3), 162944   ;;  %vm644_vm7 = vcmask (!%p253_p3), 195744  }
   0xb   : > { %s325_s10 = sadd.s32 (!%p253_p3), 1, %s2681_s18  ;;  %s2701_s11 = smov (!%p253_p3), 12   ;;  %vm678_vm8 = vcmask (!%p253_p3), 228544   ;;  %vm715_vm9 = vcmask (!%p253_p3), 261344   ;;  %vm751_vm10 = vcmask (!%p253_p3), 294144   ;;  %vm832_vm11 = vcmask (!%p253_p3), 326944  }
   0xc   : > { %p328_p7 = scmp.lt.s32.totalorder (!%p253_p3), %s325_s10, 9  ;;  %s2702_s12 = smov (!%p253_p3), 16   ;;  %vm897_vm12 = vcmask (!%p253_p3), 359744   ;;  %vm954_vm13 = vcmask (!%p253_p3), 392544   ;;  %vm988_vm14 = vcmask (!%p253_p3), 425344   ;;  %vm1025_vm15 = vcmask (!%p253_p3), 458144  }
   0xd   : > { %s2703_s16 = smov (!%p253_p3), 20   ;;  %s2705_s30 = smov (!%p253_p3), 28  }
   0xe   : > { %s2706_s6 = smov (!%p253_p3), 32   ;;  %s2711_s17 = smov (!%p253_p3), 52  }
   0xf   : > { %p349_p9 = scmp.lt.s32.totalorder (!%p253_p3), %s2681_s18, 7 }
  0x10   : > { %s3787_s19 = smov (!%p316_p5, %s2685_s19), 1  ;;  %s3789_s10 = smov (!%p328_p7, %s325_s10), 9 }
  0x11   : > { %s319_s25 = scalar_select %p318_p6, %s2681_s18, 9 }
  0x12   : > { %s2792_s26 = smul.u32 200, %s3787_s19 }
  0x13   : > { %s2062_s27 = smul.u32 20, %s319_s25  ;;  %s2713_s25 = smov 60  }
  0x14   : > { %s2064_s13 = smul.u32 20, %s3789_s10 }
  0x15   : > { %s322_s28 = sadd.s32 %s2792_s26, %s2062_s27 }
  0x16   : > { %s1992_s29 = sshll.u32 %s322_s28, 2  ;;  %s332_s14 = sadd.s32 %s2064_s13, %s2792_s26 }
  0x17   : > { %s2798_s7 = scalar_lea.vmem %s3770_s0, %s1992_s29  ;;  %s1993_s15 = sshll.u32 %s332_s14, 2 }
  0x18   : > { %v367_v0 = vld [vmem:[%s2798_s7 + $0x8] ss:$8 sps:$4 sm:$0xff]   ;;  %v2802_v1 = vld [vmem:[%s2798_s7 + $0xc] sm:$0x1]  ;;  %v2805_v2 = vld [vmem:[%s2798_s7 + $0x14] sm:$0x1]  ;;  %s2982_s27 = scalar_lea.vmem %s3771_s1, %s1993_s15 }
  0x19   : > { %v2807_v3 = vunpack.c.l.bf16 %v367_v0  ;;  %v388_v4 = vunpack.c.l.bf16 %v2802_v1  ;;  %v2810_v5 = vunpack.c.h.bf16 %v367_v0  ;;  %v390_v6 = vunpack.c.l.bf16 %v2805_v2  ;;  %v365_v7 = vld [vmem:[%s2798_s7] ss:$40 sps:$4 sm:$0xff]   ;;  %v366_v8 = vld [vmem:[%s2798_s7 + $0x4] sm:$0x1]  ;;  %v2822_v13 = vld [vmem:[%s2798_s7 + $0x2c] sm:$0x1] }
  0x1a   : > { %v373_v9 = vld [vmem:[%s2798_s7 + $0x18] ss:$8 sps:$4 sm:$0xff]   ;;  %v2816_v10 = vunpack.c.l.bf16 %v365_v7  ;;  %v386_v11 = vunpack.c.l.bf16 %v366_v8  ;;  %v2819_v12 = vld [vmem:[%s2798_s7 + $0x24] sm:$0x1]  ;;  %v2826_v15 = vunpack.c.h.bf16 %v365_v7  ;;  %v396_v23 = vunpack.c.l.bf16 %v2822_v13  ;;  %v372_v24 = vld [vmem:[%s2798_s7 + $0x1c] sm:$0x1] }
  0x1b   : > { %v2824_v14 = vunpack.c.h.bf16 %v373_v9  ;;  %v434_v16 = vrot.slane %v2807_v3, 1  ;;  %v435_v17 = vrot.slane %v388_v4, 1  ;;  %v437_v18 = vrot.slane %v2810_v5, 1  ;;  %407 = vst.msk [vmem:[#allocation2 + $0x8] sm:$0xff] %vm405_vm1, %v2807_v3  ;;  %408 = vst.msk [vmem:[#allocation2 + $0x10] sm:$0xff] %vm405_vm1, %v2810_v5  ;;  %s336_s28 = sadd.s32 2, %s2681_s18 }
  0x1c   : > { %v438_v19 = vrot.slane %v390_v6, 1  ;;  %v431_v20 = vrot.slane %v2816_v10, 1  ;;  %v432_v21 = vrot.slane %v386_v11, 1  ;;  %v394_v22 = vunpack.c.l.bf16 %v2819_v12  ;;  %v377_v25 = vld [vmem:[%s2798_s7 + $0x30] ss:$8 sps:$4 sm:$0xff]   ;;  %406 = vst.msk [vmem:[#allocation2] sm:$0xff] %vm405_vm1, %v2816_v10 }
  0x1d   : > { %410 = vst.msk [vmem:[#allocation2 + $0x20] sm:$0xff] %vm405_vm1, %v2824_v14  ;;  %411 = vst.msk [vmem:[#allocation2 + $0x28] sm:$0xff] %vm405_vm1, %v2826_v15  ;;  %v2850_v26 = vsel %vm430_vm0, %v434_v16, %v435_v17  ;;  %v443_v27 = vrot.slane %v2824_v14, 1  ;;  %v446_v28 = vrot.slane %v2826_v15, 1  ;;  %v378_v29 = vld [vmem:[%s2798_s7 + $0x34] sm:$0x1]  ;;  %v2861_v36 = vunpack.c.l.bf16 %v373_v9 }
  0x1e   : > { %v2856_v30 = vsel %vm430_vm0, %v437_v18, %v438_v19  ;;  %v433_v31 = vsel %vm430_vm0, %v431_v20, %v432_v21  ;;  %v444_v32 = vrot.slane %v394_v22, 1  ;;  %v447_v33 = vrot.slane %v396_v23, 1  ;;  %v380_v34 = vld [vmem:[%s2798_s7 + $0x3c] sm:$0x1]  ;;  %s2704_s29 = smov 24   ;;  %p339_p8 = scmp.lt.s32.totalorder %s336_s28, 9 }
  0x1f   : > { %v2132_v35 = vpack.i.bf16 %v2850_v26, %v433_v31  ;;  %v392_v37 = vunpack.c.l.bf16 %v372_v24  ;;  %v2863_v38 = vunpack.c.l.bf16 %v377_v25  ;;  %v398_v41 = vunpack.c.l.bf16 %v378_v29  ;;  %409 = vst.msk [vmem:[#allocation2 + $0x18] sm:$0xff] %vm405_vm1, %v2861_v36  ;;  %v2941_v24 = vld [vmem:[%s2798_s7 + $0x40] ss:$8 sps:$4 sm:$0xff]   ;;  %s2722_s14 = smov 96   ;;  %s2724_s13 = smov 104  }
  0x20   : > { %v2866_v39 = vsel %vm430_vm0, %v443_v27, %v444_v32  ;;  %v2869_v40 = vsel %vm430_vm0, %v446_v28, %v447_v33  ;;  %v2871_v42 = vunpack.c.h.bf16 %v377_v25  ;;  %v440_v44 = vrot.slane %v2861_v36, 1  ;;  %v382_v27 = vld [vmem:[%s2798_s7 + $0x44] sm:$0x1]  ;;  %s3791_s28 = smov (!%p339_p8, %s336_s28), 9  ;;  %s3793_s18 = smov (!%p349_p9, %s2681_s18), 7 }
  0x21   : > { %2133 = vrot.lane.b32.xlu0 %v2132_v35, %s2699_s8  ;;  %v2876_v43 = vpack.i.bf16 %v2869_v40, %v2866_v39  ;;  %v441_v45 = vrot.slane %v392_v37, 1  ;;  %v400_v46 = vunpack.c.l.bf16 %v380_v34  ;;  %412 = vst.msk [vmem:[#allocation2 + $0x30] sm:$0xff] %vm405_vm1, %v2863_v38  ;;  %v449_v47 = vrot.slane %v2863_v38, 1 }
  0x22   : > { %v450_v48 = vrot.slane %v398_v41, 1  ;;  %v452_v49 = vrot.slane %v2871_v42, 1  ;;  %v489_v50 = vrot.slane %v2816_v10, 2  ;;  %413 = vst.msk [vmem:[#allocation2 + $0x38] sm:$0xff] %vm405_vm1, %v2871_v42  ;;  %v490_v53 = vrot.slane %v386_v11, 2 }
  0x23   : > { %2143 = vrot.lane.b32.xlu1 %v2876_v43, %s2699_s8  ;;  %v2891_v51 = vsel %vm430_vm0, %v440_v44, %v441_v45  ;;  %v453_v52 = vrot.slane %v400_v46, 1  ;;  %v492_v54 = vrot.slane %v2807_v3, 2  ;;  %v493_v57 = vrot.slane %v388_v4, 2 }
  0x24   : > { %v2896_v55 = vpack.i.bf16 %v2891_v51, %v2856_v30  ;;  %v2899_v56 = vsel %vm430_vm0, %v449_v47, %v450_v48  ;;  %v495_v58 = vrot.slane %v2810_v5, 2  ;;  %v491_v60 = vsel %vm488_vm2, %v489_v50, %v490_v53 }
  0x25   : > { %v2905_v59 = vsel %vm430_vm0, %v452_v49, %v453_v52  ;;  %v496_v61 = vrot.slane %v390_v6, 2  ;;  %v498_v62 = vrot.slane %v2861_v36, 2  ;;  %v2918_v0 = vsel %vm488_vm2, %v492_v54, %v493_v57  ;;  %v761_v52 = vld [vmem:[%s2982_s27 + $0x4] sm:$0x1]  ;;  %v763_v54 = vld [vmem:[%s2982_s27 + $0xc] sm:$0x1] }
  0x26   : > { %2138 = vrot.lane.b32.xlu0 %v2896_v55, %s2699_s8  ;;  %v2915_v63 = vpack.i.bf16 %v2905_v59, %v2899_v56  ;;  %v499_v1 = vrot.slane %v392_v37, 2  ;;  %v501_v4 = vrot.slane %v2824_v14, 2  ;;  %v2152_v7 = vpack.i.bf16 %v2918_v0, %v491_v60  ;;  %v765_v57 = vld [vmem:[%s2982_s27 + $0x14] sm:$0x1] }
  0x27   : > { %v497_v2 = vsel %vm488_vm2, %v495_v58, %v496_v61  ;;  %v502_v6 = vrot.slane %v394_v22, 2  ;;  %v504_v8 = vrot.slane %v2826_v15, 2  ;;  %v505_v10 = vrot.slane %v396_v23, 2  ;;  %v767_v58 = vld [vmem:[%s2982_s27 + $0x1c] sm:$0x1] }
  0x28   : > { %2148 = vrot.lane.b32.xlu1 %v2915_v63, %s2699_s8  ;;  %v500_v9 = vsel %vm488_vm2, %v498_v62, %v499_v1  ;;  %v507_v11 = vrot.slane %v2863_v38, 2  ;;  %v508_v12 = vrot.slane %v398_v41, 2  ;;  %v510_v17 = vrot.slane %v2871_v42, 2  ;;  %s2065_s8 = smul.u32 20, %s3791_s28  ;;  %s2714_s28 = smov 64  }
  0x29   : > { %v2928_v13 = vpack.i.bf16 %v500_v9, %v497_v2  ;;  %v503_v16 = vsel %vm488_vm2, %v501_v4, %v502_v6  ;;  %v511_v18 = vrot.slane %v400_v46, 2  ;;  %v506_v19 = vsel %vm488_vm2, %v504_v8, %v505_v10 }
  0x2a   : > { %2153 = vrot.lane.b32.xlu0 %v2152_v7, %s2700_s9  ;;  %v509_v20 = vsel %vm488_vm2, %v507_v11, %v508_v12  ;;  %v2934_v21 = vpack.i.bf16 %v506_v19, %v503_v16  ;;  %v2167_v25 = vpack.i.bf16 %v2810_v5, %v2807_v3  ;;  %v2177_v28 = vpack.i.bf16 %v2824_v14, %v2861_v36  ;;  %s343_s10 = sadd.s32 %s2065_s8, %s2792_s26  ;;  %s2709_s26 = smov 44  }
  0x2b   : > { %v512_v22 = vsel %vm488_vm2, %v510_v17, %v511_v18  ;;  %v2952_v29 = vunpack.c.l.bf16 %v2941_v24  ;;  %v402_v31 = vunpack.c.l.bf16 %v382_v27  ;;  %v2182_v32 = vpack.i.bf16 %v2863_v38, %v2826_v15  ;;  %s2718_s8 = smov 80  }
  0x2c   : > { %2158 = vrot.lane.b32.xlu1 %v2928_v13, %s2700_s9  ;;  %v2938_v23 = vpack.i.bf16 %v512_v22, %v509_v20  ;;  %v2192_v35 = vpack.i.bf16 %v2856_v30, %v2850_v26  ;;  %v2197_v37 = vpack.i.bf16 %v2866_v39, %v2891_v51  ;;  %v2202_v44 = vpack.i.bf16 %v2899_v56, %v2869_v40  ;;  %v760_v51 = vld [vmem:[%s2982_s27] ss:$8 sps:$4 sm:$0xff]   ;;  %v764_v56 = vld [vmem:[%s2982_s27 + $0x10] ss:$8 sps:$4 sm:$0xff]  }
  0x2d   : > { %v2187_v3 = vpack.i.bf16 %v2952_v29, %v2871_v42  ;;  %v581_v33 = vrot.slane %v2952_v29, 1  ;;  %v582_v34 = vrot.slane %v402_v31, 1  ;;  %v2307_v45 = vpack.i.bf16 %v2871_v42, %v2863_v38 }
  0x2e   : > { %2163 = vrot.lane.b32.xlu0 %v2934_v21, %s2700_s9  ;;  %v617_v30 = vrot.slane %v2952_v29, 2  ;;  %v618_v46 = vrot.slane %v402_v31, 2  ;;  %v2212_v39 = vpack.i.bf16 %v497_v2, %v2918_v0  ;;  %v2217_v47 = vpack.i.bf16 %v503_v16, %v500_v9 }
  0x2f   : > { %v2964_v41 = vsel %vm430_vm0, %v581_v33, %v582_v34  ;;  %v2222_v48 = vpack.i.bf16 %v509_v20, %v506_v19  ;;  %v2232_v50 = vpack.i.bf16 %v2861_v36, %v2810_v5  ;;  %v2237_v53 = vpack.i.bf16 %v2826_v15, %v2824_v14 }
  0x30   : > { %2173 = vrot.lane.b32.xlu1 %v2938_v23, %s2700_s9  ;;  %v2207_v26 = vpack.i.bf16 %v2964_v41, %v2905_v59  ;;  %v2976_v40 = vsel %vm488_vm2, %v617_v30, %v618_v46  ;;  %v780_v59 = vunpack.c.l.bf16 %v760_v51  ;;  %v781_v60 = vunpack.c.l.bf16 %v761_v52  ;;  %s2707_s9 = smov 36  }
  0x31   : > { %v2227_v49 = vpack.i.bf16 %v2976_v40, %v512_v22  ;;  %v2996_v61 = vunpack.c.h.bf16 %v760_v51  ;;  %v783_v62 = vunpack.c.l.bf16 %v763_v54  ;;  %v2999_v5 = vunpack.c.l.bf16 %v764_v56 }
  0x32   : > { %2168 = vrot.lane.b32.xlu0 %v2167_v25, %s2701_s11  ;;  %v3001_v36 = vunpack.c.h.bf16 %v764_v56  ;;  %v785_v14 = vunpack.c.l.bf16 %v765_v57  ;;  %v787_v15 = vunpack.c.l.bf16 %v767_v58  ;;  %v849_v0 = vrot.slane %v780_v59, 1  ;;  %v384_v57 = vld [vmem:[%s2798_s7 + $0x4c] sm:$0x1]  ;;  %s2712_s7 = smov 56  }
  0x33   : > { %v850_v1 = vrot.slane %v781_v60, 1  ;;  %v852_v4 = vrot.slane %v2996_v61, 1  ;;  %v853_v7 = vrot.slane %v783_v62, 1  ;;  %v855_v2 = vrot.slane %v2999_v5, 1 }
  0x34   : > { %2178 = vrot.lane.b32.xlu1 %v2177_v28, %s2701_s11  ;;  %v856_v6 = vrot.slane %v785_v14, 1  ;;  %v858_v8 = vrot.slane %v3001_v36, 1  ;;  %v859_v9 = vrot.slane %v787_v15, 1  ;;  %v906_v11 = vrot.slane %v780_v59, 2 }
  0x35   : > { %v851_v10 = vsel %vm430_vm0, %v849_v0, %v850_v1  ;;  %v854_v12 = vsel %vm430_vm0, %v852_v4, %v853_v7  ;;  %v907_v16 = vrot.slane %v781_v60, 2  ;;  %v910_v17 = vrot.slane %v783_v62, 2 }
  0x36   : > { %2183 = vrot.lane.b32.xlu0 %v2182_v32, %s2701_s11  ;;  %v3020_v18 = vpack.i.bf16 %v3001_v36, %v2999_v5  ;;  %v3024_v19 = vsel %vm430_vm0, %v858_v8, %v859_v9  ;;  %v912_v20 = vrot.slane %v2999_v5, 2  ;;  %v913_v22 = vrot.slane %v785_v14, 2  ;;  %v769_v32 = vld [vmem:[%s2982_s27 + $0x24] sm:$0x1] }
  0x37   : > { %v915_v25 = vrot.slane %v3001_v36, 2  ;;  %v916_v27 = vrot.slane %v787_v15, 2  ;;  %v908_v28 = vsel %vm488_vm2, %v906_v11, %v907_v16  ;;  %v2292_v46 = vpack.i.bf16 %v2999_v5, %v2996_v61 }
  0x38   : > { %2188 = vrot.lane.b32.xlu1 %v2187_v3, %s2701_s11  ;;  %v914_v33 = vsel %vm488_vm2, %v912_v20, %v913_v22  ;;  %s2708_s11 = smov 40   ;;  %v403_v62 = vunpack.c.h.bf16 %v2941_v24  ;;  %v404_v7 = vunpack.c.l.bf16 %v384_v57 }
  0x39   : > { %v3042_v34 = vsel %vm488_vm2, %v915_v25, %v916_v27 }
  0x3a   : > { %2193 = vrot.lane.b32.xlu0 %v2192_v35, %s2702_s12  ;;  %v3045_v35 = vld [vmem:[%s2982_s27 + $0x20] ss:$8 sps:$4 sm:$0xff]   ;;  %v2322_v9 = vpack.i.bf16 %v403_v62, %v2952_v29  ;;  %v689_v11 = vrot.slane %v404_v7, 1  ;;  %v724_v25 = vrot.slane %v403_v62, 2  ;;  %v725_v27 = vrot.slane %v404_v7, 2 }
  0x3b   : > { %v3055_v30 = vunpack.c.l.bf16 %v3045_v35  ;;  %v3138_v22 = vunpack.c.h.bf16 %v3045_v35  ;;  %v775_v35 = vld [vmem:[%s2982_s27 + $0x3c] sm:$0x1] }
  0x3c   : > { %2198 = vrot.lane.b32.xlu1 %v2197_v37, %s2702_s12 }
  0x3d   : > { %v918_v1 = vrot.slane %v3055_v30, 2 }
  0x3e   : > { %2203 = vrot.lane.b32.xlu0 %v2202_v44, %s2702_s12  ;;  %v789_v44 = vunpack.c.l.bf16 %v769_v32 }
  0x40   : > { %2208 = vrot.lane.b32.xlu1 %v2207_v26, %s2702_s12  ;;  %s1994_s12 = sshll.u32 %s343_s10, 2  ;;  %v3052_v26 = vpack.i.bf16 %v3042_v34, %v914_v33  ;;  %v919_v4 = vrot.slane %v789_v44, 2  ;;  %s2720_s10 = smov 88  }
  0x41   : > { %s3064_s15 = scalar_lea.vmem %s3772_s2, %s1994_s12 }
  0x42   : > { %2213 = vrot.lane.b32.xlu0 %v2212_v39, %s2703_s16  ;;  %v861_v39 = vrot.slane %v3055_v30, 1  ;;  %v1190_v51 = vld [vmem:[%s3064_s15 + $0x34] sm:$0x1]  ;;  %v3080_v56 = vld [vmem:[%s3064_s15 + $0x20] ss:$8 sps:$4 sm:$0xff]   ;;  %v3115_v42 = vsel %vm488_vm2, %v918_v1, %v919_v4 }
  0x43   : > { %v3085_v58 = vunpack.c.h.bf16 %v3080_v56  ;;  %v1210_v60 = vunpack.c.l.bf16 %v1190_v51  ;;  %v1180_v51 = vld [vmem:[%s3064_s15 + $0xc] sm:$0x1]  ;;  %v1182_v1 = vld [vmem:[%s3064_s15 + $0x14] sm:$0x1] }
  0x44   : > { %2218 = vrot.lane.b32.xlu1 %v2217_v47, %s2703_s16  ;;  %v862_v47 = vrot.slane %v789_v44, 1  ;;  %v921_v44 = vrot.slane %v3138_v22, 2 }
  0x45   : > { %v1281_v5 = vrot.slane %v3085_v58, 1  ;;  %v1285_v15 = vrot.slane %v1210_v60, 1  ;;  %v1338_v24 = vrot.slane %v3085_v58, 2  ;;  %v1342_v8 = vrot.slane %v1210_v60, 2 }
  0x46   : > { %2223 = vrot.lane.b32.xlu0 %v2222_v48, %s2703_s16  ;;  %v1188_v48 = vld [vmem:[%s3064_s15 + $0x2c] sm:$0x1] }
  0x47   : > { %v1208_v54 = vunpack.c.l.bf16 %v1188_v48 }
  0x48   : > { %2228 = vrot.lane.b32.xlu1 %v2227_v49, %s2703_s16  ;;  %v2297_v49 = vpack.i.bf16 %v3055_v30, %v3001_v36  ;;  %s2710_s16 = smov 48  }
  0x49   : > { %v1282_v36 = vrot.slane %v1208_v54, 1 }
  0x4a   : > { %2233 = vrot.lane.b32.xlu0 %v2232_v50, %s2704_s29  ;;  %v3072_v50 = vld [vmem:[%s3064_s15 + $0x30] ss:$8 sps:$4 sm:$0xff]  }
  0x4c   : > { %2238 = vrot.lane.b32.xlu1 %v2237_v53, %s2704_s29  ;;  %v3077_v53 = vsel %vm430_vm0, %v861_v39, %v862_v47  ;;  %v795_v39 = vunpack.c.l.bf16 %v775_v35 }
  0x4e   : > { %2243 = vrot.lane.b32.xlu0 %v2896_v55, %s2705_s30  ;;  %v2262_v55 = vpack.i.bf16 %v2996_v61, %v780_v59  ;;  %v3088_v59 = vunpack.c.l.bf16 %v3072_v50  ;;  %v871_v57 = vrot.slane %v795_v39, 1 }
  0x50   : > { %2248 = vrot.lane.b32.xlu1 %v2876_v43, %s2705_s30  ;;  %v909_v43 = vrot.slane %v2996_v61, 2  ;;  %v2312_v61 = vpack.i.bf16 %v3077_v53, %v3024_v19  ;;  %v1284_v14 = vrot.slane %v3088_v59, 1  ;;  %v2592_v38 = vpack.i.bf16 %v3088_v59, %v3085_v58 }
  0x52   : > { %2253 = vrot.lane.b32.xlu0 %v2928_v13, %s2706_s6  ;;  %v857_v13 = vsel %vm430_vm0, %v855_v2, %v856_v6  ;;  %v3031_v31 = vsel %vm488_vm2, %v909_v43, %v910_v17  ;;  %v1339_v2 = vrot.slane %v1208_v54, 2  ;;  %v1341_v6 = vrot.slane %v3088_v59, 2 }
  0x53   : > { %v3037_v3 = vpack.i.bf16 %v3024_v19, %v857_v13  ;;  %v2282_v37 = vpack.i.bf16 %v3031_v31, %v908_v28  ;;  %v2302_v52 = vpack.i.bf16 %v857_v13, %v854_v12  ;;  %v2317_v0 = vpack.i.bf16 %v914_v33, %v3031_v31  ;;  %v771_v19 = vld [vmem:[%s2982_s27 + $0x2c] sm:$0x1]  ;;  %v772_v33 = vld [vmem:[%s2982_s27 + $0x30] ss:$8 sps:$4 sm:$0xff]  }
  0x54   : > { %2258 = vrot.lane.b32.xlu1 %v2934_v21, %s2706_s6  ;;  %v2272_v21 = vpack.i.bf16 %v854_v12, %v851_v10  ;;  %v3110_v10 = vsel %vm430_vm0, %v1284_v14, %v1285_v15  ;;  %v3121_v29 = vsel %vm488_vm2, %v1338_v24, %v1339_v2  ;;  %v3124_v16 = vsel %vm488_vm2, %v1341_v6, %v1342_v8 }
  0x55   : > { %v2612_v43 = vpack.i.bf16 %v3124_v16, %v3121_v29  ;;  %v2332_v17 = vpack.i.bf16 %v3115_v42, %v3042_v34  ;;  %v864_v28 = vrot.slane %v3138_v22, 1  ;;  %v773_v34 = vld [vmem:[%s2982_s27 + $0x34] sm:$0x1] }
  0x56   : > { %2263 = vrot.lane.b32.xlu0 %v2262_v55, %s2707_s9  ;;  %v3107_v55 = vsel %vm430_vm0, %v1281_v5, %v1282_v36  ;;  %v1200_v36 = vunpack.c.l.bf16 %v1180_v51 }
  0x57   : > { %v2602_v12 = vpack.i.bf16 %v3110_v10, %v3107_v55 }
  0x58   : > { %2268 = vrot.lane.b32.xlu1 %v3020_v18, %s2707_s9 }
  0x5a   : > { %2273 = vrot.lane.b32.xlu0 %v2272_v21, %s2708_s11  ;;  %v791_v21 = vunpack.c.l.bf16 %v771_v19 }
  0x5c   : > { %2278 = vrot.lane.b32.xlu1 %v3037_v3, %s2708_s11  ;;  %v865_v31 = vrot.slane %v791_v21, 1 }
  0x5e   : > { %2283 = vrot.lane.b32.xlu0 %v2282_v37, %s2709_s26  ;;  %v3162_v37 = vunpack.c.l.bf16 %v772_v33 }
  0x60   : > { %2288 = vrot.lane.b32.xlu1 %v3052_v26, %s2709_s26  ;;  %v867_v48 = vrot.slane %v3162_v37, 1  ;;  %v2427_v51 = vpack.i.bf16 %v3162_v37, %v3138_v22 }
  0x62   : > { %2293 = vrot.lane.b32.xlu0 %v2292_v46, %s2710_s16  ;;  %v793_v46 = vunpack.c.l.bf16 %v773_v34 }
  0x64   : > { %2298 = vrot.lane.b32.xlu1 %v2297_v49, %s2710_s16  ;;  %v1178_v49 = vld [vmem:[%s3064_s15 + $0x4] sm:$0x1] }
  0x65   : > { %v1198_v5 = vunpack.c.l.bf16 %v1178_v49 }
  0x66   : > { %2303 = vrot.lane.b32.xlu0 %v2302_v52, %s2711_s17 }
  0x67   : > { %v1267_v6 = vrot.slane %v1198_v5, 1 }
  0x68   : > { %2308 = vrot.lane.b32.xlu1 %v2307_v45, %s2704_s29  ;;  %v688_v45 = vrot.slane %v403_v62, 1  ;;  %v1181_v62 = vld [vmem:[%s3064_s15 + $0x10] ss:$8 sps:$4 sm:$0xff]  }
  0x69   : > { %v3200_v7 = vunpack.c.l.bf16 %v1181_v62  ;;  %v3202_v24 = vunpack.c.h.bf16 %v1181_v62  ;;  %v3257_v62 = vld [vmem:[%s2982_s27 + $0x44] sm:$0x1] }
  0x6a   : > { %2313 = vrot.lane.b32.xlu0 %v2312_v61, %s2711_s17  ;;  %v690_v13 = vsel %vm430_vm0, %v688_v45, %v689_v11  ;;  %v1202_v45 = vunpack.c.l.bf16 %v1182_v1 }
  0x6b   : > { %v2342_v20 = vpack.i.bf16 %v690_v13, %v2964_v41  ;;  %v726_v41 = vsel %vm488_vm2, %v724_v25, %v725_v27  ;;  %v925_v13 = vrot.slane %v793_v46, 2  ;;  %v3215_v25 = vpack.i.bf16 %v3202_v24, %v3200_v7 }
  0x6c   : > { %2318 = vrot.lane.b32.xlu1 %v2317_v0, %s2712_s7  ;;  %v2362_v32 = vpack.i.bf16 %v726_v41, %v2976_v40  ;;  %v3164_v40 = vunpack.c.h.bf16 %v772_v33  ;;  %v1273_v41 = vrot.slane %v1202_v45, 1 }
  0x6e   : > { %2323 = vrot.lane.b32.xlu0 %v2322_v9, %s2704_s29  ;;  %v3172_v47 = vpack.i.bf16 %v3164_v40, %v3162_v37  ;;  %v870_v54 = vrot.slane %v3164_v40, 1  ;;  %s2715_s29 = smov 68   ;;  %v1270_v9 = vrot.slane %v1200_v36, 1  ;;  %v927_v19 = vrot.slane %v3164_v40, 2 }
  0x70   : > { %2328 = vrot.lane.b32.xlu1 %v2915_v63, %s2705_s30  ;;  %v2352_v63 = vpack.i.bf16 %v3138_v22, %v3055_v30  ;;  %v922_v30 = vrot.slane %v791_v21, 2  ;;  %v3194_v0 = vsel %vm430_vm0, %v870_v54, %v871_v57  ;;  %v1329_v22 = vrot.slane %v3200_v7, 2 }
  0x72   : > { %2333 = vrot.lane.b32.xlu0 %v2332_v17, %s2712_s7  ;;  %v3178_v52 = vsel %vm488_vm2, %v921_v44, %v922_v30  ;;  %v924_v17 = vrot.slane %v3162_v37, 2  ;;  %v1327_v30 = vrot.slane %v1200_v36, 2  ;;  %v1330_v37 = vrot.slane %v1202_v45, 2 }
  0x73   : > { %v2392_v14 = vpack.i.bf16 %v3178_v52, %v3115_v42 }
  0x74   : > { %2338 = vrot.lane.b32.xlu1 %v3020_v18, %s2713_s25  ;;  %v3152_v18 = vsel %vm430_vm0, %v864_v28, %v865_v31  ;;  %v1275_v28 = vrot.slane %v3202_v24, 1 }
  0x76   : > { %2343 = vrot.lane.b32.xlu0 %v2342_v20, %s2705_s30  ;;  %v928_v20 = vrot.slane %v795_v39, 2  ;;  %s2716_s30 = smov 72  }
  0x78   : > { %2348 = vrot.lane.b32.xlu1 %v2938_v23, %s2706_s6  ;;  %v2372_v23 = vpack.i.bf16 %v3152_v18, %v3077_v53  ;;  %v868_v53 = vrot.slane %v793_v46, 1  ;;  %v3229_v33 = vsel %vm488_vm2, %v927_v19, %v928_v20  ;;  %v3235_v46 = vld [vmem:[%s2982_s27 + $0x40] ss:$8 sps:$4 sm:$0xff]   ;;  %v3282_v19 = vsel %vm488_vm2, %v1329_v22, %v1330_v37 }
  0x79   : > { %v3318_v22 = vunpack.c.l.bf16 %v3080_v56 }
  0x7a   : > { %2353 = vrot.lane.b32.xlu0 %v2352_v63, %s2713_s25  ;;  %v3191_v15 = vsel %vm430_vm0, %v867_v48, %v868_v53 }
  0x7b   : > { %v3208_v42 = vpack.i.bf16 %v3194_v0, %v3191_v15 }
  0x7c   : > { %2358 = vrot.lane.b32.xlu1 %v3037_v3, %s2714_s28  ;;  %v1177_v3 = vld [vmem:[%s3064_s15] ss:$8 sps:$4 sm:$0xff]  }
  0x7d   : > { %v1197_v60 = vunpack.c.l.bf16 %v1177_v3  ;;  %v3183_v61 = vunpack.c.h.bf16 %v1177_v3 }
  0x7e   : > { %2363 = vrot.lane.b32.xlu0 %v2362_v32, %s2706_s6  ;;  %v3226_v32 = vsel %vm488_vm2, %v924_v17, %v925_v13  ;;  %s2717_s6 = smov 76  }
  0x7f   : > { %v2397_v4 = vpack.i.bf16 %v3183_v61, %v1197_v60  ;;  %v1266_v2 = vrot.slane %v1197_v60, 1  ;;  %v1269_v8 = vrot.slane %v3183_v61, 1  ;;  %v1323_v35 = vrot.slane %v1197_v60, 2 }
  0x80   : > { %2368 = vrot.lane.b32.xlu1 %v2352_v63, %s2707_s9  ;;  %v1272_v63 = vrot.slane %v3200_v7, 1  ;;  %v1326_v44 = vrot.slane %v3183_v61, 2  ;;  %v3241_v39 = vpack.i.bf16 %v3229_v33, %v3226_v32  ;;  %v3254_v60 = vunpack.c.l.bf16 %v3235_v46 }
  0x81   : > { %v1268_v27 = vsel %vm430_vm0, %v1266_v2, %v1267_v6  ;;  %v3219_v21 = vsel %vm430_vm0, %v1269_v8, %v1270_v9  ;;  %v797_v6 = vunpack.c.l.bf16 %v3257_v62  ;;  %v2467_v56 = vpack.i.bf16 %v3226_v32, %v3178_v52 }
  0x82   : > { %2373 = vrot.lane.b32.xlu0 %v2372_v23, %s2714_s28  ;;  %v2417_v34 = vpack.i.bf16 %v3219_v21, %v1268_v27  ;;  %v3244_v3 = vsel %vm430_vm0, %v1272_v63, %v1273_v41  ;;  %v998_v41 = vrot.slane %v3254_v60, 1 }
  0x84   : > { %2378 = vrot.lane.b32.xlu1 %v3052_v26, %s2715_s29  ;;  %v1184_v26 = vld [vmem:[%s3064_s15 + $0x1c] sm:$0x1] }
  0x85   : > { %v1204_v11 = vunpack.c.l.bf16 %v1184_v26 }
  0x86   : > { %2383 = vrot.lane.b32.xlu0 %v3172_v47, %s2707_s9  ;;  %s2719_s9 = smov 84  }
  0x87   : > { %v1276_v31 = vrot.slane %v1204_v11, 1  ;;  %v1333_v2 = vrot.slane %v1204_v11, 2  ;;  %v2442_v11 = vpack.i.bf16 %v3254_v60, %v3164_v40 }
  0x88   : > { %2388 = vrot.lane.b32.xlu1 %v2372_v23, %s2708_s11  ;;  %v1324_v23 = vrot.slane %v1198_v5, 2 }
  0x89   : > { %v3247_v48 = vsel %vm430_vm0, %v1275_v28, %v1276_v31  ;;  %v999_v28 = vrot.slane %v797_v6, 1  ;;  %v2447_v31 = vpack.i.bf16 %v3191_v15, %v3152_v18 }
  0x8a   : > { %2393 = vrot.lane.b32.xlu0 %v2392_v14, %s2715_s29  ;;  %v1325_v57 = vsel %vm488_vm2, %v1323_v35, %v1324_v23  ;;  %v3261_v36 = vpack.i.bf16 %v3247_v48, %v3244_v3 }
  0x8b   : > { %v3303_v15 = vsel %vm430_vm0, %v998_v41, %v999_v28 }
  0x8c   : > { %2398 = vrot.lane.b32.xlu1 %v2397_v4, %s2716_s30  ;;  %v1332_v4 = vrot.slane %v3202_v24, 2 }
  0x8e   : > { %2403 = vrot.lane.b32.xlu0 %v3208_v42, %s2708_s11  ;;  %v3285_v20 = vsel %vm488_vm2, %v1332_v4, %v1333_v2 }
  0x90   : > { %2408 = vrot.lane.b32.xlu1 %v2392_v14, %s2709_s26  ;;  %v3264_v14 = vsel %vm488_vm2, %v1326_v44, %v1327_v30  ;;  %v3298_v44 = vpack.i.bf16 %v3285_v20, %v3282_v19 }
  0x91   : > { %v2437_v9 = vpack.i.bf16 %v3264_v14, %v1325_v57 }
  0x92   : > { %2413 = vrot.lane.b32.xlu0 %v3215_v25, %s2716_s30 }
  0x93   : > { %v2134_v49 = vpop.permute.xlu0 %2133 }
  0x94   : > { %2418 = vrot.lane.b32.xlu1 %v2417_v34, %s2717_s6  ;;  %v2136_v53 = vunpack.i.h.bf16 %v2134_v49  ;;  %v2135_v54 = vunpack.i.l.bf16 %v2134_v49 }
  0x95   : > { %v2144_v5 = vpop.permute.xlu1 %2143 }
  0x96   : > { %481 = vst.msk [vmem:[#allocation2 + $0x8] sm:$0xff] %vm479_vm3, %v2136_v53  ;;  %480 = vst.msk [vmem:[#allocation2] sm:$0xff] %vm479_vm3, %v2135_v54  ;;  %v2146_v1 = vunpack.i.h.bf16 %v2144_v5  ;;  %v2145_v26 = vunpack.i.l.bf16 %v2144_v5  ;;  %2423 = vrot.lane.b32.xlu0 %v3241_v39, %s2709_s26  ;;  %v3309_v53 = vld [vmem:[%s3064_s15 + $0x24] sm:$0x1]  ;;  %v2462_v5 = vpack.i.bf16 %v3303_v15, %v3194_v0 }
  0x98   : > { %485 = vst.msk [vmem:[#allocation2 + $0x28] sm:$0xff] %vm479_vm3, %v2146_v1  ;;  %484 = vst.msk [vmem:[#allocation2 + $0x20] sm:$0xff] %vm479_vm3, %v2145_v26  ;;  %2428 = vrot.lane.b32.xlu1 %v2427_v51, %s2710_s16  ;;  %v2139_v8 = vpop.permute.xlu0 %2138  ;;  %v2457_v51 = vpack.i.bf16 %v3200_v7, %v3183_v61  ;;  %v1034_v61 = vrot.slane %v3254_v60, 2  ;;  %v1035_v1 = vrot.slane %v797_v6, 2  ;;  %v1206_v26 = vunpack.c.l.bf16 %v3309_v53 }
  0x99   : > { %v2141_v45 = vunpack.i.h.bf16 %v2139_v8  ;;  %v2140_v17 = vunpack.i.l.bf16 %v2139_v8  ;;  %v2472_v6 = vpack.i.bf16 %v3318_v22, %v3202_v24 }
  0x9a   : > { %v2149_v13 = vpop.permute.xlu1 %2148  ;;  %2433 = vrot.lane.b32.xlu0 %v3261_v36, %s2717_s6  ;;  %v3336_v32 = vsel %vm488_vm2, %v1034_v61, %v1035_v1  ;;  %v1336_v53 = vrot.slane %v1206_v26, 2 }
  0x9b   : > { %483 = vst.msk [vmem:[#allocation2 + $0x18] sm:$0xff] %vm479_vm3, %v2141_v45  ;;  %482 = vst.msk [vmem:[#allocation2 + $0x10] sm:$0xff] %vm479_vm3, %v2140_v17  ;;  %v2151_v27 = vunpack.i.h.bf16 %v2149_v13  ;;  %v2150_v63 = vunpack.i.l.bf16 %v2149_v13  ;;  %v1279_v17 = vrot.slane %v1206_v26, 1  ;;  %v2482_v41 = vpack.i.bf16 %v3336_v32, %v3229_v33 }
  0x9c   : > { %2438 = vrot.lane.b32.xlu1 %v2437_v9, %s2718_s8  ;;  %v2154_v40 = vpop.permute.xlu0 %2153  ;;  %v1278_v9 = vrot.slane %v3318_v22, 1 }
  0x9d   : > { %487 = vst.msk [vmem:[#allocation2 + $0x38] sm:$0xff] %vm479_vm3, %v2151_v27  ;;  %486 = vst.msk [vmem:[#allocation2 + $0x30] sm:$0xff] %vm479_vm3, %v2150_v63  ;;  %v2156_v34 = vunpack.i.h.bf16 %v2154_v40  ;;  %v2155_v35 = vunpack.i.l.bf16 %v2154_v40  ;;  %vm1061_vm3 = vcmask 490944  }
  0x9e   : > { %v2159_v23 = vpop.permute.xlu1 %2158  ;;  %2443 = vrot.lane.b32.xlu0 %v2442_v11, %s2710_s16  ;;  %v2477_v11 = vpack.i.bf16 %v3244_v3, %v3219_v21  ;;  %v3349_v21 = vsel %vm430_vm0, %v1278_v9, %v1279_v17 }
  0x9f   : > { %538 = vst.msk [vmem:[#allocation2] sm:$0xff] %vm537_vm4, %v2155_v35  ;;  %539 = vst.msk [vmem:[#allocation2 + $0x8] sm:$0xff] %vm537_vm4, %v2156_v34  ;;  %v2161_v30 = vunpack.i.h.bf16 %v2159_v23  ;;  %v2160_v18 = vunpack.i.l.bf16 %v2159_v23  ;;  %v2492_v23 = vpack.i.bf16 %v3349_v21, %v3247_v48  ;;  %v2497_v48 = vpack.i.bf16 %v3282_v19, %v3264_v14 }
  0xa0   : > { %2448 = vrot.lane.b32.xlu1 %v2447_v31, %s2711_s17  ;;  %v2164_v49 = vpop.permute.xlu0 %2163  ;;  %v3353_v31 = vld [vmem:[%s2982_s27 + $0x4c] sm:$0x1]  ;;  %s2721_s27 = smov 92  }
  0xa1   : > { %540 = vst.msk [vmem:[#allocation2 + $0x10] sm:$0xff] %vm537_vm4, %v2160_v18  ;;  %541 = vst.msk [vmem:[#allocation2 + $0x18] sm:$0xff] %vm537_vm4, %v2161_v30  ;;  %v2166_v54 = vunpack.i.h.bf16 %v2164_v49  ;;  %v2165_v57 = vunpack.i.l.bf16 %v2164_v49  ;;  %v3361_v30 = vunpack.c.h.bf16 %v3235_v46  ;;  %v1335_v18 = vrot.slane %v3318_v22, 2 }
  0xa2   : > { %v2174_v62 = vpop.permute.xlu1 %2173  ;;  %2453 = vrot.lane.b32.xlu0 %v3298_v44, %s2718_s8 }
  0xa3   : > { %543 = vst.msk [vmem:[#allocation2 + $0x28] sm:$0xff] %vm537_vm4, %v2166_v54  ;;  %542 = vst.msk [vmem:[#allocation2 + $0x20] sm:$0xff] %vm537_vm4, %v2165_v57  ;;  %v2176_v7 = vunpack.i.h.bf16 %v2174_v62  ;;  %v2175_v37 = vunpack.i.l.bf16 %v2174_v62  ;;  %v799_v54 = vunpack.c.l.bf16 %v3353_v31  ;;  %v2502_v61 = vpack.i.bf16 %v3361_v30, %v3254_v60  ;;  %v2652_v60 = vld [vmem:[%s3773_s3] sm:$0xff]  }
  0xa4   : > { %2458 = vrot.lane.b32.xlu1 %v2457_v51, %s2719_s9  ;;  %v2169_v4 = vpop.permute.xlu0 %2168  ;;  %v3380_v19 = vsel %vm488_vm2, %v1335_v18, %v1336_v53  ;;  %2024 = vmatprep.subr.bf16.mxu0 %v2652_v60 }
  0xa5   : > { %545 = vst.msk [vmem:[#allocation2 + $0x38] sm:$0xff] %vm537_vm4, %v2176_v7  ;;  %544 = vst.msk [vmem:[#allocation2 + $0x30] sm:$0xff] %vm537_vm4, %v2175_v37  ;;  %v2171_v0 = vunpack.i.h.bf16 %v2169_v4  ;;  %v2170_v2 = vunpack.i.l.bf16 %v2169_v4  ;;  %v1105_v7 = vrot.slane %v3361_v30, 1  ;;  %v1106_v37 = vrot.slane %v799_v54, 1  ;;  %2025 = vmatpush3.bf16.msra.mxu0 %v2652_v60  ;;  %2046 = vmatprep.subr.bf16.mxu1 %v2652_v60 }
  0xa6   : > { %v2179_v8 = vpop.permute.xlu1 %2178  ;;  %2463 = vrot.lane.b32.xlu0 %v2462_v5, %s2711_s17  ;;  %2053 = vmatpush3.bf16.msra.mxu1 %v2652_v60  ;;  %vm1095_vm4 = vcmask 523744  }
  0xa7   : > { %572 = vst.msk [vmem:[#allocation2] sm:$0xff] %vm571_vm5, %v2170_v2  ;;  %573 = vst.msk [vmem:[#allocation2 + $0x8] sm:$0xff] %vm571_vm5, %v2171_v0  ;;  %v2181_v45 = vunpack.i.h.bf16 %v2179_v8  ;;  %v2180_v52 = vunpack.i.l.bf16 %v2179_v8  ;;  %v2512_v0 = vpack.i.bf16 %v3380_v19, %v3285_v20 }
  0xa8   : > { %2468 = vrot.lane.b32.xlu1 %v2467_v56, %s2712_s7  ;;  %v2184_v13 = vpop.permute.xlu0 %2183 }
  0xa9   : > { %574 = vst.msk [vmem:[#allocation2 + $0x10] sm:$0xff] %vm571_vm5, %v2180_v52  ;;  %575 = vst.msk [vmem:[#allocation2 + $0x18] sm:$0xff] %vm571_vm5, %v2181_v45  ;;  %v2186_v24 = vunpack.i.h.bf16 %v2184_v13  ;;  %v2185_v27 = vunpack.i.l.bf16 %v2184_v13  ;;  %v2653_v45 = vld [vmem:[%s3773_s3 + $0x8] sm:$0xff]  }
  0xaa   : > { %v2189_v63 = vpop.permute.xlu1 %2188  ;;  %2473 = vrot.lane.b32.xlu0 %v2472_v6, %s2719_s9  ;;  %v1107_v6 = vsel %vm430_vm0, %v1105_v7, %v1106_v37  ;;  %2026 = vmatprep.subr.bf16.mxu0 %v2653_v45 }
  0xab   : > { %576 = vst.msk [vmem:[#allocation2 + $0x20] sm:$0xff] %vm571_vm5, %v2185_v27  ;;  %577 = vst.msk [vmem:[#allocation2 + $0x28] sm:$0xff] %vm571_vm5, %v2186_v24  ;;  %v2191_v28 = vunpack.i.h.bf16 %v2189_v63  ;;  %v2190_v40 = vunpack.i.l.bf16 %v2189_v63  ;;  %v2522_v13 = vpack.i.bf16 %v1107_v6, %v3303_v15  ;;  %v1141_v24 = vrot.slane %v3361_v30, 2  ;;  %2027 = vmatpush3.bf16.msra.mxu0 %v2653_v45  ;;  %2047 = vmatprep.subr.bf16.mxu1 %v2653_v45  ;;  %v2654_v15 = vld [vmem:[%s3773_s3 + $0x10] sm:$0xff]   ;;  %v3427_v30 = vld [vmem:[%s3064_s15 + $0x3c] sm:$0x1] }
  0xac   : > { %2478 = vrot.lane.b32.xlu1 %v2477_v11, %s2720_s10  ;;  %v2194_v3 = vpop.permute.xlu0 %2193  ;;  %v1142_v27 = vrot.slane %v799_v54, 2  ;;  %2054 = vmatpush3.bf16.msra.mxu1 %v2653_v45  ;;  %v1212_v54 = vunpack.c.l.bf16 %v3427_v30  ;;  %v3475_v45 = vld [vmem:[%s3064_s15 + $0x40] ss:$8 sps:$4 sm:$0xff]  }
  0xad   : > { %578 = vst.msk [vmem:[#allocation2 + $0x30] sm:$0xff] %vm571_vm5, %v2190_v40  ;;  %579 = vst.msk [vmem:[#allocation2 + $0x38] sm:$0xff] %vm571_vm5, %v2191_v28  ;;  %v2196_v33 = vunpack.i.h.bf16 %v2194_v3  ;;  %v2195_v34 = vunpack.i.l.bf16 %v2194_v3  ;;  %v2532_v3 = vpack.i.bf16 %v3085_v58, %v3318_v22  ;;  %2028 = vmatprep.subr.bf16.mxu0 %v2654_v15  ;;  %2048 = vmatprep.subr.bf16.mxu1 %v2654_v15  ;;  %v2655_v22 = vld [vmem:[%s3773_s3 + $0x18] sm:$0xff]   ;;  %vm1249_vm5 = vcmask 622144  }
  0xae   : > { %v2199_v35 = vpop.permute.xlu1 %2198  ;;  %2483 = vrot.lane.b32.xlu0 %v2482_v41, %s2712_s7 }
  0xaf   : > { %609 = vst.msk [vmem:[#allocation2] sm:$0xff] %vm608_vm6, %v2195_v34  ;;  %610 = vst.msk [vmem:[#allocation2 + $0x8] sm:$0xff] %vm608_vm6, %v2196_v33  ;;  %v2201_v49 = vunpack.i.h.bf16 %v2199_v35  ;;  %v2200_v51 = vunpack.i.l.bf16 %v2199_v35  ;;  %v1143_v33 = vsel %vm488_vm2, %v1141_v24, %v1142_v27  ;;  %2029 = vmatpush3.bf16.msra.mxu0 %v2654_v15  ;;  %v3493_v27 = vunpack.c.l.bf16 %v3475_v45 }
  0xb0   : > { %2488 = vrot.lane.b32.xlu1 %v3172_v47, %s2713_s25  ;;  %v2204_v57 = vpop.permute.xlu0 %2203  ;;  %2055 = vmatpush3.bf16.msra.mxu1 %v2654_v15 }
  0xb1   : > { %611 = vst.msk [vmem:[#allocation2 + $0x10] sm:$0xff] %vm608_vm6, %v2200_v51  ;;  %612 = vst.msk [vmem:[#allocation2 + $0x18] sm:$0xff] %vm608_vm6, %v2201_v49  ;;  %v2206_v46 = vunpack.i.h.bf16 %v2204_v57  ;;  %v2205_v62 = vunpack.i.l.bf16 %v2204_v57  ;;  %2030 = vmatprep.subr.bf16.mxu0 %v2655_v22  ;;  %2049 = vmatprep.subr.bf16.mxu1 %v2655_v22 }
  0xb2   : > { %v2209_v5 = vpop.permute.xlu1 %2208  ;;  %2493 = vrot.lane.b32.xlu0 %v2492_v23, %s2720_s10 }
  0xb3   : > { %613 = vst.msk [vmem:[#allocation2 + $0x20] sm:$0xff] %vm608_vm6, %v2205_v62  ;;  %614 = vst.msk [vmem:[#allocation2 + $0x28] sm:$0xff] %vm608_vm6, %v2206_v46  ;;  %v2211_v47 = vunpack.i.h.bf16 %v2209_v5  ;;  %v2210_v14 = vunpack.i.l.bf16 %v2209_v5  ;;  %2031 = vmatpush3.bf16.msra.mxu0 %v2655_v22  ;;  %v3445_v62 = vunpack.c.h.bf16 %v3072_v50  ;;  %v2657_v50 = vld [vmem:[%s3773_s3 + $0x28] sm:$0xff]  }
  0xb4   : > { %2498 = vrot.lane.b32.xlu1 %v2497_v48, %s2721_s27  ;;  %v2214_v1 = vpop.permute.xlu0 %2213  ;;  %2056 = vmatpush3.bf16.msra.mxu1 %v2655_v22 }
  0xb5   : > { %615 = vst.msk [vmem:[#allocation2 + $0x30] sm:$0xff] %vm608_vm6, %v2210_v14  ;;  %616 = vst.msk [vmem:[#allocation2 + $0x38] sm:$0xff] %vm608_vm6, %v2211_v47  ;;  %v2216_v26 = vunpack.i.h.bf16 %v2214_v1  ;;  %v2215_v4 = vunpack.i.l.bf16 %v2214_v1  ;;  %v1287_v47 = vrot.slane %v3445_v62, 1  ;;  %v1288_v14 = vrot.slane %v1212_v54, 1 }
  0xb6   : > { %v2219_v56 = vpop.permute.xlu1 %2218  ;;  %2503 = vrot.lane.b32.xlu0 %v2502_v61, %s2713_s25  ;;  %v3459_v60 = vpack.i.bf16 %v3445_v62, %v3088_v59  ;;  %vm1314_vm6 = vcmask 654944  }
  0xb7   : > { %645 = vst.msk [vmem:[#allocation2] sm:$0xff] %vm644_vm7, %v2215_v4  ;;  %646 = vst.msk [vmem:[#allocation2 + $0x8] sm:$0xff] %vm644_vm7, %v2216_v26  ;;  %v2221_v2 = vunpack.i.h.bf16 %v2219_v56  ;;  %v2220_v8 = vunpack.i.l.bf16 %v2219_v56 }
  0xb8   : > { %2508 = vrot.lane.b32.xlu1 %v3208_v42, %s2714_s28  ;;  %v2224_v9 = vpop.permute.xlu0 %2223 }
  0xb9   : > { %647 = vst.msk [vmem:[#allocation2 + $0x10] sm:$0xff] %vm644_vm7, %v2220_v8  ;;  %648 = vst.msk [vmem:[#allocation2 + $0x18] sm:$0xff] %vm644_vm7, %v2221_v2  ;;  %v2226_v20 = vunpack.i.h.bf16 %v2224_v9  ;;  %v2225_v52 = vunpack.i.l.bf16 %v2224_v9  ;;  %v2658_v2 = vld [vmem:[%s3773_s3 + $0x30] sm:$0x3f]   ;;  %v1344_v9 = vrot.slane %v3445_v62, 2 }
  0xba   : > { %v2229_v17 = vpop.permute.xlu1 %2228  ;;  %2513 = vrot.lane.b32.xlu0 %v2512_v0, %s2721_s27  ;;  %v3466_v0 = vsel %vm430_vm0, %v1287_v47, %v1288_v14 }
  0xbb   : > { %649 = vst.msk [vmem:[#allocation2 + $0x20] sm:$0xff] %vm644_vm7, %v2225_v52  ;;  %650 = vst.msk [vmem:[#allocation2 + $0x28] sm:$0xff] %vm644_vm7, %v2226_v20  ;;  %v2231_v42 = vunpack.i.h.bf16 %v2229_v17  ;;  %v2230_v11 = vunpack.i.l.bf16 %v2229_v17  ;;  %v2572_v52 = vpack.i.bf16 %v3121_v29, %v3380_v19  ;;  %v1194_v17 = vld [vmem:[%s3064_s15 + $0x44] sm:$0x1]  ;;  %v3490_v19 = vpack.i.bf16 %v3466_v0, %v3110_v10 }
  0xbc   : > { %2518 = vrot.lane.b32.xlu1 %v3215_v25, %s2722_s14  ;;  %v2234_v63 = vpop.permute.xlu0 %2233 }
  0xbd   : > { %651 = vst.msk [vmem:[#allocation2 + $0x30] sm:$0xff] %vm644_vm7, %v2230_v11  ;;  %652 = vst.msk [vmem:[#allocation2 + $0x38] sm:$0xff] %vm644_vm7, %v2231_v42  ;;  %v2236_v41 = vunpack.i.h.bf16 %v2234_v63  ;;  %v2235_v28 = vunpack.i.l.bf16 %v2234_v63  ;;  %vm1371_vm7 = vcmask 687744  }
  0xbe   : > { %v2239_v40 = vpop.permute.xlu1 %2238  ;;  %2523 = vrot.lane.b32.xlu0 %v2522_v13, %s2714_s28  ;;  %s2723_s28 = smov 100   ;;  %v1675_v13 = vsel %vm488_vm2, %v2658_v2, 0 }
  0xbf   : > { %679 = vst.msk [vmem:[#allocation2] sm:$0xff] %vm678_vm8, %v2235_v28  ;;  %680 = vst.msk [vmem:[#allocation2 + $0x8] sm:$0xff] %vm678_vm8, %v2236_v41  ;;  %v2241_v25 = vunpack.i.h.bf16 %v2239_v40  ;;  %v2240_v31 = vunpack.i.l.bf16 %v2239_v40  ;;  %v1214_v28 = vunpack.c.l.bf16 %v1194_v17 }
  0xc0   : > { %2528 = vrot.lane.b32.xlu1 %v3241_v39, %s2715_s29  ;;  %v2244_v34 = vpop.permute.xlu0 %2243  ;;  %v2542_v39 = vpack.i.bf16 %v1143_v33, %v3336_v32  ;;  %v2656_v32 = vld [vmem:[%s3773_s3 + $0x20] sm:$0xff]  }
  0xc1   : > { %681 = vst.msk [vmem:[#allocation2 + $0x10] sm:$0xff] %vm678_vm8, %v2240_v31  ;;  %682 = vst.msk [vmem:[#allocation2 + $0x18] sm:$0xff] %vm678_vm8, %v2241_v25  ;;  %v2246_v35 = vunpack.i.h.bf16 %v2244_v34  ;;  %v2245_v23 = vunpack.i.l.bf16 %v2244_v34  ;;  %2032 = vmatprep.subr.bf16.mxu0 %v2656_v32  ;;  %2050 = vmatprep.subr.bf16.mxu1 %v2656_v32 }
  0xc2   : > { %v2249_v18 = vpop.permute.xlu1 %2248  ;;  %2533 = vrot.lane.b32.xlu0 %v2532_v3, %s2722_s14  ;;  %2033 = vmatpush3.bf16.msra.mxu0 %v2656_v32 }
  0xc3   : > { %716 = vst.msk [vmem:[#allocation2] sm:$0xff] %vm715_vm9, %v2245_v23  ;;  %717 = vst.msk [vmem:[#allocation2 + $0x8] sm:$0xff] %vm715_vm9, %v2246_v35  ;;  %v2251_v49 = vunpack.i.h.bf16 %v2249_v18  ;;  %v2250_v51 = vunpack.i.l.bf16 %v2249_v18  ;;  %2057 = vmatpush3.bf16.msra.mxu1 %v2656_v32  ;;  %2034 = vmatprep.subr.bf16.mxu0 %v2657_v50  ;;  %v1415_v35 = vrot.slane %v3493_v27, 1  ;;  %v1416_v23 = vrot.slane %v1214_v28, 1 }
  0xc4   : > { %2538 = vrot.lane.b32.xlu1 %v3261_v36, %s2723_s28  ;;  %v2254_v53 = vpop.permute.xlu0 %2253  ;;  %v2552_v36 = vpack.i.bf16 %v3107_v55, %v3349_v21  ;;  %2051 = vmatprep.subr.bf16.mxu1 %v2657_v50 }
  0xc5   : > { %718 = vst.msk [vmem:[#allocation2 + $0x10] sm:$0xff] %vm715_vm9, %v2250_v51  ;;  %719 = vst.msk [vmem:[#allocation2 + $0x18] sm:$0xff] %vm715_vm9, %v2251_v49  ;;  %v2256_v57 = vunpack.i.h.bf16 %v2254_v53  ;;  %v2255_v48 = vunpack.i.l.bf16 %v2254_v53  ;;  %v2597_v51 = vpack.i.bf16 %v3493_v27, %v3445_v62  ;;  %v1451_v53 = vrot.slane %v3493_v27, 2 }
  0xc6   : > { %v2259_v46 = vpop.permute.xlu1 %2258  ;;  %2543 = vrot.lane.b32.xlu0 %v2542_v39, %s2715_s29  ;;  %2035 = vmatpush3.bf16.msra.mxu0 %v2657_v50 }
  0xc7   : > { %752 = vst.msk [vmem:[#allocation2] sm:$0xff] %vm751_vm10, %v2255_v48  ;;  %753 = vst.msk [vmem:[#allocation2 + $0x8] sm:$0xff] %vm751_vm10, %v2256_v57  ;;  %v2261_v5 = vunpack.i.h.bf16 %v2259_v46  ;;  %v2260_v61 = vunpack.i.l.bf16 %v2259_v46  ;;  %2058 = vmatpush3.bf16.msra.mxu1 %v2657_v50  ;;  %2060 = vmatprep.subr.msk.bf16.mxu0 %vm488_vm2, %v2658_v2  ;;  %v3523_v57 = vsel %vm430_vm0, %v1415_v35, %v1416_v23  ;;  %v1452_v48 = vrot.slane %v1214_v28, 2 }
  0xc8   : > { %2548 = vrot.lane.b32.xlu1 %v2532_v3, %s2716_s30  ;;  %v2264_v7 = vpop.permute.xlu0 %2263  ;;  %2061 = vmatprep.subr.msk.bf16.mxu1 %vm488_vm2, %v2658_v2  ;;  %v2607_v47 = vpack.i.bf16 %v3523_v57, %v3466_v0 }
  0xc9   : > { %754 = vst.msk [vmem:[#allocation2 + $0x10] sm:$0xff] %vm751_vm10, %v2260_v61  ;;  %755 = vst.msk [vmem:[#allocation2 + $0x18] sm:$0xff] %vm751_vm10, %v2261_v5  ;;  %v2266_v21 = vunpack.i.h.bf16 %v2264_v7  ;;  %v2265_v37 = vunpack.i.l.bf16 %v2264_v7  ;;  %v1215_v7 = vunpack.c.h.bf16 %v3475_v45  ;;  %v3539_v14 = vsel %vm488_vm2, %v1451_v53, %v1452_v48 }
  0xca   : > { %v2269_v1 = vpop.permute.xlu1 %2268  ;;  %2553 = vrot.lane.b32.xlu0 %v2552_v36, %s2723_s28  ;;  %2037 = vmatpush3.bf16.msra.mxu0 %v1675_v13 }
  0xcb   : > { %833 = vst.msk [vmem:[#allocation2] sm:$0xff] %vm832_vm11, %v2265_v37  ;;  %834 = vst.msk [vmem:[#allocation2 + $0x8] sm:$0xff] %vm832_vm11, %v2266_v21  ;;  %v2271_v26 = vunpack.i.h.bf16 %v2269_v1  ;;  %v2270_v4 = vunpack.i.l.bf16 %v2269_v1  ;;  %2059 = vmatpush3.bf16.msra.mxu1 %v1675_v13 }
  0xcc   : > { %2558 = vrot.lane.b32.xlu1 %v3298_v44, %s2724_s13  ;;  %v2274_v56 = vpop.permute.xlu0 %2273  ;;  %v1345_v44 = vrot.slane %v1212_v54, 2 }
  0xcd   : > { %835 = vst.msk [vmem:[#allocation2 + $0x10] sm:$0xff] %vm832_vm11, %v2270_v4  ;;  %836 = vst.msk [vmem:[#allocation2 + $0x18] sm:$0xff] %vm832_vm11, %v2271_v26  ;;  %v2276_v8 = vunpack.i.h.bf16 %v2274_v56  ;;  %v2275_v6 = vunpack.i.l.bf16 %v2274_v56  ;;  %v1522_v4 = vrot.slane %v1215_v7, 1 }
  0xce   : > { %v2279_v20 = vpop.permute.xlu1 %2278  ;;  %2563 = vrot.lane.b32.xlu0 %v3459_v60, %s2716_s30  ;;  %v3498_v41 = vsel %vm488_vm2, %v1344_v9, %v1345_v44  ;;  %v2627_v9 = vpack.i.bf16 %v1215_v7, %v3493_v27  ;;  %s1996_s30 = sshll.u32 %s3787_s19, 6 }
  0xcf   : > { %898 = vst.msk [vmem:[#allocation2] sm:$0xff] %vm897_vm12, %v2275_v6  ;;  %899 = vst.msk [vmem:[#allocation2 + $0x8] sm:$0xff] %vm897_vm12, %v2276_v8  ;;  %v2281_v42 = vunpack.i.h.bf16 %v2279_v20  ;;  %v2280_v11 = vunpack.i.l.bf16 %v2279_v20  ;;  %v3507_v33 = vpack.i.bf16 %v3498_v41, %v3124_v16  ;;  %v2617_v26 = vpack.i.bf16 %v3539_v14, %v3498_v41 }
  0xd0   : > { %2568 = vrot.lane.b32.xlu1 %v2552_v36, %s2717_s6  ;;  %v2284_v24 = vpop.permute.xlu0 %2283  ;;  %v1196_v36 = vld [vmem:[%s3064_s15 + $0x4c] sm:$0x1]  ;;  %v1558_v8 = vrot.slane %v1215_v7, 2  ;;  %s1995_s15 = sshll.u32 %s3793_s18, 3 }
  0xd1   : > { %900 = vst.msk [vmem:[#allocation2 + $0x10] sm:$0xff] %vm897_vm12, %v2280_v11  ;;  %901 = vst.msk [vmem:[#allocation2 + $0x18] sm:$0xff] %vm897_vm12, %v2281_v42  ;;  %v2286_v63 = vunpack.i.h.bf16 %v2284_v24  ;;  %v2285_v15 = vunpack.i.l.bf16 %v2284_v24 }
  0xd2   : > { %v2289_v40 = vpop.permute.xlu1 %2288  ;;  %2573 = vrot.lane.b32.xlu0 %v2572_v52, %s2724_s13 }
  0xd3   : > { %955 = vst.msk [vmem:[#allocation2] sm:$0xff] %vm954_vm13, %v2285_v15  ;;  %956 = vst.msk [vmem:[#allocation2 + $0x8] sm:$0xff] %vm954_vm13, %v2286_v63  ;;  %v2291_v3 = vunpack.i.h.bf16 %v2289_v40  ;;  %v2290_v25 = vunpack.i.l.bf16 %v2289_v40 }
  0xd4   : > { %2578 = vrot.lane.b32.xlu1 %v3490_v19, %s2717_s6  ;;  %v2294_v31 = vpop.permute.xlu0 %2293  ;;  %s353_s6 = sadd.s32 %s1996_s30, %s1995_s15 }
  0xd5   : > { %957 = vst.msk [vmem:[#allocation2 + $0x10] sm:$0xff] %vm954_vm13, %v2290_v25  ;;  %958 = vst.msk [vmem:[#allocation2 + $0x18] sm:$0xff] %vm954_vm13, %v2291_v3  ;;  %v2296_v34 = vunpack.i.h.bf16 %v2294_v31  ;;  %v2295_v22 = vunpack.i.l.bf16 %v2294_v31 }
  0xd6   : > { %v2299_v30 = vpop.permute.xlu1 %2298  ;;  %2583 = vrot.lane.b32.xlu0 %v2572_v52, %s2718_s8 }
  0xd7   : > { %989 = vst.msk [vmem:[#allocation2] sm:$0xff] %vm988_vm14, %v2295_v22  ;;  %990 = vst.msk [vmem:[#allocation2 + $0x8] sm:$0xff] %vm988_vm14, %v2296_v34  ;;  %v2301_v18 = vunpack.i.h.bf16 %v2299_v30  ;;  %v2300_v39 = vunpack.i.l.bf16 %v2299_v30 }
  0xd8   : > { %2588 = vrot.lane.b32.xlu1 %v3507_v33, %s2718_s8  ;;  %v2304_v49 = vpop.permute.xlu0 %2303  ;;  %s1997_s8 = sshll.u32 %s353_s6, 3 }
  0xd9   : > { %991 = vst.msk [vmem:[#allocation2 + $0x10] sm:$0xff] %vm988_vm14, %v2300_v39  ;;  %992 = vst.msk [vmem:[#allocation2 + $0x18] sm:$0xff] %vm988_vm14, %v2301_v18  ;;  %v2306_v54 = vunpack.i.h.bf16 %v2304_v49  ;;  %v2305_v32 = vunpack.i.l.bf16 %v2304_v49 }
  0xda   : > { %v2309_v46 = vpop.permute.xlu1 %2308  ;;  %2593 = vrot.lane.b32.xlu0 %v2592_v38, %s2719_s9  ;;  %v1216_v38 = vunpack.c.l.bf16 %v1196_v36 }
  0xdb   : > { %1026 = vst.msk [vmem:[#allocation2] sm:$0xff] %vm1025_vm15, %v2305_v32  ;;  %1027 = vst.msk [vmem:[#allocation2 + $0x8] sm:$0xff] %vm1025_vm15, %v2306_v54  ;;  %v2311_v62 = vunpack.i.h.bf16 %v2309_v46  ;;  %v2310_v5 = vunpack.i.l.bf16 %v2309_v46 }
  0xdc   : > { %2598 = vrot.lane.b32.xlu1 %v2597_v51, %s2719_s9  ;;  %v2314_v61 = vpop.permute.xlu0 %2313  ;;  %v1523_v56 = vrot.slane %v1216_v38, 1  ;;  %v1559_v29 = vrot.slane %v1216_v38, 2 }
  0xdd   : > { %683 = vst.msk [vmem:[#allocation2 + $0x20] sm:$0xff] %vm678_vm8, %v2310_v5  ;;  %684 = vst.msk [vmem:[#allocation2 + $0x28] sm:$0xff] %vm678_vm8, %v2311_v62  ;;  %v2316_v58 = vunpack.i.h.bf16 %v2314_v61  ;;  %v2315_v59 = vunpack.i.l.bf16 %v2314_v61 }
  0xde   : > { %v2319_v50 = vpop.permute.xlu1 %2318  ;;  %2603 = vrot.lane.b32.xlu0 %v2602_v12, %s2720_s10  ;;  %v1524_v44 = vsel %vm430_vm0, %v1522_v4, %v1523_v56  ;;  %v1560_v42 = vsel %vm488_vm2, %v1558_v8, %v1559_v29  ;;  %vm1132_vm0 = vcmask 556544   ;;  %vm1168_vm2 = vcmask 589344  }
  0xdf   : > { %1028 = vst.msk [vmem:[#allocation2 + $0x10] sm:$0xff] %vm1025_vm15, %v2315_v59  ;;  %1029 = vst.msk [vmem:[#allocation2 + $0x18] sm:$0xff] %vm1025_vm15, %v2316_v58  ;;  %v2321_v21 = vunpack.i.h.bf16 %v2319_v50  ;;  %v2320_v37 = vunpack.i.l.bf16 %v2319_v50  ;;  %v2637_v17 = vpack.i.bf16 %v1524_v44, %v3523_v57  ;;  %v2647_v15 = vpack.i.bf16 %v1560_v42, %v3539_v14 }
  0xe0   : > { %2608 = vrot.lane.b32.xlu1 %v2607_v47, %s2720_s10  ;;  %v2324_v1 = vpop.permute.xlu0 %2323 }
  0xe1   : > { %1062 = vst.msk [vmem:[#allocation2] sm:$0xff] %vm1061_vm3, %v2320_v37  ;;  %1063 = vst.msk [vmem:[#allocation2 + $0x8] sm:$0xff] %vm1061_vm3, %v2321_v21  ;;  %v2326_v55 = vunpack.i.h.bf16 %v2324_v1  ;;  %v2325_v10 = vunpack.i.l.bf16 %v2324_v1 }
  0xe2   : > { %v2329_v12 = vpop.permute.xlu1 %2328  ;;  %2613 = vrot.lane.b32.xlu0 %v2612_v43, %s2721_s27 }
  0xe3   : > { %686 = vst.msk [vmem:[#allocation2 + $0x38] sm:$0xff] %vm678_vm8, %v2326_v55  ;;  %685 = vst.msk [vmem:[#allocation2 + $0x30] sm:$0xff] %vm678_vm8, %v2325_v10  ;;  %v2331_v0 = vunpack.i.h.bf16 %v2329_v12  ;;  %v2330_v2 = vunpack.i.l.bf16 %v2329_v12  ;;  %vm1405_vm8 = vcmask 720544  }
  0xe4   : > { %2618 = vrot.lane.b32.xlu1 %v2617_v26, %s2721_s27  ;;  %v2334_v6 = vpop.permute.xlu0 %2333  ;;  %s3716_s27 = scalar_lea.vmem %s3774_s4, %s1997_s8 }
  0xe5   : > { %720 = vst.msk [vmem:[#allocation2 + $0x20] sm:$0xff] %vm715_vm9, %v2330_v2  ;;  %721 = vst.msk [vmem:[#allocation2 + $0x28] sm:$0xff] %vm715_vm9, %v2331_v0  ;;  %v2336_v16 = vunpack.i.h.bf16 %v2334_v6  ;;  %v2335_v43 = vunpack.i.l.bf16 %v2334_v6 }
  0xe6   : > { %v2339_v45 = vpop.permute.xlu1 %2338  ;;  %2623 = vrot.lane.b32.xlu0 %v3459_v60, %s2722_s14 }
  0xe7   : > { %1064 = vst.msk [vmem:[#allocation2 + $0x10] sm:$0xff] %vm1061_vm3, %v2335_v43  ;;  %1065 = vst.msk [vmem:[#allocation2 + $0x18] sm:$0xff] %vm1061_vm3, %v2336_v16  ;;  %v2341_v20 = vunpack.i.h.bf16 %v2339_v45  ;;  %v2340_v52 = vunpack.i.l.bf16 %v2339_v45 }
  0xe8   : > { %2628 = vrot.lane.b32.xlu1 %v2627_v9, %s2722_s14  ;;  %v2344_v13 = vpop.permute.xlu0 %2343  ;;  %s1998_s14 = sshll.u32 %s3787_s19, 3 }
  0xe9   : > { %1096 = vst.msk [vmem:[#allocation2] sm:$0xff] %vm1095_vm4, %v2340_v52  ;;  %1097 = vst.msk [vmem:[#allocation2 + $0x8] sm:$0xff] %vm1095_vm4, %v2341_v20  ;;  %v2346_v11 = vunpack.i.h.bf16 %v2344_v13  ;;  %v2345_v24 = vunpack.i.l.bf16 %v2344_v13  ;;  %s361_s7 = sadd.s32 %s1998_s14, %s3793_s18 }
  0xea   : > { %v2349_v60 = vpop.permute.xlu1 %2348  ;;  %2633 = vrot.lane.b32.xlu0 %v3490_v19, %s2723_s28  ;;  %s1999_s25 = sshll.u32 %s361_s7, 1 }
  0xeb   : > { %722 = vst.msk [vmem:[#allocation2 + $0x30] sm:$0xff] %vm715_vm9, %v2345_v24  ;;  %723 = vst.msk [vmem:[#allocation2 + $0x38] sm:$0xff] %vm715_vm9, %v2346_v11  ;;  %v2351_v27 = vunpack.i.h.bf16 %v2349_v60  ;;  %v2350_v63 = vunpack.i.l.bf16 %v2349_v60  ;;  %vm1442_vm9 = vcmask 753344   ;;  %s363_s12 = scalar_lea.vmem %s3775_s5, %s1999_s25 }
  0xec   : > { %2638 = vrot.lane.b32.xlu1 %v2637_v17, %s2723_s28  ;;  %v2354_v41 = vpop.permute.xlu0 %2353 }
  0xed   : > { %756 = vst.msk [vmem:[#allocation2 + $0x20] sm:$0xff] %vm751_vm10, %v2350_v63  ;;  %757 = vst.msk [vmem:[#allocation2 + $0x28] sm:$0xff] %vm751_vm10, %v2351_v27  ;;  %v2356_v28 = vunpack.i.h.bf16 %v2354_v41  ;;  %v2355_v40 = vunpack.i.l.bf16 %v2354_v41 }
  0xee   : > { %v2359_v3 = vpop.permute.xlu1 %2358  ;;  %2643 = vrot.lane.b32.xlu0 %v3507_v33, %s2724_s13 }
  0xef   : > { %1098 = vst.msk [vmem:[#allocation2 + $0x10] sm:$0xff] %vm1095_vm4, %v2355_v40  ;;  %1099 = vst.msk [vmem:[#allocation2 + $0x18] sm:$0xff] %vm1095_vm4, %v2356_v28  ;;  %v2361_v19 = vunpack.i.h.bf16 %v2359_v3  ;;  %v2360_v25 = vunpack.i.l.bf16 %v2359_v3 }
  0xf0   : > { %2648 = vrot.lane.b32.xlu1 %v2647_v15, %s2724_s13  ;;  %v2364_v31 = vpop.permute.xlu0 %2363 }
  0xf1   : > { %1133 = vst.msk [vmem:[#allocation2] sm:$0xff] %vm1132_vm0, %v2360_v25  ;;  %1134 = vst.msk [vmem:[#allocation2 + $0x8] sm:$0xff] %vm1132_vm0, %v2361_v19  ;;  %v2366_v34 = vunpack.i.h.bf16 %v2364_v31  ;;  %v2365_v22 = vunpack.i.l.bf16 %v2364_v31 }
  0xf2   : > { %v2369_v35 = vpop.permute.xlu1 %2368 }
  0xf3   : > { %758 = vst.msk [vmem:[#allocation2 + $0x30] sm:$0xff] %vm751_vm10, %v2365_v22  ;;  %759 = vst.msk [vmem:[#allocation2 + $0x38] sm:$0xff] %vm751_vm10, %v2366_v34  ;;  %v2371_v33 = vunpack.i.h.bf16 %v2369_v35  ;;  %v2370_v23 = vunpack.i.l.bf16 %v2369_v35  ;;  %vm1478_vm10 = vcmask 786144  }
  0xf4   : > { %v2374_v30 = vpop.permute.xlu0 %2373 }
  0xf5   : > { %837 = vst.msk [vmem:[#allocation2 + $0x20] sm:$0xff] %vm832_vm11, %v2370_v23  ;;  %838 = vst.msk [vmem:[#allocation2 + $0x28] sm:$0xff] %vm832_vm11, %v2371_v33  ;;  %v2376_v18 = vunpack.i.h.bf16 %v2374_v30  ;;  %v2375_v39 = vunpack.i.l.bf16 %v2374_v30 }
  0xf6   : > { %v2379_v49 = vpop.permute.xlu1 %2378 }
  0xf7   : > { %1135 = vst.msk [vmem:[#allocation2 + $0x10] sm:$0xff] %vm1132_vm0, %v2375_v39  ;;  %1136 = vst.msk [vmem:[#allocation2 + $0x18] sm:$0xff] %vm1132_vm0, %v2376_v18  ;;  %v2381_v51 = vunpack.i.h.bf16 %v2379_v49  ;;  %v2380_v53 = vunpack.i.l.bf16 %v2379_v49 }
  0xf8   : > { %v2384_v54 = vpop.permute.xlu0 %2383 }
  0xf9   : > { %1169 = vst.msk [vmem:[#allocation2] sm:$0xff] %vm1168_vm2, %v2380_v53  ;;  %1170 = vst.msk [vmem:[#allocation2 + $0x8] sm:$0xff] %vm1168_vm2, %v2381_v51  ;;  %v2386_v32 = vunpack.i.h.bf16 %v2384_v54  ;;  %v2385_v57 = vunpack.i.l.bf16 %v2384_v54 }
  0xfa   : > { %v2389_v48 = vpop.permute.xlu1 %2388 }
  0xfb   : > { %839 = vst.msk [vmem:[#allocation2 + $0x30] sm:$0xff] %vm832_vm11, %v2385_v57  ;;  %840 = vst.msk [vmem:[#allocation2 + $0x38] sm:$0xff] %vm832_vm11, %v2386_v32  ;;  %v2391_v46 = vunpack.i.h.bf16 %v2389_v48  ;;  %v2390_v36 = vunpack.i.l.bf16 %v2389_v48  ;;  %vm1512_vm11 = vcmask 818944  }
  0xfc   : > { %v2394_v62 = vpop.permute.xlu0 %2393 }
  0xfd   : > { %902 = vst.msk [vmem:[#allocation2 + $0x20] sm:$0xff] %vm897_vm12, %v2390_v36  ;;  %903 = vst.msk [vmem:[#allocation2 + $0x28] sm:$0xff] %vm897_vm12, %v2391_v46  ;;  %v2396_v5 = vunpack.i.h.bf16 %v2394_v62  ;;  %v2395_v61 = vunpack.i.l.bf16 %v2394_v62 }
  0xfe   : > { %v2399_v7 = vpop.permute.xlu1 %2398 }
  0xff   : > { %1171 = vst.msk [vmem:[#allocation2 + $0x10] sm:$0xff] %vm1168_vm2, %v2395_v61  ;;  %1172 = vst.msk [vmem:[#allocation2 + $0x18] sm:$0xff] %vm1168_vm2, %v2396_v5  ;;  %v2401_v47 = vunpack.i.h.bf16 %v2399_v7  ;;  %v2400_v58 = vunpack.i.l.bf16 %v2399_v7 }
 0x100   : > { %v2404_v59 = vpop.permute.xlu0 %2403 }
 0x101   : > { %1250 = vst.msk [vmem:[#allocation2] sm:$0xff] %vm1249_vm5, %v2400_v58  ;;  %1251 = vst.msk [vmem:[#allocation2 + $0x8] sm:$0xff] %vm1249_vm5, %v2401_v47  ;;  %v2406_v38 = vunpack.i.h.bf16 %v2404_v59  ;;  %v2405_v14 = vunpack.i.l.bf16 %v2404_v59 }
 0x102   : > { %v2409_v50 = vpop.permute.xlu1 %2408 }
 0x103   : > { %904 = vst.msk [vmem:[#allocation2 + $0x30] sm:$0xff] %vm897_vm12, %v2405_v14  ;;  %905 = vst.msk [vmem:[#allocation2 + $0x38] sm:$0xff] %vm897_vm12, %v2406_v38  ;;  %v2411_v21 = vunpack.i.h.bf16 %v2409_v50  ;;  %v2410_v37 = vunpack.i.l.bf16 %v2409_v50  ;;  %vm1549_vm12 = vcmask 851744  }
 0x104   : > { %v2414_v1 = vpop.permute.xlu0 %2413 }
 0x105   : > { %959 = vst.msk [vmem:[#allocation2 + $0x20] sm:$0xff] %vm954_vm13, %v2410_v37  ;;  %960 = vst.msk [vmem:[#allocation2 + $0x28] sm:$0xff] %vm954_vm13, %v2411_v21  ;;  %v2416_v26 = vunpack.i.h.bf16 %v2414_v1  ;;  %v2415_v4 = vunpack.i.l.bf16 %v2414_v1 }
 0x106   : > { %v2419_v56 = vpop.permute.xlu1 %2418 }
 0x107   : > { %1252 = vst.msk [vmem:[#allocation2 + $0x10] sm:$0xff] %vm1249_vm5, %v2415_v4  ;;  %1253 = vst.msk [vmem:[#allocation2 + $0x18] sm:$0xff] %vm1249_vm5, %v2416_v26  ;;  %v2421_v55 = vunpack.i.h.bf16 %v2419_v56  ;;  %v2420_v10 = vunpack.i.l.bf16 %v2419_v56 }
 0x108   : > { %v2424_v12 = vpop.permute.xlu0 %2423 }
 0x109   : > { %1315 = vst.msk [vmem:[#allocation2] sm:$0xff] %vm1314_vm6, %v2420_v10  ;;  %1316 = vst.msk [vmem:[#allocation2 + $0x8] sm:$0xff] %vm1314_vm6, %v2421_v55  ;;  %v2426_v0 = vunpack.i.h.bf16 %v2424_v12  ;;  %v2425_v2 = vunpack.i.l.bf16 %v2424_v12 }
 0x10a   : > { %v2429_v8 = vpop.permute.xlu1 %2428 }
 0x10b   : > { %961 = vst.msk [vmem:[#allocation2 + $0x30] sm:$0xff] %vm954_vm13, %v2425_v2  ;;  %962 = vst.msk [vmem:[#allocation2 + $0x38] sm:$0xff] %vm954_vm13, %v2426_v0  ;;  %v2431_v6 = vunpack.i.h.bf16 %v2429_v8  ;;  %v2430_v9 = vunpack.i.l.bf16 %v2429_v8  ;;  %vm1585_vm13 = vcmask 884544  }
 0x10c   : > { %v2434_v44 = vpop.permute.xlu0 %2433 }
 0x10d   : > { %993 = vst.msk [vmem:[#allocation2 + $0x20] sm:$0xff] %vm988_vm14, %v2430_v9  ;;  %994 = vst.msk [vmem:[#allocation2 + $0x28] sm:$0xff] %vm988_vm14, %v2431_v6  ;;  %v2436_v29 = vunpack.i.h.bf16 %v2434_v44  ;;  %v2435_v16 = vunpack.i.l.bf16 %v2434_v44 }
 0x10e   : > { %v2439_v43 = vpop.permute.xlu1 %2438 }
 0x10f   : > { %1317 = vst.msk [vmem:[#allocation2 + $0x10] sm:$0xff] %vm1314_vm6, %v2435_v16  ;;  %1318 = vst.msk [vmem:[#allocation2 + $0x18] sm:$0xff] %vm1314_vm6, %v2436_v29  ;;  %v2441_v45 = vunpack.i.h.bf16 %v2439_v43  ;;  %v2440_v20 = vunpack.i.l.bf16 %v2439_v43 }
 0x110   : > { %v2444_v52 = vpop.permute.xlu0 %2443 }
 0x111   : > { %1372 = vst.msk [vmem:[#allocation2] sm:$0xff] %vm1371_vm7, %v2440_v20  ;;  %1373 = vst.msk [vmem:[#allocation2 + $0x8] sm:$0xff] %vm1371_vm7, %v2441_v45  ;;  %v2446_v17 = vunpack.i.h.bf16 %v2444_v52  ;;  %v2445_v13 = vunpack.i.l.bf16 %v2444_v52 }
 0x112   : > { %v2449_v42 = vpop.permute.xlu1 %2448 }
 0x113   : > { %995 = vst.msk [vmem:[#allocation2 + $0x30] sm:$0xff] %vm988_vm14, %v2445_v13  ;;  %996 = vst.msk [vmem:[#allocation2 + $0x38] sm:$0xff] %vm988_vm14, %v2446_v17  ;;  %v2451_v11 = vunpack.i.h.bf16 %v2449_v42  ;;  %v2450_v24 = vunpack.i.l.bf16 %v2449_v42  ;;  %vm1661_vm14 = vcmask 883712  }
 0x114   : > { %v2454_v60 = vpop.permute.xlu0 %2453 }
 0x115   : > { %1030 = vst.msk [vmem:[#allocation2 + $0x20] sm:$0xff] %vm1025_vm15, %v2450_v24  ;;  %1031 = vst.msk [vmem:[#allocation2 + $0x28] sm:$0xff] %vm1025_vm15, %v2451_v11  ;;  %v2456_v27 = vunpack.i.h.bf16 %v2454_v60  ;;  %v2455_v63 = vunpack.i.l.bf16 %v2454_v60 }
 0x116   : > { %v2459_v15 = vpop.permute.xlu1 %2458 }
 0x117   : > { %1374 = vst.msk [vmem:[#allocation2 + $0x10] sm:$0xff] %vm1371_vm7, %v2455_v63  ;;  %1375 = vst.msk [vmem:[#allocation2 + $0x18] sm:$0xff] %vm1371_vm7, %v2456_v27  ;;  %v2461_v41 = vunpack.i.h.bf16 %v2459_v15  ;;  %v2460_v28 = vunpack.i.l.bf16 %v2459_v15 }
 0x118   : > { %v2464_v40 = vpop.permute.xlu0 %2463 }
 0x119   : > { %1406 = vst.msk [vmem:[#allocation2] sm:$0xff] %vm1405_vm8, %v2460_v28  ;;  %1407 = vst.msk [vmem:[#allocation2 + $0x8] sm:$0xff] %vm1405_vm8, %v2461_v41  ;;  %v2466_v3 = vunpack.i.h.bf16 %v2464_v40  ;;  %v2465_v19 = vunpack.i.l.bf16 %v2464_v40 }
 0x11a   : > { %v2469_v25 = vpop.permute.xlu1 %2468 }
 0x11b   : > { %1032 = vst.msk [vmem:[#allocation2 + $0x30] sm:$0xff] %vm1025_vm15, %v2465_v19  ;;  %1033 = vst.msk [vmem:[#allocation2 + $0x38] sm:$0xff] %vm1025_vm15, %v2466_v3  ;;  %v2471_v31 = vunpack.i.h.bf16 %v2469_v25  ;;  %v2470_v34 = vunpack.i.l.bf16 %v2469_v25  ;;  %vm1771_vm15 = vcmask 24576  }
 0x11c   : > { %v2474_v22 = vpop.permute.xlu0 %2473 }
 0x11d   : > { %1066 = vst.msk [vmem:[#allocation2 + $0x20] sm:$0xff] %vm1061_vm3, %v2470_v34  ;;  %1067 = vst.msk [vmem:[#allocation2 + $0x28] sm:$0xff] %vm1061_vm3, %v2471_v31  ;;  %v2476_v35 = vunpack.i.h.bf16 %v2474_v22  ;;  %v2475_v33 = vunpack.i.l.bf16 %v2474_v22 }
 0x11e   : > { %v2479_v23 = vpop.permute.xlu1 %2478 }
 0x11f   : > { %1408 = vst.msk [vmem:[#allocation2 + $0x10] sm:$0xff] %vm1405_vm8, %v2475_v33  ;;  %1409 = vst.msk [vmem:[#allocation2 + $0x18] sm:$0xff] %vm1405_vm8, %v2476_v35  ;;  %v2481_v30 = vunpack.i.h.bf16 %v2479_v23  ;;  %v2480_v18 = vunpack.i.l.bf16 %v2479_v23 }
 0x120   : > { %v2484_v39 = vpop.permute.xlu0 %2483 }
 0x121   : > { %1443 = vst.msk [vmem:[#allocation2] sm:$0xff] %vm1442_vm9, %v2480_v18  ;;  %1444 = vst.msk [vmem:[#allocation2 + $0x8] sm:$0xff] %vm1442_vm9, %v2481_v30  ;;  %v2486_v49 = vunpack.i.h.bf16 %v2484_v39  ;;  %v2485_v51 = vunpack.i.l.bf16 %v2484_v39 }
 0x122   : > { %v2489_v53 = vpop.permute.xlu1 %2488 }
 0x123   : > { %1068 = vst.msk [vmem:[#allocation2 + $0x30] sm:$0xff] %vm1061_vm3, %v2485_v51  ;;  %1069 = vst.msk [vmem:[#allocation2 + $0x38] sm:$0xff] %vm1061_vm3, %v2486_v49  ;;  %v2491_v54 = vunpack.i.h.bf16 %v2489_v53  ;;  %v2490_v32 = vunpack.i.l.bf16 %v2489_v53 }
 0x124   : > { %v2494_v57 = vpop.permute.xlu0 %2493 }
 0x125   : > { %1100 = vst.msk [vmem:[#allocation2 + $0x20] sm:$0xff] %vm1095_vm4, %v2490_v32  ;;  %1101 = vst.msk [vmem:[#allocation2 + $0x28] sm:$0xff] %vm1095_vm4, %v2491_v54  ;;  %v2496_v48 = vunpack.i.h.bf16 %v2494_v57  ;;  %v2495_v46 = vunpack.i.l.bf16 %v2494_v57 }
 0x126   : > { %v2499_v36 = vpop.permute.xlu1 %2498 }
 0x127   : > { %1445 = vst.msk [vmem:[#allocation2 + $0x10] sm:$0xff] %vm1442_vm9, %v2495_v46  ;;  %1446 = vst.msk [vmem:[#allocation2 + $0x18] sm:$0xff] %vm1442_vm9, %v2496_v48  ;;  %v2501_v62 = vunpack.i.h.bf16 %v2499_v36  ;;  %v2500_v5 = vunpack.i.l.bf16 %v2499_v36 }
 0x128   : > { %v2504_v61 = vpop.permute.xlu0 %2503 }
 0x129   : > { %1479 = vst.msk [vmem:[#allocation2] sm:$0xff] %vm1478_vm10, %v2500_v5  ;;  %1480 = vst.msk [vmem:[#allocation2 + $0x8] sm:$0xff] %vm1478_vm10, %v2501_v62  ;;  %v2506_v7 = vunpack.i.h.bf16 %v2504_v61  ;;  %v2505_v47 = vunpack.i.l.bf16 %v2504_v61 }
 0x12a   : > { %v2509_v58 = vpop.permute.xlu1 %2508 }
 0x12b   : > { %1102 = vst.msk [vmem:[#allocation2 + $0x30] sm:$0xff] %vm1095_vm4, %v2505_v47  ;;  %1103 = vst.msk [vmem:[#allocation2 + $0x38] sm:$0xff] %vm1095_vm4, %v2506_v7  ;;  %v2511_v59 = vunpack.i.h.bf16 %v2509_v58  ;;  %v2510_v38 = vunpack.i.l.bf16 %v2509_v58 }
 0x12c   : > { %v2514_v14 = vpop.permute.xlu0 %2513 }
 0x12d   : > { %1137 = vst.msk [vmem:[#allocation2 + $0x20] sm:$0xff] %vm1132_vm0, %v2510_v38  ;;  %1138 = vst.msk [vmem:[#allocation2 + $0x28] sm:$0xff] %vm1132_vm0, %v2511_v59  ;;  %v2516_v50 = vunpack.i.h.bf16 %v2514_v14  ;;  %v2515_v21 = vunpack.i.l.bf16 %v2514_v14 }
 0x12e   : > { %v2519_v37 = vpop.permute.xlu1 %2518 }
 0x12f   : > { %1481 = vst.msk [vmem:[#allocation2 + $0x10] sm:$0xff] %vm1478_vm10, %v2515_v21  ;;  %1482 = vst.msk [vmem:[#allocation2 + $0x18] sm:$0xff] %vm1478_vm10, %v2516_v50  ;;  %v2521_v1 = vunpack.i.h.bf16 %v2519_v37  ;;  %v2520_v26 = vunpack.i.l.bf16 %v2519_v37 }
 0x130   : > { %v2524_v4 = vpop.permute.xlu0 %2523 }
 0x131   : > { %1513 = vst.msk [vmem:[#allocation2] sm:$0xff] %vm1512_vm11, %v2520_v26  ;;  %1514 = vst.msk [vmem:[#allocation2 + $0x8] sm:$0xff] %vm1512_vm11, %v2521_v1  ;;  %v2526_v56 = vunpack.i.h.bf16 %v2524_v4  ;;  %v2525_v55 = vunpack.i.l.bf16 %v2524_v4 }
 0x132   : > { %v2529_v10 = vpop.permute.xlu1 %2528 }
 0x133   : > { %1139 = vst.msk [vmem:[#allocation2 + $0x30] sm:$0xff] %vm1132_vm0, %v2525_v55  ;;  %1140 = vst.msk [vmem:[#allocation2 + $0x38] sm:$0xff] %vm1132_vm0, %v2526_v56  ;;  %v2531_v12 = vunpack.i.h.bf16 %v2529_v10  ;;  %v2530_v0 = vunpack.i.l.bf16 %v2529_v10 }
 0x134   : > { %v2534_v2 = vpop.permute.xlu0 %2533 }
 0x135   : > { %1173 = vst.msk [vmem:[#allocation2 + $0x20] sm:$0xff] %vm1168_vm2, %v2530_v0  ;;  %1174 = vst.msk [vmem:[#allocation2 + $0x28] sm:$0xff] %vm1168_vm2, %v2531_v12  ;;  %v2536_v8 = vunpack.i.h.bf16 %v2534_v2  ;;  %v2535_v6 = vunpack.i.l.bf16 %v2534_v2 }
 0x136   : > { %v2539_v9 = vpop.permute.xlu1 %2538 }
 0x137   : > { %1515 = vst.msk [vmem:[#allocation2 + $0x10] sm:$0xff] %vm1512_vm11, %v2535_v6  ;;  %1516 = vst.msk [vmem:[#allocation2 + $0x18] sm:$0xff] %vm1512_vm11, %v2536_v8  ;;  %v2541_v44 = vunpack.i.h.bf16 %v2539_v9  ;;  %v2540_v29 = vunpack.i.l.bf16 %v2539_v9 }
 0x138   : > { %v2544_v16 = vpop.permute.xlu0 %2543 }
 0x139   : > { %1550 = vst.msk [vmem:[#allocation2] sm:$0xff] %vm1549_vm12, %v2540_v29  ;;  %1551 = vst.msk [vmem:[#allocation2 + $0x8] sm:$0xff] %vm1549_vm12, %v2541_v44  ;;  %v2546_v43 = vunpack.i.h.bf16 %v2544_v16  ;;  %v2545_v45 = vunpack.i.l.bf16 %v2544_v16 }
 0x13a   : > { %v2549_v20 = vpop.permute.xlu1 %2548 }
 0x13b   : > { %1175 = vst.msk [vmem:[#allocation2 + $0x30] sm:$0xff] %vm1168_vm2, %v2545_v45  ;;  %1176 = vst.msk [vmem:[#allocation2 + $0x38] sm:$0xff] %vm1168_vm2, %v2546_v43  ;;  %v2551_v52 = vunpack.i.h.bf16 %v2549_v20  ;;  %v2550_v17 = vunpack.i.l.bf16 %v2549_v20 }
 0x13c   : > { %v2554_v13 = vpop.permute.xlu0 %2553 }
 0x13d   : > { %1254 = vst.msk [vmem:[#allocation2 + $0x20] sm:$0xff] %vm1249_vm5, %v2550_v17  ;;  %1255 = vst.msk [vmem:[#allocation2 + $0x28] sm:$0xff] %vm1249_vm5, %v2551_v52  ;;  %v2556_v42 = vunpack.i.h.bf16 %v2554_v13  ;;  %v2555_v11 = vunpack.i.l.bf16 %v2554_v13 }
 0x13e   : > { %v2559_v24 = vpop.permute.xlu1 %2558 }
 0x13f   : > { %1552 = vst.msk [vmem:[#allocation2 + $0x10] sm:$0xff] %vm1549_vm12, %v2555_v11  ;;  %1553 = vst.msk [vmem:[#allocation2 + $0x18] sm:$0xff] %vm1549_vm12, %v2556_v42  ;;  %v2561_v60 = vunpack.i.h.bf16 %v2559_v24  ;;  %v2560_v27 = vunpack.i.l.bf16 %v2559_v24 }
 0x140   : > { %v2564_v63 = vpop.permute.xlu0 %2563 }
 0x141   : > { %1586 = vst.msk [vmem:[#allocation2] sm:$0xff] %vm1585_vm13, %v2560_v27  ;;  %1587 = vst.msk [vmem:[#allocation2 + $0x8] sm:$0xff] %vm1585_vm13, %v2561_v60  ;;  %v2566_v15 = vunpack.i.h.bf16 %v2564_v63  ;;  %v2565_v41 = vunpack.i.l.bf16 %v2564_v63 }
 0x142   : > { %v2569_v28 = vpop.permute.xlu1 %2568 }
 0x143   : > { %1256 = vst.msk [vmem:[#allocation2 + $0x30] sm:$0xff] %vm1249_vm5, %v2565_v41  ;;  %1257 = vst.msk [vmem:[#allocation2 + $0x38] sm:$0xff] %vm1249_vm5, %v2566_v15  ;;  %v2571_v40 = vunpack.i.h.bf16 %v2569_v28  ;;  %v2570_v3 = vunpack.i.l.bf16 %v2569_v28 }
 0x144   : > { %v2574_v19 = vpop.permute.xlu0 %2573 }
 0x145   : > { %1319 = vst.msk [vmem:[#allocation2 + $0x20] sm:$0xff] %vm1314_vm6, %v2570_v3  ;;  %1320 = vst.msk [vmem:[#allocation2 + $0x28] sm:$0xff] %vm1314_vm6, %v2571_v40  ;;  %v2576_v25 = vunpack.i.h.bf16 %v2574_v19  ;;  %v2575_v31 = vunpack.i.l.bf16 %v2574_v19 }
 0x146   : > { %v2579_v34 = vpop.permute.xlu1 %2578 }
 0x147   : > { %1588 = vst.msk [vmem:[#allocation2 + $0x10] sm:$0xff] %vm1585_vm13, %v2575_v31  ;;  %1589 = vst.msk [vmem:[#allocation2 + $0x18] sm:$0xff] %vm1585_vm13, %v2576_v25  ;;  %v2581_v22 = vunpack.i.h.bf16 %v2579_v34  ;;  %v2580_v35 = vunpack.i.l.bf16 %v2579_v34 }
 0x148   : > { %v2584_v33 = vpop.permute.xlu0 %2583  ;;  %v1594_v23 = vld [vmem:[#allocation2] sm:$0xff]  ;;  %v1595_v30 = vld [vmem:[#allocation2 + $0x8] sm:$0xff] }
 0x149   : > { %1321 = vst.msk [vmem:[#allocation2 + $0x30] sm:$0xff] %vm1314_vm6, %v2580_v35  ;;  %1322 = vst.msk [vmem:[#allocation2 + $0x38] sm:$0xff] %vm1314_vm6, %v2581_v22  ;;  %v2586_v18 = vunpack.i.h.bf16 %v2584_v33  ;;  %v2585_v39 = vunpack.i.l.bf16 %v2584_v33  ;;  %v1602_v49 = vpack.c.bf16 %v1595_v30, %v1594_v23 }
 0x14a   : > { %v2589_v51 = vpop.permute.xlu1 %2588 }
 0x14b   : > { %1376 = vst.msk [vmem:[#allocation2 + $0x20] sm:$0xff] %vm1371_vm7, %v2585_v39  ;;  %1377 = vst.msk [vmem:[#allocation2 + $0x28] sm:$0xff] %vm1371_vm7, %v2586_v18  ;;  %v2591_v53 = vunpack.i.h.bf16 %v2589_v51  ;;  %v2590_v54 = vunpack.i.l.bf16 %v2589_v51  ;;  %2038 = vmatprep.mubr.msk.bf16.mxu0 %vm1661_vm14, %v1602_v49 }
 0x14c   : > { %v2594_v32 = vpop.permute.xlu0 %2593 }
 0x14d   : > { %1378 = vst.msk [vmem:[#allocation2 + $0x30] sm:$0xff] %vm1371_vm7, %v2590_v54  ;;  %1379 = vst.msk [vmem:[#allocation2 + $0x38] sm:$0xff] %vm1371_vm7, %v2591_v53  ;;  %v2596_v57 = vunpack.i.h.bf16 %v2594_v32  ;;  %v2595_v48 = vunpack.i.l.bf16 %v2594_v32 }
 0x14e   : > { %v2599_v46 = vpop.permute.xlu1 %2598  ;;  %v1596_v36 = vld [vmem:[#allocation2 + $0x10] sm:$0xff]  ;;  %v1597_v62 = vld [vmem:[#allocation2 + $0x18] sm:$0xff] }
 0x14f   : > { %1410 = vst.msk [vmem:[#allocation2 + $0x20] sm:$0xff] %vm1405_vm8, %v2595_v48  ;;  %1411 = vst.msk [vmem:[#allocation2 + $0x28] sm:$0xff] %vm1405_vm8, %v2596_v57  ;;  %v2601_v5 = vunpack.i.h.bf16 %v2599_v46  ;;  %v2600_v61 = vunpack.i.l.bf16 %v2599_v46  ;;  %v1603_v7 = vpack.c.bf16 %v1597_v62, %v1596_v36 }
 0x150   : > { %v2604_v47 = vpop.permute.xlu0 %2603 }
 0x151   : > { %1412 = vst.msk [vmem:[#allocation2 + $0x30] sm:$0xff] %vm1405_vm8, %v2600_v61  ;;  %1413 = vst.msk [vmem:[#allocation2 + $0x38] sm:$0xff] %vm1405_vm8, %v2601_v5  ;;  %v2606_v58 = vunpack.i.h.bf16 %v2604_v47  ;;  %v2605_v59 = vunpack.i.l.bf16 %v2604_v47  ;;  %2039 = vmatmul.mubr.msk.bf16.vlgmr.msra.gmra.mrb[0].mxu0 %vm1661_vm14, %v1603_v7 }
 0x152   : > { %v2609_v38 = vpop.permute.xlu1 %2608 }
 0x153   : > { %1447 = vst.msk [vmem:[#allocation2 + $0x20] sm:$0xff] %vm1442_vm9, %v2605_v59  ;;  %1448 = vst.msk [vmem:[#allocation2 + $0x28] sm:$0xff] %vm1442_vm9, %v2606_v58  ;;  %v2611_v14 = vunpack.i.h.bf16 %v2609_v38  ;;  %v2610_v50 = vunpack.i.l.bf16 %v2609_v38 }
 0x154   : > { %v2614_v21 = vpop.permute.xlu0 %2613 }
 0x155   : > { %1449 = vst.msk [vmem:[#allocation2 + $0x30] sm:$0xff] %vm1442_vm9, %v2610_v50  ;;  %1450 = vst.msk [vmem:[#allocation2 + $0x38] sm:$0xff] %vm1442_vm9, %v2611_v14  ;;  %v2616_v37 = vunpack.i.h.bf16 %v2614_v21  ;;  %v2615_v1 = vunpack.i.l.bf16 %v2614_v21 }
 0x156   : > { %v2619_v26 = vpop.permute.xlu1 %2618 }
 0x157   : > { %1483 = vst.msk [vmem:[#allocation2 + $0x20] sm:$0xff] %vm1478_vm10, %v2615_v1  ;;  %1484 = vst.msk [vmem:[#allocation2 + $0x28] sm:$0xff] %vm1478_vm10, %v2616_v37  ;;  %v2621_v4 = vunpack.i.h.bf16 %v2619_v26  ;;  %v2620_v56 = vunpack.i.l.bf16 %v2619_v26 }
 0x158   : > { %v2624_v55 = vpop.permute.xlu0 %2623 }
 0x159   : > { %1485 = vst.msk [vmem:[#allocation2 + $0x30] sm:$0xff] %vm1478_vm10, %v2620_v56  ;;  %1486 = vst.msk [vmem:[#allocation2 + $0x38] sm:$0xff] %vm1478_vm10, %v2621_v4  ;;  %v2626_v10 = vunpack.i.h.bf16 %v2624_v55  ;;  %v2625_v12 = vunpack.i.l.bf16 %v2624_v55 }
 0x15a   : > { %v2629_v0 = vpop.permute.xlu1 %2628 }
 0x15b   : > { %1517 = vst.msk [vmem:[#allocation2 + $0x20] sm:$0xff] %vm1512_vm11, %v2625_v12  ;;  %1518 = vst.msk [vmem:[#allocation2 + $0x28] sm:$0xff] %vm1512_vm11, %v2626_v10  ;;  %v2631_v2 = vunpack.i.h.bf16 %v2629_v0  ;;  %v2630_v8 = vunpack.i.l.bf16 %v2629_v0 }
 0x15c   : > { %v2634_v6 = vpop.permute.xlu0 %2633 }
 0x15d   : > { %1519 = vst.msk [vmem:[#allocation2 + $0x30] sm:$0xff] %vm1512_vm11, %v2630_v8  ;;  %1520 = vst.msk [vmem:[#allocation2 + $0x38] sm:$0xff] %vm1512_vm11, %v2631_v2  ;;  %v2636_v9 = vunpack.i.h.bf16 %v2634_v6  ;;  %v2635_v44 = vunpack.i.l.bf16 %v2634_v6 }
 0x15e   : > { %v2639_v29 = vpop.permute.xlu1 %2638 }
 0x15f   : > { %1554 = vst.msk [vmem:[#allocation2 + $0x20] sm:$0xff] %vm1549_vm12, %v2635_v44  ;;  %1555 = vst.msk [vmem:[#allocation2 + $0x28] sm:$0xff] %vm1549_vm12, %v2636_v9  ;;  %v2641_v16 = vunpack.i.h.bf16 %v2639_v29  ;;  %v2640_v43 = vunpack.i.l.bf16 %v2639_v29 }
 0x160   : > { %v2644_v45 = vpop.permute.xlu0 %2643 }
 0x161   : > { %1556 = vst.msk [vmem:[#allocation2 + $0x30] sm:$0xff] %vm1549_vm12, %v2640_v43  ;;  %1557 = vst.msk [vmem:[#allocation2 + $0x38] sm:$0xff] %vm1549_vm12, %v2641_v16  ;;  %v2646_v20 = vunpack.i.h.bf16 %v2644_v45  ;;  %v2645_v52 = vunpack.i.l.bf16 %v2644_v45 }
 0x162   : > { %v2649_v17 = vpop.permute.xlu1 %2648 }
 0x163   : > { %1590 = vst.msk [vmem:[#allocation2 + $0x20] sm:$0xff] %vm1585_vm13, %v2645_v52  ;;  %1591 = vst.msk [vmem:[#allocation2 + $0x28] sm:$0xff] %vm1585_vm13, %v2646_v20  ;;  %v2651_v13 = vunpack.i.h.bf16 %v2649_v17  ;;  %v2650_v42 = vunpack.i.l.bf16 %v2649_v17 }
 0x165   : > { %1592 = vst.msk [vmem:[#allocation2 + $0x30] sm:$0xff] %vm1585_vm13, %v2650_v42  ;;  %1593 = vst.msk [vmem:[#allocation2 + $0x38] sm:$0xff] %vm1585_vm13, %v2651_v13 }
 0x16a   : > { %v1598_v11 = vld [vmem:[#allocation2 + $0x20] sm:$0xff]  ;;  %v1599_v24 = vld [vmem:[#allocation2 + $0x28] sm:$0xff] }
 0x16b   : > { %v1604_v60 = vpack.c.bf16 %v1599_v24, %v1598_v11 }
 0x16c   : > { %v1600_v27 = vld [vmem:[#allocation2 + $0x30] sm:$0xff]  ;;  %v1601_v63 = vld [vmem:[#allocation2 + $0x38] sm:$0xff] }
 0x16d   : > { %2042 = vmatprep.mubr.msk.bf16.mxu1 %vm1661_vm14, %v1604_v60  ;;  %v1605_v15 = vpack.c.bf16 %v1601_v63, %v1600_v27 }
 0x16f   : > { %2043 = vmatmul.mubr.msk.bf16.vlgmr.msra.gmra.mrb[0].mxu1 %vm1661_vm14, %v1605_v15 }
 0x224   : > { %v2040_v41 = vpop.f32.mrb[0].mxu0 }
 0x225   : > { %1744 = vst.msk [vmem:[%s3716_s27 + $0x10] sm:$0xff] %vm405_vm1, %v2040_v41  ;;  %v1711_v28 = vpop.f32.mrb[1].mxu0  ;;  %v1775_v25 = vmul.f32 %v2040_v41, %v2040_v41  ;;  %v1753_v33 = vsel %vm405_vm1, %v2040_v41, 0.0 }
 0x226   : > { %1742 = vst.msk [vmem:[%s3716_s27] sm:$0xff] %vm405_vm1, %v1711_v28  ;;  %v1773_v40 = vmul.f32 %v1711_v28, %v1711_v28  ;;  %v2041_v3 = vpop.f32.mrb[2].mxu0  ;;  %v1750_v31 = vsel %vm405_vm1, %v1711_v28, 0.0 }
 0x227   : > { %1745 = vst.msk [vmem:[%s3716_s27 + $0x18] sm:$0xff] %vm405_vm1, %v2041_v3  ;;  %v1714_v19 = vpop.f32.mrb[3].mxu0  ;;  %v1776_v30 = vmul.f32 %v2041_v3, %v2041_v3  ;;  %v1784_v51 = vsel %vm405_vm1, %v1775_v25, 0.0  ;;  %v1755_v53 = vsel %vm405_vm1, %v2041_v3, 0.0 }
 0x228   : > { %1743 = vst.msk [vmem:[%s3716_s27 + $0x8] sm:$0xff] %vm405_vm1, %v1714_v19  ;;  %v1751_v34 = vsel %vm405_vm1, %v1714_v19, 0.0  ;;  %v1774_v22 = vmul.f32 %v1714_v19, %v1714_v19  ;;  %v1781_v23 = vsel %vm405_vm1, %v1773_v40, 0.0 }
 0x229   : > { %v1752_v35 = vadd.f32 %v1751_v34, %v1750_v31  ;;  %v1786_v57 = vsel %vm405_vm1, %v1776_v30, 0.0 }
 0x22a   : > { %v1782_v18 = vsel %vm405_vm1, %v1774_v22, 0.0 }
 0x22b   : > { %v1754_v39 = vadd.f32 %v1753_v33, %v1752_v35  ;;  %v1783_v49 = vadd.f32 %v1782_v18, %v1781_v23 }
 0x22d   : > { %v1785_v54 = vadd.f32 %v1784_v51, %v1783_v49  ;;  %v1756_v32 = vadd.f32 %v1755_v53, %v1754_v39 }
 0x22f   : > { %v1787_v48 = vadd.f32 %v1786_v57, %v1785_v54 }
 0x242   : > { %v2044_v46 = vpop.f32.mrb[0].mxu1 }
 0x243   : > { %1748 = vst.msk [vmem:[%s3716_s27 + $0x30] sm:$0xff] %vm405_vm1, %v2044_v46  ;;  %v1727_v36 = vpop.f32.mrb[1].mxu1  ;;  %v1779_v58 = vmul.f32 %v2044_v46, %v2044_v46  ;;  %v1761_v37 = vsel %vm405_vm1, %v2044_v46, 0.0 }
 0x244   : > { %1746 = vst.msk [vmem:[%s3716_s27 + $0x20] sm:$0xff] %vm405_vm1, %v1727_v36  ;;  %v1757_v62 = vsel %vm405_vm1, %v1727_v36, 0.0  ;;  %v1777_v5 = vmul.f32 %v1727_v36, %v1727_v36  ;;  %v2045_v61 = vpop.f32.mrb[2].mxu1 }
 0x245   : > { %v1758_v7 = vadd.f32 %v1757_v62, %v1756_v32  ;;  %1749 = vst.msk [vmem:[%s3716_s27 + $0x38] sm:$0xff] %vm405_vm1, %v2045_v61  ;;  %v1730_v47 = vpop.f32.mrb[3].mxu1  ;;  %v1780_v1 = vmul.f32 %v2045_v61, %v2045_v61  ;;  %v1792_v55 = vsel %vm405_vm1, %v1779_v58, 0.0  ;;  %v1763_v10 = vsel %vm405_vm1, %v2045_v61, 0.0 }
 0x246   : > { %v1788_v59 = vsel %vm405_vm1, %v1777_v5, 0.0  ;;  %1747 = vst.msk [vmem:[%s3716_s27 + $0x28] sm:$0xff] %vm405_vm1, %v1730_v47  ;;  %v1759_v38 = vsel %vm405_vm1, %v1730_v47, 0.0  ;;  %v1778_v14 = vmul.f32 %v1730_v47, %v1730_v47 }
 0x247   : > { %v1789_v50 = vadd.f32 %v1788_v59, %v1787_v48  ;;  %v1760_v21 = vadd.f32 %v1759_v38, %v1758_v7  ;;  %v1794_v2 = vsel %vm405_vm1, %v1780_v1, 0.0 }
 0x248   : > { %v1790_v26 = vsel %vm405_vm1, %v1778_v14, 0.0 }
 0x249   : > { %v1762_v4 = vadd.f32 %v1761_v37, %v1760_v21  ;;  %v1791_v56 = vadd.f32 %v1790_v26, %v1789_v50 }
 0x24b   : > { %v1764_v12 = vadd.f32 %v1763_v10, %v1762_v4  ;;  %v1793_v0 = vadd.f32 %v1792_v55, %v1791_v56 }
 0x24d   : > { %v1765_v8 = vrot.slane %v1764_v12, 4  ;;  %v1795_v6 = vadd.f32 %v1794_v2, %v1793_v0 }
 0x24f   : > { %v1766_v9 = vadd.f32 %v1765_v8, %v1764_v12  ;;  %v1796_v44 = vrot.slane %v1795_v6, 4 }
 0x251   : > { %v1767_v29 = vrot.slane %v1766_v9, 2  ;;  %v1797_v16 = vadd.f32 %v1796_v44, %v1795_v6 }
 0x253   : > { %v1768_v43 = vadd.f32 %v1767_v29, %v1766_v9  ;;  %v1798_v45 = vrot.slane %v1797_v16, 2 }
 0x255   : > { %v1769_v20 = vrot.slane %v1768_v43, 1  ;;  %v1799_v52 = vadd.f32 %v1798_v45, %v1797_v16 }
 0x257   : > { %v1770_v17 = vadd.f32 %v1769_v20, %v1768_v43  ;;  %v1800_v13 = vrot.slane %v1799_v52, 1 }
 0x259   : > { %1772 = vst.msk [vmem:[%s363_s12] sm:$0x1] %vm1771_vm15, %v1770_v17  ;;  %v1801_v42 = vadd.f32 %v1800_v13, %v1799_v52 }
 0x25b   : > { %1802 = vst.msk [vmem:[%s363_s12 + $0x1] sm:$0x1] %vm1771_vm15, %v1801_v42 }
 0x25c PF: > { %s16_s22 = sadd.s32 1, %s2697_s22   ;;  %s3776_s18 = smov %s2689_s20 }
 0x25d   : > { %p13_p10 = scmp.ge.s32.totalorder %s16_s22, 18   ;;  %s3777_s19 = smov %s2693_s21 }
 0x25e   : > { %s3778_s20 = smov %s3781_s23  ;;  %s3779_s21 = smov %s3785_s24 }
 0x25f   :  { %15 = sbr.rel (!%p13_p10) target bundleno = 3 (0x3), region = 84 }

// kernel: residual_block3d_forward.7
= control target key start
LH: loop header
LB: loop body
LE: loop exit
PB: predicated region body
PF: predicated region fallthrough
CT: control target
= control target key end

     0   :  { %v23_v0 = vlaneseq  ;;  %s160_s1 = inlined_call_operand.vmem [shape: f32[1,512], index: 1, kind: input, shape index: {}]   ;;  %s161_s2 = inlined_call_operand.vmem [shape: f32[1,512], index: 2, kind: input, shape index: {}]   ;;  %s162_s0 = inlined_call_operand.vmem [shape: f32[8,512], index: 0, kind: input, shape index: {}]   ;;  %s163_s3 = inlined_call_operand.vmem [shape: f32[8,512], index: 3, kind: input, shape index: {}]   ;;  %s164_s4 = inlined_call_operand.vmem [shape: f32[8,512], index: 4, kind: output, shape index: {}]  }
   0x1   :  { %v21_v2 = vld [vmem:[%s160_s1] sm:$0xf]  ;;  %v18_v9 = vld [vmem:[%s162_s0 + $0x8] sm:$0xff]  ;;  %v19_v14 = vld [vmem:[%s162_s0 + $0x10] sm:$0xff] }
   0x2   :  { %v24_v1 = vshrl.u32 %v23_v0, 7  ;;  %v47_v3 = vld [vmem:[%s161_s2] sm:$0xf]  ;;  %v20_v15 = vld [vmem:[%s162_s0 + $0x18] sm:$0xff]  ;;  %v74_v23 = vld [vmem:[%s163_s3 + $0x8] sm:$0xff] }
   0x3   :  { %v17_v8 = vld [vmem:[%s162_s0] sm:$0xff]  ;;  %v75_v28 = vld [vmem:[%s163_s3 + $0x10] sm:$0xff]  ;;  %v76_v29 = vld [vmem:[%s163_s3 + $0x18] sm:$0xff] }
   0x4   :  { %v25_v4 = vsub.s32 0, %v24_v1  ;;  %v29_v5 = vsub.s32 1, %v24_v1  ;;  %v33_v6 = vsub.s32 2, %v24_v1  ;;  %v37_v7 = vsub.s32 3, %v24_v1  ;;  %v73_v22 = vld [vmem:[%s163_s3] sm:$0xff] }
   0x6   :  { %v26_v10 = vrot.slane %v21_v2, %v25_v4  ;;  %v52_v11 = vrot.slane %v47_v3, %v25_v4  ;;  %v30_v12 = vrot.slane %v21_v2, %v29_v5  ;;  %v56_v13 = vrot.slane %v47_v3, %v29_v5 }
   0x7   :  { %v34_v16 = vrot.slane %v21_v2, %v33_v6  ;;  %v60_v17 = vrot.slane %v47_v3, %v33_v6  ;;  %v38_v18 = vrot.slane %v21_v2, %v37_v7  ;;  %v64_v19 = vrot.slane %v47_v3, %v37_v7 }
   0x8   :  { %v43_v20 = vmul.f32 %v26_v10, %v17_v8  ;;  %v44_v21 = vmul.f32 %v30_v12, %v18_v9 }
   0x9   :  { %v45_v24 = vmul.f32 %v34_v16, %v19_v14  ;;  %v46_v25 = vmul.f32 %v38_v18, %v20_v15 }
   0xa   :  { %v69_v26 = vadd.f32 %v52_v11, %v43_v20  ;;  %v70_v27 = vadd.f32 %v56_v13, %v44_v21 }
   0xb   :  { %v71_v30 = vadd.f32 %v60_v17, %v45_v24  ;;  %v72_v31 = vadd.f32 %v64_v19, %v46_v25 }
   0xc   :  { %v77_v32 = vadd.f32 %v73_v22, %v69_v26  ;;  %v78_v33 = vadd.f32 %v74_v23, %v70_v27 }
   0xd   :  { %v79_v34 = vadd.f32 %v75_v28, %v71_v30  ;;  %v80_v35 = vadd.f32 %v76_v29, %v72_v31 }
   0xe   :  { %v81_v36 = vmax.f32 %v77_v32, 0.0  ;;  %v82_v37 = vmax.f32 %v78_v33, 0.0 }
   0xf   :  { %v83_v38 = vmax.f32 %v79_v34, 0.0  ;;  %v84_v39 = vmax.f32 %v80_v35, 0.0 }
  0x10   :  { %85 = vst [vmem:[%s164_s4] sm:$0xff] %v81_v36  ;;  %86 = vst [vmem:[%s164_s4 + $0x8] sm:$0xff] %v82_v37 }
  0x11   :  { %87 = vst [vmem:[%s164_s4 + $0x10] sm:$0xff] %v83_v38  ;;  %88 = vst [vmem:[%s164_s4 + $0x18] sm:$0xff] %v84_v39 }

</bundles_post_ra>
